<compile_context>
chip_gen: v6e
topology: v6e:2x2x1
jax: 0.10.0
libtpu: 0.0.40
codegen_flags: <defaults>
</compile_context>

<pallas_src>
import functools

import jax
import jax.numpy as jnp
from jax.experimental import pallas as pl
from jax.experimental.pallas import tpu as pltpu


# ----------------------------------------------------------------------------
# Host-side helpers.
# ----------------------------------------------------------------------------
def _round_up(x, m):
    return ((x + m - 1) // m) * m


def _pick_tile_h(H, n_batch, bytes_per_row, budget_bytes=12 * 1024 * 1024,
                 min_steps=4):
    """Largest divisor tH of H whose per-step VMEM estimate fits the budget,
    preferring tiles that still leave >= min_steps grid steps for pipelining."""
    divisors = [t for t in range(1, H + 1) if H % t == 0]
    fitting = [t for t in divisors if t * bytes_per_row <= budget_bytes] or [1]
    good = [t for t in fitting if n_batch * (H // t) >= min_steps]
    return max(good) if good else max(fitting)


def _halo_tiles(x, tH):
    """(N,H,W,C) f32 -> bf16 (N, H//tH, tH+2, W+2, C) overlapping halo tiles
    for a 3x3 'same' conv.  ~1.07x the input size (vs 16x for full im2col)."""
    N, H, W, C = x.shape
    xp = jnp.pad(x.astype(jnp.bfloat16), ((0, 0), (1, 1), (1, 1), (0, 0)))
    nH = H // tH
    tiles = [xp[:, t * tH:t * tH + tH + 2] for t in range(nH)]
    return jnp.stack(tiles, axis=1)


def _pack_weight(w, kpad):
    """(3,3,Cin,Cout) -> bf16 (kpad, Cout); row order (ky,kx,cin) matches the
    in-kernel patch assembly."""
    kh, kw, cin, cout = w.shape
    w2 = w.reshape(kh * kw * cin, cout)
    if kpad > kh * kw * cin:
        w2 = jnp.pad(w2, ((0, kpad - kh * kw * cin), (0, 0)))
    return w2.astype(jnp.bfloat16)


def _interleave_wb(m, C):
    """Reorder conv2 columns so each 128-wide chunk of the 'w' half (ch 0..C-1)
    is adjacent to the matching chunk of the 'b' half (ch C..2C-1)."""
    cols = []
    for c0 in range(0, C, 128):
        cols.append(m[..., c0:c0 + 128])
        cols.append(m[..., C + c0:C + c0 + 128])
    return jnp.concatenate(cols, axis=-1)


# ----------------------------------------------------------------------------
# In-kernel im2col assembly (halo tile -> lane-dense matmul LHS in VMEM).
# ----------------------------------------------------------------------------
def _assemble_patches(halo_ref, lhs_ref, cin, kpad):
    """halo_ref block (1,1,tH+2,W+2,cin) bf16 -> returns (tH*W, kpad) bf16 LHS.
    Uses static lane-slice stores into the lhs VMEM scratch.  The final
    reshape merges (tH, W) into sublanes -- free when W % 8 == 0."""
    tH, W = lhs_ref.shape[0], lhs_ref.shape[1]
    hv = halo_ref[...].reshape(tH + 2, W + 2, cin)
    for idx in range(9):
        ky, kx = idx // 3, idx % 3
        lhs_ref[:, :, idx * cin:(idx + 1) * cin] = hv[ky:ky + tH, kx:kx + W, :]
    if kpad > 9 * cin:
        lhs_ref[:, :, 9 * cin:] = jnp.zeros((tH, W, kpad - 9 * cin),
                                            lhs_ref.dtype)
    return lhs_ref[...].reshape(tH * W, kpad)


# ----------------------------------------------------------------------------
# Kernel 1: conv0 BN batch statistics only (y0 is never written to HBM).
# Both grid axes are "parallel"; per-(n, h-tile) partials are reduced on host.
# ----------------------------------------------------------------------------
def _conv0_stats_kernel(l_ref, w0_ref, b0_ref, sum_ref, sq_ref, lhs_ref):
    cin = l_ref.shape[-1]
    kpad = lhs_ref.shape[-1]
    C = w0_ref.shape[1]
    lhs = _assemble_patches(l_ref, lhs_ref, cin, kpad)
    for c0 in range(0, C, 128):
        y = jnp.dot(lhs, w0_ref[:, c0:c0 + 128],
                    preferred_element_type=jnp.float32) + b0_ref[:, c0:c0 + 128]
        s = jnp.sum(y, axis=0).reshape(1, 1, 1, 128)
        q = jnp.sum(y * y, axis=0).reshape(1, 1, 1, 128)
        # 8 identical sublanes keep the output block (1,1,8,C) tiling-legal.
        sum_ref[:, :, :, c0:c0 + 128] = jnp.broadcast_to(s, (1, 1, 8, 128))
        sq_ref[:, :, :, c0:c0 + 128] = jnp.broadcast_to(q, (1, 1, 8, 128))


def conv0_bn_stats(left_tiles, w0p, b0):
    N, nH, tHp2, Wp2, cin = left_tiles.shape
    tH, W = tHp2 - 2, Wp2 - 2
    kpad, C = w0p.shape
    b0r = b0.reshape(1, C).astype(jnp.float32)
    sums, sqs = pl.pallas_call(
        _conv0_stats_kernel,
        grid=(N, nH),
        in_specs=[
            pl.BlockSpec((1, 1, tHp2, Wp2, cin), lambda n, t: (n, t, 0, 0, 0)),
            pl.BlockSpec((kpad, C), lambda n, t: (0, 0)),
            pl.BlockSpec((1, C), lambda n, t: (0, 0)),
        ],
        out_specs=(
            pl.BlockSpec((1, 1, 8, C), lambda n, t: (n, t, 0, 0)),
            pl.BlockSpec((1, 1, 8, C), lambda n, t: (n, t, 0, 0)),
        ),
        out_shape=(
            jax.ShapeDtypeStruct((N, nH, 8, C), jnp.float32),
            jax.ShapeDtypeStruct((N, nH, 8, C), jnp.float32),
        ),
        scratch_shapes=[pltpu.VMEM((tH, W, kpad), jnp.bfloat16)],
        compiler_params=pltpu.CompilerParams(
            dimension_semantics=("parallel", "parallel"),
            vmem_limit_bytes=32 * 1024 * 1024),
    )(left_tiles, w0p, b0r)
    return sums[:, :, 0, :], sqs[:, :, 0, :]


# ----------------------------------------------------------------------------
# Kernel 2 (main fused path): recompute conv0 from left halos, conv2 from down
# halos (w/b-interleaved weights -> one 256-wide matmul per chunk), and the
# whole epilogue relu(w * relu(bn0(conv0(left))) + b).  Only the final output
# is written to HBM.
# ----------------------------------------------------------------------------
def _sa_fused_kernel(l_ref, d_ref, w0_ref, b0_ref, w2_ref, b2_ref,
                     scale_ref, shift_ref, o_ref, lhsl_ref, lhsd_ref):
    cinL, cinD = l_ref.shape[-1], d_ref.shape[-1]
    kpadL, kpadD = lhsl_ref.shape[-1], lhsd_ref.shape[-1]
    tH, W, C = o_ref.shape[1], o_ref.shape[2], o_ref.shape[3]
    lhs_l = _assemble_patches(l_ref, lhsl_ref, cinL, kpadL)
    lhs_d = _assemble_patches(d_ref, lhsd_ref, cinD, kpadD)
    for c0 in range(0, C, 128):
        y0 = jnp.dot(lhs_l, w0_ref[:, c0:c0 + 128],
                     preferred_element_type=jnp.float32) + b0_ref[:, c0:c0 + 128]
        lft = jnp.maximum(y0 * scale_ref[:, c0:c0 + 128]
                          + shift_ref[:, c0:c0 + 128], 0.0)
        wb = jnp.dot(lhs_d, w2_ref[:, 2 * c0:2 * c0 + 256],
                     preferred_element_type=jnp.float32) + b2_ref[:, 2 * c0:2 * c0 + 256]
        out = jnp.maximum(wb[:, :128] * lft + wb[:, 128:], 0.0)
        o_ref[:, :, :, c0:c0 + 128] = out.reshape(1, tH, W, 128).astype(o_ref.dtype)


def sa_fused(left_tiles, down_tiles, w0p, b0, w2p, b2, scale, shift):
    N, nH, tHp2, Wp2, cinL = left_tiles.shape
    cinD = down_tiles.shape[-1]
    tH, W = tHp2 - 2, Wp2 - 2
    H = nH * tH
    kpadL, C = w0p.shape
    kpadD, C2 = w2p.shape
    b0r = b0.reshape(1, C).astype(jnp.float32)
    w2i = _interleave_wb(w2p, C)
    b2i = _interleave_wb(b2.reshape(1, C2).astype(jnp.float32), C)
    return pl.pallas_call(
        _sa_fused_kernel,
        grid=(N, nH),
        in_specs=[
            pl.BlockSpec((1, 1, tHp2, Wp2, cinL), lambda n, t: (n, t, 0, 0, 0)),
            pl.BlockSpec((1, 1, tHp2, Wp2, cinD), lambda n, t: (n, t, 0, 0, 0)),
            pl.BlockSpec((kpadL, C), lambda n, t: (0, 0)),
            pl.BlockSpec((1, C), lambda n, t: (0, 0)),
            pl.BlockSpec((kpadD, C2), lambda n, t: (0, 0)),
            pl.BlockSpec((1, C2), lambda n, t: (0, 0)),
            pl.BlockSpec((1, C), lambda n, t: (0, 0)),
            pl.BlockSpec((1, C), lambda n, t: (0, 0)),
        ],
        out_specs=pl.BlockSpec((1, tH, W, C), lambda n, t: (n, t, 0, 0)),
        out_shape=jax.ShapeDtypeStruct((N, H, W, C), jnp.float32),
        scratch_shapes=[pltpu.VMEM((tH, W, kpadL), jnp.bfloat16),
                        pltpu.VMEM((tH, W, kpadD), jnp.bfloat16)],
        compiler_params=pltpu.CompilerParams(
            dimension_semantics=("parallel", "parallel"),
            vmem_limit_bytes=32 * 1024 * 1024),
    )(left_tiles, down_tiles, w0p, b0r, w2i, b2i, scale, shift)


# ----------------------------------------------------------------------------
# Fallback path (down / left spatial sizes differ): plain halo conv kernel,
# bilinear resize (plain JAX), then an epilogue kernel that recomputes conv0.
# ----------------------------------------------------------------------------
def _conv_kernel(h_ref, w_ref, b_ref, y_ref, lhs_ref):
    cin = h_ref.shape[-1]
    kpad = lhs_ref.shape[-1]
    tH, W, Cout = y_ref.shape[1], y_ref.shape[2], y_ref.shape[3]
    lhs = _assemble_patches(h_ref, lhs_ref, cin, kpad)
    for c0 in range(0, Cout, 128):
        y = jnp.dot(lhs, w_ref[:, c0:c0 + 128],
                    preferred_element_type=jnp.float32) + b_ref[:, c0:c0 + 128]
        y_ref[:, :, :, c0:c0 + 128] = y.reshape(1, tH, W, 128).astype(y_ref.dtype)


def conv3x3(halo_tiles, wp, b):
    N, nH, tHp2, Wp2, cin = halo_tiles.shape
    tH, W = tHp2 - 2, Wp2 - 2
    H = nH * tH
    kpad, Cout = wp.shape
    br = b.reshape(1, Cout).astype(jnp.float32)
    return pl.pallas_call(
        _conv_kernel,
        grid=(N, nH),
        in_specs=[
            pl.BlockSpec((1, 1, tHp2, Wp2, cin), lambda n, t: (n, t, 0, 0, 0)),
            pl.BlockSpec((kpad, Cout), lambda n, t: (0, 0)),
            pl.BlockSpec((1, Cout), lambda n, t: (0, 0)),
        ],
        out_specs=pl.BlockSpec((1, tH, W, Cout), lambda n, t: (n, t, 0, 0)),
        out_shape=jax.ShapeDtypeStruct((N, H, W, Cout), jnp.float32),
        scratch_shapes=[pltpu.VMEM((tH, W, kpad), jnp.bfloat16)],
        compiler_params=pltpu.CompilerParams(
            dimension_semantics=("parallel", "parallel"),
            vmem_limit_bytes=32 * 1024 * 1024),
    )(halo_tiles, wp, br)


def _epilogue_kernel(l_ref, d1_ref, w0_ref, b0_ref, scale_ref, shift_ref,
                     o_ref, lhsl_ref):
    cinL = l_ref.shape[-1]
    kpadL = lhsl_ref.shape[-1]
    tH, W, C = o_ref.shape[1], o_ref.shape[2], o_ref.shape[3]
    lhs_l = _assemble_patches(l_ref, lhsl_ref, cinL, kpadL)
    for c0 in range(0, C, 128):
        y0 = jnp.dot(lhs_l, w0_ref[:, c0:c0 + 128],
                     preferred_element_type=jnp.float32) + b0_ref[:, c0:c0 + 128]
        lft = jnp.maximum(y0 * scale_ref[:, c0:c0 + 128]
                          + shift_ref[:, c0:c0 + 128], 0.0)
        wv = d1_ref[:, :, :, c0:c0 + 128].reshape(tH * W, 128)
        bv = d1_ref[:, :, :, C + c0:C + c0 + 128].reshape(tH * W, 128)
        out = jnp.maximum(wv * lft + bv, 0.0)
        o_ref[:, :, :, c0:c0 + 128] = out.reshape(1, tH, W, 128).astype(o_ref.dtype)


def sa_epilogue(left_tiles, down_1, w0p, b0, scale, shift):
    N, nH, tHp2, Wp2, cinL = left_tiles.shape
    tH, W = tHp2 - 2, Wp2 - 2
    H = nH * tH
    kpadL, C = w0p.shape
    C2 = down_1.shape[-1]
    b0r = b0.reshape(1, C).astype(jnp.float32)
    return pl.pallas_call(
        _epilogue_kernel,
        grid=(N, nH),
        in_specs=[
            pl.BlockSpec((1, 1, tHp2, Wp2, cinL), lambda n, t: (n, t, 0, 0, 0)),
            pl.BlockSpec((1, tH, W, C2), lambda n, t: (n, t, 0, 0)),
            pl.BlockSpec((kpadL, C), lambda n, t: (0, 0)),
            pl.BlockSpec((1, C), lambda n, t: (0, 0)),
            pl.BlockSpec((1, C), lambda n, t: (0, 0)),
            pl.BlockSpec((1, C), lambda n, t: (0, 0)),
        ],
        out_specs=pl.BlockSpec((1, tH, W, C), lambda n, t: (n, t, 0, 0)),
        out_shape=jax.ShapeDtypeStruct((N, H, W, C), jnp.float32),
        scratch_shapes=[pltpu.VMEM((tH, W, kpadL), jnp.bfloat16)],
        compiler_params=pltpu.CompilerParams(
            dimension_semantics=("parallel", "parallel"),
            vmem_limit_bytes=32 * 1024 * 1024),
    )(left_tiles, down_1, w0p, b0r, scale, shift)


# ----------------------------------------------------------------------------
# Parameter init (mirrors weight_init: kaiming fan_in/relu, zero biases,
# BN gamma=1 / beta=0) and the SA forward pass.
# ----------------------------------------------------------------------------
def sa_init(key, in_channel_left, in_channel_down):
    k0, k2 = jax.random.split(key)

    def kaiming(k, cin, cout):
        std = (2.0 / (cin * 9)) ** 0.5          # fan_in = Cin*3*3, relu gain
        return jax.random.normal(k, (3, 3, cin, cout), jnp.float32) * std

    return {
        "conv0_w": kaiming(k0, in_channel_left, 256),
        "conv0_b": jnp.zeros((256,), jnp.float32),
        "bn0_gamma": jnp.ones((256,), jnp.float32),
        "bn0_beta": jnp.zeros((256,), jnp.float32),
        "conv2_w": kaiming(k2, in_channel_down, 512),
        "conv2_b": jnp.zeros((512,), jnp.float32),
    }


def sa_forward(params, left, down, eps=1e-5):
    # left: (N, H, W, Cl), down: (N, Hd, Wd, Cd)
    N, H, W, cinL = left.shape
    _, Hd, Wd, cinD = down.shape
    C = 256
    # TODO(synk): very large Cin (9*Cin*4B LHS scratch per tile) would need a
    # K-chunked assembly; fine for the channel counts exercised here.
    kpadL = max(_round_up(9 * cinL, 128), 128)
    kpadD = max(_round_up(9 * cinD, 128), 128)

    w0p = _pack_weight(params["conv0_w"], kpadL)
    w2p = _pack_weight(params["conv2_w"], kpadD)
    b0, b2 = params["conv0_b"], params["conv2_b"]

    # Per-h-row VMEM estimate: double-buffered f32 output tile + both bf16 LHS
    # scratches + halo rows.  Budget keeps totals well inside v7x's scoped VMEM.
    bytes_per_row = (W * (2 * C * 4 + 4 * (kpadL + kpadD))
                     + 2 * (W + 2) * 2 * (cinL + cinD))
    tH = _pick_tile_h(H, N, bytes_per_row)

    left_tiles = _halo_tiles(left, tH)
    sums, sqs = conv0_bn_stats(left_tiles, w0p, b0)

    cnt = jnp.float32(N * H * W)
    mean = jnp.sum(sums, axis=(0, 1)) / cnt
    var = jnp.sum(sqs, axis=(0, 1)) / cnt - mean * mean   # biased (BN training)
    scale_v = params["bn0_gamma"] / jnp.sqrt(var + eps)
    shift_v = params["bn0_beta"] - mean * scale_v
    scale = scale_v.reshape(1, C).astype(jnp.float32)
    shift = shift_v.reshape(1, C).astype(jnp.float32)

    if (Hd, Wd) == (H, W):
        down_tiles = _halo_tiles(down, tH)
        return sa_fused(left_tiles, down_tiles, w0p, b0, w2p, b2, scale, shift)

    # Spatial sizes differ: conv2 at down resolution, bilinear resize, epilogue.
    bytes_per_row_d = Wd * (2 * 2 * C * 4 + 4 * kpadD) + 2 * (Wd + 2) * 2 * cinD
    tHd = _pick_tile_h(Hd, N, bytes_per_row_d)
    down_1 = conv3x3(_halo_tiles(down, tHd), w2p, b2)
    # TODO(synk): jax.image.resize('bilinear') approximates
    # F.interpolate(mode='bilinear', align_corners=False); plain-JAX glue.
    down_1 = jax.image.resize(down_1, (N, H, W, 2 * C), method="bilinear")
    return sa_epilogue(left_tiles, down_1, w0p, b0, scale, shift)


# ----------------------------------------------------------------------------
# Pure-JAX reference (correctness check only).
# ----------------------------------------------------------------------------
def _ref_forward(params, left, down, eps=1e-5):
    def conv(x, w, b):
        return jax.lax.conv_general_dilated(
            x, w, (1, 1), "SAME",
            dimension_numbers=("NHWC", "HWIO", "NHWC")) + b

    y0 = conv(left, params["conv0_w"], params["conv0_b"])
    mean = jnp.mean(y0, axis=(0, 1, 2))
    var = jnp.mean((y0 - mean) ** 2, axis=(0, 1, 2))
    l = jnp.maximum(
        (y0 - mean) / jnp.sqrt(var + eps) * params["bn0_gamma"]
        + params["bn0_beta"], 0.0)
    d = conv(down, params["conv2_w"], params["conv2_b"])
    if d.shape[1:3] != y0.shape[1:3]:
        d = jax.image.resize(d, d.shape[:1] + y0.shape[1:3] + d.shape[3:],
                             method="bilinear")
    C = y0.shape[-1]
    return jnp.maximum(d[..., :C] * l + d[..., C:], 0.0)


if __name__ == "__main__":
    key = jax.random.PRNGKey(0)
    kp, kl, kd = jax.random.split(key, 3)

    in_channel_left, in_channel_down = 8, 8
    N, H, W = 2, 16, 16

    params = sa_init(kp, in_channel_left, in_channel_down)
    left = jax.random.normal(kl, (N, H, W, in_channel_left), jnp.float32)
    down = jax.random.normal(kd, (N, H, W, in_channel_down), jnp.float32)

    fwd = jax.jit(functools.partial(sa_forward, params))
    out = jax.block_until_ready(fwd(left, down))
    assert out.shape == (N, H, W, 256)
    assert bool(jnp.all(jnp.isfinite(out)))

    ref = _ref_forward(params, left, down)
    max_err = float(jnp.max(jnp.abs(out - ref)))
    assert max_err < 1e-1, f"max abs err vs reference: {max_err}"
    print("KERNEL_OK")
</pallas_src>

<mosaic_0001>
module attributes {stable_mosaic.version = 11 : i64} {
  func.func @_conv0_stats_kernel(%arg0: i32, %arg1: i32, %arg2: memref<1x1x10x18x8xbf16, #tpu.memory_space<vmem>>, %arg3: memref<128x256xbf16, #tpu.memory_space<vmem>>, %arg4: memref<1x256xf32, #tpu.memory_space<vmem>>, %arg5: memref<1x1x8x256xf32, #tpu.memory_space<vmem>>, %arg6: memref<1x1x8x256xf32, #tpu.memory_space<vmem>>, %arg7: memref<8x16x128xbf16, #tpu.memory_space<vmem>>) attributes {dimension_semantics = [#tpu.dimension_semantics<parallel>, #tpu.dimension_semantics<parallel>], iteration_bounds = array<i64: 2, 2>, scalar_prefetch = 0 : i64, scratch_operands = 1 : i64, tpu.core_type = #tpu.core_type<tc>, window_params = [{transform_indices = @transform_0, window_bounds = array<i64: 1, 1, 10, 18, 8>}, {pipeline_mode = #tpu.pipeline_mode<synchronous>, transform_indices = @transform_1, window_bounds = array<i64: 128, 256>}, {pipeline_mode = #tpu.pipeline_mode<synchronous>, transform_indices = @transform_2, window_bounds = array<i64: 1, 256>}, {transform_indices = @transform_3, window_bounds = array<i64: 1, 1, 8, 256>}, {transform_indices = @transform_4, window_bounds = array<i64: 1, 1, 8, 256>}]} {
    %c0 = arith.constant 0 : index
    %c0_0 = arith.constant 0 : index
    %c0_1 = arith.constant 0 : index
    %c0_2 = arith.constant 0 : index
    %c0_3 = arith.constant 0 : index
    %0 = vector.load %arg2[%c0, %c0_0, %c0_1, %c0_2, %c0_3] : memref<1x1x10x18x8xbf16, #tpu.memory_space<vmem>>, vector<1x1x10x18x8xbf16>
    %1 = vector.shape_cast %0 : vector<1x1x10x18x8xbf16> to vector<10x18x8xbf16>
    %2 = vector.extract_strided_slice %1 {offsets = [0, 0, 0], sizes = [8, 16, 8], strides = [1, 1, 1]} : vector<10x18x8xbf16> to vector<8x16x8xbf16>
    %c0_4 = arith.constant 0 : index
    %c0_5 = arith.constant 0 : index
    %c0_6 = arith.constant 0 : index
    %3 = vector.load %arg7[%c0_4, %c0_5, %c0_6] : memref<8x16x128xbf16, #tpu.memory_space<vmem>>, vector<8x16x8xbf16>
    tpu.vector_store %arg7[%c0_4, %c0_5, %c0_6], %2 {strides = array<i32>} : memref<8x16x128xbf16, #tpu.memory_space<vmem>>, vector<8x16x8xbf16>,
    %4 = vector.extract_strided_slice %1 {offsets = [0, 1, 0], sizes = [8, 16, 8], strides = [1, 1, 1]} : vector<10x18x8xbf16> to vector<8x16x8xbf16>
    %c0_7 = arith.constant 0 : index
    %c0_8 = arith.constant 0 : index
    %c8 = arith.constant 8 : index
    %5 = vector.load %arg7[%c0_7, %c0_8, %c8] : memref<8x16x128xbf16, #tpu.memory_space<vmem>>, vector<8x16x8xbf16>
    tpu.vector_store %arg7[%c0_7, %c0_8, %c8], %4 {strides = array<i32>} : memref<8x16x128xbf16, #tpu.memory_space<vmem>>, vector<8x16x8xbf16>,
    %6 = vector.extract_strided_slice %1 {offsets = [0, 2, 0], sizes = [8, 16, 8], strides = [1, 1, 1]} : vector<10x18x8xbf16> to vector<8x16x8xbf16>
    %c0_9 = arith.constant 0 : index
    %c0_10 = arith.constant 0 : index
    %c16 = arith.constant 16 : index
    %7 = vector.load %arg7[%c0_9, %c0_10, %c16] : memref<8x16x128xbf16, #tpu.memory_space<vmem>>, vector<8x16x8xbf16>
    tpu.vector_store %arg7[%c0_9, %c0_10, %c16], %6 {strides = array<i32>} : memref<8x16x128xbf16, #tpu.memory_space<vmem>>, vector<8x16x8xbf16>,
    %8 = vector.extract_strided_slice %1 {offsets = [1, 0, 0], sizes = [8, 16, 8], strides = [1, 1, 1]} : vector<10x18x8xbf16> to vector<8x16x8xbf16>
    %c0_11 = arith.constant 0 : index
    %c0_12 = arith.constant 0 : index
    %c24 = arith.constant 24 : index
    %9 = vector.load %arg7[%c0_11, %c0_12, %c24] : memref<8x16x128xbf16, #tpu.memory_space<vmem>>, vector<8x16x8xbf16>
    tpu.vector_store %arg7[%c0_11, %c0_12, %c24], %8 {strides = array<i32>} : memref<8x16x128xbf16, #tpu.memory_space<vmem>>, vector<8x16x8xbf16>,
    %10 = vector.extract_strided_slice %1 {offsets = [1, 1, 0], sizes = [8, 16, 8], strides = [1, 1, 1]} : vector<10x18x8xbf16> to vector<8x16x8xbf16>
    %c0_13 = arith.constant 0 : index
    %c0_14 = arith.constant 0 : index
    %c32 = arith.constant 32 : index
    %11 = vector.load %arg7[%c0_13, %c0_14, %c32] : memref<8x16x128xbf16, #tpu.memory_space<vmem>>, vector<8x16x8xbf16>
    tpu.vector_store %arg7[%c0_13, %c0_14, %c32], %10 {strides = array<i32>} : memref<8x16x128xbf16, #tpu.memory_space<vmem>>, vector<8x16x8xbf16>,
    %12 = vector.extract_strided_slice %1 {offsets = [1, 2, 0], sizes = [8, 16, 8], strides = [1, 1, 1]} : vector<10x18x8xbf16> to vector<8x16x8xbf16>
    %c0_15 = arith.constant 0 : index
    %c0_16 = arith.constant 0 : index
    %c40 = arith.constant 40 : index
    %13 = vector.load %arg7[%c0_15, %c0_16, %c40] : memref<8x16x128xbf16, #tpu.memory_space<vmem>>, vector<8x16x8xbf16>
    tpu.vector_store %arg7[%c0_15, %c0_16, %c40], %12 {strides = array<i32>} : memref<8x16x128xbf16, #tpu.memory_space<vmem>>, vector<8x16x8xbf16>,
    %14 = vector.extract_strided_slice %1 {offsets = [2, 0, 0], sizes = [8, 16, 8], strides = [1, 1, 1]} : vector<10x18x8xbf16> to vector<8x16x8xbf16>
    %c0_17 = arith.constant 0 : index
    %c0_18 = arith.constant 0 : index
    %c48 = arith.constant 48 : index
    %15 = vector.load %arg7[%c0_17, %c0_18, %c48] : memref<8x16x128xbf16, #tpu.memory_space<vmem>>, vector<8x16x8xbf16>
    tpu.vector_store %arg7[%c0_17, %c0_18, %c48], %14 {strides = array<i32>} : memref<8x16x128xbf16, #tpu.memory_space<vmem>>, vector<8x16x8xbf16>,
    %16 = vector.extract_strided_slice %1 {offsets = [2, 1, 0], sizes = [8, 16, 8], strides = [1, 1, 1]} : vector<10x18x8xbf16> to vector<8x16x8xbf16>
    %c0_19 = arith.constant 0 : index
    %c0_20 = arith.constant 0 : index
    %c56 = arith.constant 56 : index
    %17 = vector.load %arg7[%c0_19, %c0_20, %c56] : memref<8x16x128xbf16, #tpu.memory_space<vmem>>, vector<8x16x8xbf16>
    tpu.vector_store %arg7[%c0_19, %c0_20, %c56], %16 {strides = array<i32>} : memref<8x16x128xbf16, #tpu.memory_space<vmem>>, vector<8x16x8xbf16>,
    %18 = vector.extract_strided_slice %1 {offsets = [2, 2, 0], sizes = [8, 16, 8], strides = [1, 1, 1]} : vector<10x18x8xbf16> to vector<8x16x8xbf16>
    %c0_21 = arith.constant 0 : index
    %c0_22 = arith.constant 0 : index
    %c64 = arith.constant 64 : index
    %19 = vector.load %arg7[%c0_21, %c0_22, %c64] : memref<8x16x128xbf16, #tpu.memory_space<vmem>>, vector<8x16x8xbf16>
    tpu.vector_store %arg7[%c0_21, %c0_22, %c64], %18 {strides = array<i32>} : memref<8x16x128xbf16, #tpu.memory_space<vmem>>, vector<8x16x8xbf16>,
    %cst = arith.constant 0.000000e+00 : bf16
    %20 = vector.broadcast %cst : bf16 to vector<8x16x56xbf16>
    %c0_23 = arith.constant 0 : index
    %c0_24 = arith.constant 0 : index
    %c72 = arith.constant 72 : index
    %21 = vector.load %arg7[%c0_23, %c0_24, %c72] : memref<8x16x128xbf16, #tpu.memory_space<vmem>>, vector<8x16x56xbf16>
    tpu.vector_store %arg7[%c0_23, %c0_24, %c72], %20 {strides = array<i32>} : memref<8x16x128xbf16, #tpu.memory_space<vmem>>, vector<8x16x56xbf16>,
    %c0_25 = arith.constant 0 : index
    %c0_26 = arith.constant 0 : index
    %c0_27 = arith.constant 0 : index
    %22 = vector.load %arg7[%c0_25, %c0_26, %c0_27] : memref<8x16x128xbf16, #tpu.memory_space<vmem>>, vector<8x16x128xbf16>
    %23 = vector.shape_cast %22 : vector<8x16x128xbf16> to vector<128x128xbf16>
    %c0_28 = arith.constant 0 : index
    %c0_29 = arith.constant 0 : index
    %24 = vector.load %arg3[%c0_28, %c0_29] : memref<128x256xbf16, #tpu.memory_space<vmem>>, vector<128x128xbf16>
    %cst_30 = arith.constant dense<0.000000e+00> : vector<128x128xf32>
    %25 = tpu.matmul %23, %24, %cst_30 {dimension_numbers = #tpu.dot_dimension_numbers<[1], [0], [0], [1], [0, 0, 1, 1], [], []>} : vector<128x128xbf16>, vector<128x128xbf16>, vector<128x128xf32> -> vector<128x128xf32>
    %c0_31 = arith.constant 0 : index
    %c0_32 = arith.constant 0 : index
    %26 = vector.load %arg4[%c0_31, %c0_32] : memref<1x256xf32, #tpu.memory_space<vmem>>, vector<1x128xf32>
    %27 = vector.broadcast %26 : vector<1x128xf32> to vector<128x128xf32>
    %28 = arith.addf %25, %27 : vector<128x128xf32>
    %cst_33 = arith.constant dense<0.000000e+00> : vector<128xf32>
    %29 = vector.multi_reduction <add>, %28, %cst_33 [0] : vector<128x128xf32> to vector<128xf32>
    %30 = vector.shape_cast %29 : vector<128xf32> to vector<1x1x1x128xf32>
    %31 = arith.mulf %28, %28 : vector<128x128xf32>
    %cst_34 = arith.constant dense<0.000000e+00> : vector<128xf32>
    %32 = vector.multi_reduction <add>, %31, %cst_34 [0] : vector<128x128xf32> to vector<128xf32>
    %33 = vector.shape_cast %32 : vector<128xf32> to vector<1x1x1x128xf32>
    %34 = vector.shape_cast %30 : vector<1x1x1x128xf32> to vector<1x1x1x128xf32>
    %35 = vector.broadcast %34 : vector<1x1x1x128xf32> to vector<1x1x8x128xf32>
    %c0_35 = arith.constant 0 : index
    %c0_36 = arith.constant 0 : index
    %c0_37 = arith.constant 0 : index
    %c0_38 = arith.constant 0 : index
    %36 = vector.load %arg5[%c0_35, %c0_36, %c0_37, %c0_38] : memref<1x1x8x256xf32, #tpu.memory_space<vmem>>, vector<1x1x8x128xf32>
    tpu.vector_store %arg5[%c0_35, %c0_36, %c0_37, %c0_38], %35 {strides = array<i32>} : memref<1x1x8x256xf32, #tpu.memory_space<vmem>>, vector<1x1x8x128xf32>,
    %37 = vector.shape_cast %33 : vector<1x1x1x128xf32> to vector<1x1x1x128xf32>
    %38 = vector.broadcast %37 : vector<1x1x1x128xf32> to vector<1x1x8x128xf32>
    %c0_39 = arith.constant 0 : index
    %c0_40 = arith.constant 0 : index
    %c0_41 = arith.constant 0 : index
    %c0_42 = arith.constant 0 : index
    %39 = vector.load %arg6[%c0_39, %c0_40, %c0_41, %c0_42] : memref<1x1x8x256xf32, #tpu.memory_space<vmem>>, vector<1x1x8x128xf32>
    tpu.vector_store %arg6[%c0_39, %c0_40, %c0_41, %c0_42], %38 {strides = array<i32>} : memref<1x1x8x256xf32, #tpu.memory_space<vmem>>, vector<1x1x8x128xf32>,
    %c0_43 = arith.constant 0 : index
    %c128 = arith.constant 128 : index
    %40 = vector.load %arg3[%c0_43, %c128] : memref<128x256xbf16, #tpu.memory_space<vmem>>, vector<128x128xbf16>
    %cst_44 = arith.constant dense<0.000000e+00> : vector<128x128xf32>
    %41 = tpu.matmul %23, %40, %cst_44 {dimension_numbers = #tpu.dot_dimension_numbers<[1], [0], [0], [1], [0, 0, 1, 1], [], []>} : vector<128x128xbf16>, vector<128x128xbf16>, vector<128x128xf32> -> vector<128x128xf32>
    %c0_45 = arith.constant 0 : index
    %c128_46 = arith.constant 128 : index
    %42 = vector.load %arg4[%c0_45, %c128_46] : memref<1x256xf32, #tpu.memory_space<vmem>>, vector<1x128xf32>
    %43 = vector.broadcast %42 : vector<1x128xf32> to vector<128x128xf32>
    %44 = arith.addf %41, %43 : vector<128x128xf32>
    %cst_47 = arith.constant dense<0.000000e+00> : vector<128xf32>
    %45 = vector.multi_reduction <add>, %44, %cst_47 [0] : vector<128x128xf32> to vector<128xf32>
    %46 = vector.shape_cast %45 : vector<128xf32> to vector<1x1x1x128xf32>
    %47 = arith.mulf %44, %44 : vector<128x128xf32>
    %cst_48 = arith.constant dense<0.000000e+00> : vector<128xf32>
    %48 = vector.multi_reduction <add>, %47, %cst_48 [0] : vector<128x128xf32> to vector<128xf32>
    %49 = vector.shape_cast %48 : vector<128xf32> to vector<1x1x1x128xf32>
    %50 = vector.shape_cast %46 : vector<1x1x1x128xf32> to vector<1x1x1x128xf32>
    %51 = vector.broadcast %50 : vector<1x1x1x128xf32> to vector<1x1x8x128xf32>
    %c0_49 = arith.constant 0 : index
    %c0_50 = arith.constant 0 : index
    %c0_51 = arith.constant 0 : index
    %c128_52 = arith.constant 128 : index
    %52 = vector.load %arg5[%c0_49, %c0_50, %c0_51, %c128_52] : memref<1x1x8x256xf32, #tpu.memory_space<vmem>>, vector<1x1x8x128xf32>
    tpu.vector_store %arg5[%c0_49, %c0_50, %c0_51, %c128_52], %51 {strides = array<i32>} : memref<1x1x8x256xf32, #tpu.memory_space<vmem>>, vector<1x1x8x128xf32>,
    %53 = vector.shape_cast %49 : vector<1x1x1x128xf32> to vector<1x1x1x128xf32>
    %54 = vector.broadcast %53 : vector<1x1x1x128xf32> to vector<1x1x8x128xf32>
    %c0_53 = arith.constant 0 : index
    %c0_54 = arith.constant 0 : index
    %c0_55 = arith.constant 0 : index
    %c128_56 = arith.constant 128 : index
    %55 = vector.load %arg6[%c0_53, %c0_54, %c0_55, %c128_56] : memref<1x1x8x256xf32, #tpu.memory_space<vmem>>, vector<1x1x8x128xf32>
    tpu.vector_store %arg6[%c0_53, %c0_54, %c0_55, %c128_56], %54 {strides = array<i32>} : memref<1x1x8x256xf32, #tpu.memory_space<vmem>>, vector<1x1x8x128xf32>,
    return
  }
  func.func @transform_0(%arg0: i32, %arg1: i32) -> (i32, i32, i32, i32, i32) {
    %c0_i32 = arith.constant 0 : i32
    %c0_i32_0 = arith.constant 0 : i32
    %c0_i32_1 = arith.constant 0 : i32
    %c0_i32_2 = arith.constant 0 : i32
    return %arg0, %arg1, %c0_i32, %c0_i32_0, %c0_i32_1 : i32, i32, i32, i32, i32
  }
  func.func @transform_1(%arg0: i32, %arg1: i32) -> (i32, i32) {
    %c0_i32 = arith.constant 0 : i32
    %c0_i32_0 = arith.constant 0 : i32
    %c0_i32_1 = arith.constant 0 : i32
    return %c0_i32, %c0_i32_0 : i32, i32
  }
  func.func @transform_2(%arg0: i32, %arg1: i32) -> (i32, i32) {
    %c0_i32 = arith.constant 0 : i32
    %c0_i32_0 = arith.constant 0 : i32
    %c0_i32_1 = arith.constant 0 : i32
    return %c0_i32, %c0_i32_0 : i32, i32
  }
  func.func @transform_3(%arg0: i32, %arg1: i32) -> (i32, i32, i32, i32) {
    %c0_i32 = arith.constant 0 : i32
    %c0_i32_0 = arith.constant 0 : i32
    %c0_i32_1 = arith.constant 0 : i32
    return %arg0, %arg1, %c0_i32, %c0_i32_0 : i32, i32, i32, i32
  }
  func.func @transform_4(%arg0: i32, %arg1: i32) -> (i32, i32, i32, i32) {
    %c0_i32 = arith.constant 0 : i32
    %c0_i32_0 = arith.constant 0 : i32
    %c0_i32_1 = arith.constant 0 : i32
    return %arg0, %arg1, %c0_i32, %c0_i32_0 : i32, i32, i32, i32
  }
}

module attributes {stable_mosaic.version = 11 : i64} {
  func.func @_sa_fused_kernel(%arg0: i32, %arg1: i32, %arg2: memref<1x1x10x18x8xbf16, #tpu.memory_space<vmem>>, %arg3: memref<1x1x10x18x8xbf16, #tpu.memory_space<vmem>>, %arg4: memref<128x256xbf16, #tpu.memory_space<vmem>>, %arg5: memref<1x256xf32, #tpu.memory_space<vmem>>, %arg6: memref<128x512xbf16, #tpu.memory_space<vmem>>, %arg7: memref<1x512xf32, #tpu.memory_space<vmem>>, %arg8: memref<1x256xf32, #tpu.memory_space<vmem>>, %arg9: memref<1x256xf32, #tpu.memory_space<vmem>>, %arg10: memref<1x8x16x256xf32, #tpu.memory_space<vmem>>, %arg11: memref<8x16x128xbf16, #tpu.memory_space<vmem>>, %arg12: memref<8x16x128xbf16, #tpu.memory_space<vmem>>) attributes {dimension_semantics = [#tpu.dimension_semantics<parallel>, #tpu.dimension_semantics<parallel>], iteration_bounds = array<i64: 2, 2>, scalar_prefetch = 0 : i64, scratch_operands = 2 : i64, tpu.core_type = #tpu.core_type<tc>, window_params = [{transform_indices = @transform_0, window_bounds = array<i64: 1, 1, 10, 18, 8>}, {transform_indices = @transform_1, window_bounds = array<i64: 1, 1, 10, 18, 8>}, {pipeline_mode = #tpu.pipeline_mode<synchronous>, transform_indices = @transform_2, window_bounds = array<i64: 128, 256>}, {pipeline_mode = #tpu.pipeline_mode<synchronous>, transform_indices = @transform_3, window_bounds = array<i64: 1, 256>}, {pipeline_mode = #tpu.pipeline_mode<synchronous>, transform_indices = @transform_4, window_bounds = array<i64: 128, 512>}, {pipeline_mode = #tpu.pipeline_mode<synchronous>, transform_indices = @transform_5, window_bounds = array<i64: 1, 512>}, {pipeline_mode = #tpu.pipeline_mode<synchronous>, transform_indices = @transform_6, window_bounds = array<i64: 1, 256>}, {pipeline_mode = #tpu.pipeline_mode<synchronous>, transform_indices = @transform_7, window_bounds = array<i64: 1, 256>}, {transform_indices = @transform_8, window_bounds = array<i64: 1, 8, 16, 256>}]} {
    %c0 = arith.constant 0 : index
    %c0_0 = arith.constant 0 : index
    %c0_1 = arith.constant 0 : index
    %c0_2 = arith.constant 0 : index
    %c0_3 = arith.constant 0 : index
    %0 = vector.load %arg2[%c0, %c0_0, %c0_1, %c0_2, %c0_3] : memref<1x1x10x18x8xbf16, #tpu.memory_space<vmem>>, vector<1x1x10x18x8xbf16>
    %1 = vector.shape_cast %0 : vector<1x1x10x18x8xbf16> to vector<10x18x8xbf16>
    %2 = vector.extract_strided_slice %1 {offsets = [0, 0, 0], sizes = [8, 16, 8], strides = [1, 1, 1]} : vector<10x18x8xbf16> to vector<8x16x8xbf16>
    %c0_4 = arith.constant 0 : index
    %c0_5 = arith.constant 0 : index
    %c0_6 = arith.constant 0 : index
    %3 = vector.load %arg11[%c0_4, %c0_5, %c0_6] : memref<8x16x128xbf16, #tpu.memory_space<vmem>>, vector<8x16x8xbf16>
    tpu.vector_store %arg11[%c0_4, %c0_5, %c0_6], %2 {strides = array<i32>} : memref<8x16x128xbf16, #tpu.memory_space<vmem>>, vector<8x16x8xbf16>,
    %4 = vector.extract_strided_slice %1 {offsets = [0, 1, 0], sizes = [8, 16, 8], strides = [1, 1, 1]} : vector<10x18x8xbf16> to vector<8x16x8xbf16>
    %c0_7 = arith.constant 0 : index
    %c0_8 = arith.constant 0 : index
    %c8 = arith.constant 8 : index
    %5 = vector.load %arg11[%c0_7, %c0_8, %c8] : memref<8x16x128xbf16, #tpu.memory_space<vmem>>, vector<8x16x8xbf16>
    tpu.vector_store %arg11[%c0_7, %c0_8, %c8], %4 {strides = array<i32>} : memref<8x16x128xbf16, #tpu.memory_space<vmem>>, vector<8x16x8xbf16>,
    %6 = vector.extract_strided_slice %1 {offsets = [0, 2, 0], sizes = [8, 16, 8], strides = [1, 1, 1]} : vector<10x18x8xbf16> to vector<8x16x8xbf16>
    %c0_9 = arith.constant 0 : index
    %c0_10 = arith.constant 0 : index
    %c16 = arith.constant 16 : index
    %7 = vector.load %arg11[%c0_9, %c0_10, %c16] : memref<8x16x128xbf16, #tpu.memory_space<vmem>>, vector<8x16x8xbf16>
    tpu.vector_store %arg11[%c0_9, %c0_10, %c16], %6 {strides = array<i32>} : memref<8x16x128xbf16, #tpu.memory_space<vmem>>, vector<8x16x8xbf16>,
    %8 = vector.extract_strided_slice %1 {offsets = [1, 0, 0], sizes = [8, 16, 8], strides = [1, 1, 1]} : vector<10x18x8xbf16> to vector<8x16x8xbf16>
    %c0_11 = arith.constant 0 : index
    %c0_12 = arith.constant 0 : index
    %c24 = arith.constant 24 : index
    %9 = vector.load %arg11[%c0_11, %c0_12, %c24] : memref<8x16x128xbf16, #tpu.memory_space<vmem>>, vector<8x16x8xbf16>
    tpu.vector_store %arg11[%c0_11, %c0_12, %c24], %8 {strides = array<i32>} : memref<8x16x128xbf16, #tpu.memory_space<vmem>>, vector<8x16x8xbf16>,
    %10 = vector.extract_strided_slice %1 {offsets = [1, 1, 0], sizes = [8, 16, 8], strides = [1, 1, 1]} : vector<10x18x8xbf16> to vector<8x16x8xbf16>
    %c0_13 = arith.constant 0 : index
    %c0_14 = arith.constant 0 : index
    %c32 = arith.constant 32 : index
    %11 = vector.load %arg11[%c0_13, %c0_14, %c32] : memref<8x16x128xbf16, #tpu.memory_space<vmem>>, vector<8x16x8xbf16>
    tpu.vector_store %arg11[%c0_13, %c0_14, %c32], %10 {strides = array<i32>} : memref<8x16x128xbf16, #tpu.memory_space<vmem>>, vector<8x16x8xbf16>,
    %12 = vector.extract_strided_slice %1 {offsets = [1, 2, 0], sizes = [8, 16, 8], strides = [1, 1, 1]} : vector<10x18x8xbf16> to vector<8x16x8xbf16>
    %c0_15 = arith.constant 0 : index
    %c0_16 = arith.constant 0 : index
    %c40 = arith.constant 40 : index
    %13 = vector.load %arg11[%c0_15, %c0_16, %c40] : memref<8x16x128xbf16, #tpu.memory_space<vmem>>, vector<8x16x8xbf16>
    tpu.vector_store %arg11[%c0_15, %c0_16, %c40], %12 {strides = array<i32>} : memref<8x16x128xbf16, #tpu.memory_space<vmem>>, vector<8x16x8xbf16>,
    %14 = vector.extract_strided_slice %1 {offsets = [2, 0, 0], sizes = [8, 16, 8], strides = [1, 1, 1]} : vector<10x18x8xbf16> to vector<8x16x8xbf16>
    %c0_17 = arith.constant 0 : index
    %c0_18 = arith.constant 0 : index
    %c48 = arith.constant 48 : index
    %15 = vector.load %arg11[%c0_17, %c0_18, %c48] : memref<8x16x128xbf16, #tpu.memory_space<vmem>>, vector<8x16x8xbf16>
    tpu.vector_store %arg11[%c0_17, %c0_18, %c48], %14 {strides = array<i32>} : memref<8x16x128xbf16, #tpu.memory_space<vmem>>, vector<8x16x8xbf16>,
    %16 = vector.extract_strided_slice %1 {offsets = [2, 1, 0], sizes = [8, 16, 8], strides = [1, 1, 1]} : vector<10x18x8xbf16> to vector<8x16x8xbf16>
    %c0_19 = arith.constant 0 : index
    %c0_20 = arith.constant 0 : index
    %c56 = arith.constant 56 : index
    %17 = vector.load %arg11[%c0_19, %c0_20, %c56] : memref<8x16x128xbf16, #tpu.memory_space<vmem>>, vector<8x16x8xbf16>
    tpu.vector_store %arg11[%c0_19, %c0_20, %c56], %16 {strides = array<i32>} : memref<8x16x128xbf16, #tpu.memory_space<vmem>>, vector<8x16x8xbf16>,
    %18 = vector.extract_strided_slice %1 {offsets = [2, 2, 0], sizes = [8, 16, 8], strides = [1, 1, 1]} : vector<10x18x8xbf16> to vector<8x16x8xbf16>
    %c0_21 = arith.constant 0 : index
    %c0_22 = arith.constant 0 : index
    %c64 = arith.constant 64 : index
    %19 = vector.load %arg11[%c0_21, %c0_22, %c64] : memref<8x16x128xbf16, #tpu.memory_space<vmem>>, vector<8x16x8xbf16>
    tpu.vector_store %arg11[%c0_21, %c0_22, %c64], %18 {strides = array<i32>} : memref<8x16x128xbf16, #tpu.memory_space<vmem>>, vector<8x16x8xbf16>,
    %cst = arith.constant 0.000000e+00 : bf16
    %20 = vector.broadcast %cst : bf16 to vector<8x16x56xbf16>
    %c0_23 = arith.constant 0 : index
    %c0_24 = arith.constant 0 : index
    %c72 = arith.constant 72 : index
    %21 = vector.load %arg11[%c0_23, %c0_24, %c72] : memref<8x16x128xbf16, #tpu.memory_space<vmem>>, vector<8x16x56xbf16>
    tpu.vector_store %arg11[%c0_23, %c0_24, %c72], %20 {strides = array<i32>} : memref<8x16x128xbf16, #tpu.memory_space<vmem>>, vector<8x16x56xbf16>,
    %c0_25 = arith.constant 0 : index
    %c0_26 = arith.constant 0 : index
    %c0_27 = arith.constant 0 : index
    %22 = vector.load %arg11[%c0_25, %c0_26, %c0_27] : memref<8x16x128xbf16, #tpu.memory_space<vmem>>, vector<8x16x128xbf16>
    %23 = vector.shape_cast %22 : vector<8x16x128xbf16> to vector<128x128xbf16>
    %c0_28 = arith.constant 0 : index
    %c0_29 = arith.constant 0 : index
    %c0_30 = arith.constant 0 : index
    %c0_31 = arith.constant 0 : index
    %c0_32 = arith.constant 0 : index
    %24 = vector.load %arg3[%c0_28, %c0_29, %c0_30, %c0_31, %c0_32] : memref<1x1x10x18x8xbf16, #tpu.memory_space<vmem>>, vector<1x1x10x18x8xbf16>
    %25 = vector.shape_cast %24 : vector<1x1x10x18x8xbf16> to vector<10x18x8xbf16>
    %26 = vector.extract_strided_slice %25 {offsets = [0, 0, 0], sizes = [8, 16, 8], strides = [1, 1, 1]} : vector<10x18x8xbf16> to vector<8x16x8xbf16>
    %c0_33 = arith.constant 0 : index
    %c0_34 = arith.constant 0 : index
    %c0_35 = arith.constant 0 : index
    %27 = vector.load %arg12[%c0_33, %c0_34, %c0_35] : memref<8x16x128xbf16, #tpu.memory_space<vmem>>, vector<8x16x8xbf16>
    tpu.vector_store %arg12[%c0_33, %c0_34, %c0_35], %26 {strides = array<i32>} : memref<8x16x128xbf16, #tpu.memory_space<vmem>>, vector<8x16x8xbf16>,
    %28 = vector.extract_strided_slice %25 {offsets = [0, 1, 0], sizes = [8, 16, 8], strides = [1, 1, 1]} : vector<10x18x8xbf16> to vector<8x16x8xbf16>
    %c0_36 = arith.constant 0 : index
    %c0_37 = arith.constant 0 : index
    %c8_38 = arith.constant 8 : index
    %29 = vector.load %arg12[%c0_36, %c0_37, %c8_38] : memref<8x16x128xbf16, #tpu.memory_space<vmem>>, vector<8x16x8xbf16>
    tpu.vector_store %arg12[%c0_36, %c0_37, %c8_38], %28 {strides = array<i32>} : memref<8x16x128xbf16, #tpu.memory_space<vmem>>, vector<8x16x8xbf16>,
    %30 = vector.extract_strided_slice %25 {offsets = [0, 2, 0], sizes = [8, 16, 8], strides = [1, 1, 1]} : vector<10x18x8xbf16> to vector<8x16x8xbf16>
    %c0_39 = arith.constant 0 : index
    %c0_40 = arith.constant 0 : index
    %c16_41 = arith.constant 16 : index
    %31 = vector.load %arg12[%c0_39, %c0_40, %c16_41] : memref<8x16x128xbf16, #tpu.memory_space<vmem>>, vector<8x16x8xbf16>
    tpu.vector_store %arg12[%c0_39, %c0_40, %c16_41], %30 {strides = array<i32>} : memref<8x16x128xbf16, #tpu.memory_space<vmem>>, vector<8x16x8xbf16>,
    %32 = vector.extract_strided_slice %25 {offsets = [1, 0, 0], sizes = [8, 16, 8], strides = [1, 1, 1]} : vector<10x18x8xbf16> to vector<8x16x8xbf16>
    %c0_42 = arith.constant 0 : index
    %c0_43 = arith.constant 0 : index
    %c24_44 = arith.constant 24 : index
    %33 = vector.load %arg12[%c0_42, %c0_43, %c24_44] : memref<8x16x128xbf16, #tpu.memory_space<vmem>>, vector<8x16x8xbf16>
    tpu.vector_store %arg12[%c0_42, %c0_43, %c24_44], %32 {strides = array<i32>} : memref<8x16x128xbf16, #tpu.memory_space<vmem>>, vector<8x16x8xbf16>,
    %34 = vector.extract_strided_slice %25 {offsets = [1, 1, 0], sizes = [8, 16, 8], strides = [1, 1, 1]} : vector<10x18x8xbf16> to vector<8x16x8xbf16>
    %c0_45 = arith.constant 0 : index
    %c0_46 = arith.constant 0 : index
    %c32_47 = arith.constant 32 : index
    %35 = vector.load %arg12[%c0_45, %c0_46, %c32_47] : memref<8x16x128xbf16, #tpu.memory_space<vmem>>, vector<8x16x8xbf16>
    tpu.vector_store %arg12[%c0_45, %c0_46, %c32_47], %34 {strides = array<i32>} : memref<8x16x128xbf16, #tpu.memory_space<vmem>>, vector<8x16x8xbf16>,
    %36 = vector.extract_strided_slice %25 {offsets = [1, 2, 0], sizes = [8, 16, 8], strides = [1, 1, 1]} : vector<10x18x8xbf16> to vector<8x16x8xbf16>
    %c0_48 = arith.constant 0 : index
    %c0_49 = arith.constant 0 : index
    %c40_50 = arith.constant 40 : index
    %37 = vector.load %arg12[%c0_48, %c0_49, %c40_50] : memref<8x16x128xbf16, #tpu.memory_space<vmem>>, vector<8x16x8xbf16>
    tpu.vector_store %arg12[%c0_48, %c0_49, %c40_50], %36 {strides = array<i32>} : memref<8x16x128xbf16, #tpu.memory_space<vmem>>, vector<8x16x8xbf16>,
    %38 = vector.extract_strided_slice %25 {offsets = [2, 0, 0], sizes = [8, 16, 8], strides = [1, 1, 1]} : vector<10x18x8xbf16> to vector<8x16x8xbf16>
    %c0_51 = arith.constant 0 : index
    %c0_52 = arith.constant 0 : index
    %c48_53 = arith.constant 48 : index
    %39 = vector.load %arg12[%c0_51, %c0_52, %c48_53] : memref<8x16x128xbf16, #tpu.memory_space<vmem>>, vector<8x16x8xbf16>
    tpu.vector_store %arg12[%c0_51, %c0_52, %c48_53], %38 {strides = array<i32>} : memref<8x16x128xbf16, #tpu.memory_space<vmem>>, vector<8x16x8xbf16>,
    %40 = vector.extract_strided_slice %25 {offsets = [2, 1, 0], sizes = [8, 16, 8], strides = [1, 1, 1]} : vector<10x18x8xbf16> to vector<8x16x8xbf16>
    %c0_54 = arith.constant 0 : index
    %c0_55 = arith.constant 0 : index
    %c56_56 = arith.constant 56 : index
    %41 = vector.load %arg12[%c0_54, %c0_55, %c56_56] : memref<8x16x128xbf16, #tpu.memory_space<vmem>>, vector<8x16x8xbf16>
    tpu.vector_store %arg12[%c0_54, %c0_55, %c56_56], %40 {strides = array<i32>} : memref<8x16x128xbf16, #tpu.memory_space<vmem>>, vector<8x16x8xbf16>,
    %42 = vector.extract_strided_slice %25 {offsets = [2, 2, 0], sizes = [8, 16, 8], strides = [1, 1, 1]} : vector<10x18x8xbf16> to vector<8x16x8xbf16>
    %c0_57 = arith.constant 0 : index
    %c0_58 = arith.constant 0 : index
    %c64_59 = arith.constant 64 : index
    %43 = vector.load %arg12[%c0_57, %c0_58, %c64_59] : memref<8x16x128xbf16, #tpu.memory_space<vmem>>, vector<8x16x8xbf16>
    tpu.vector_store %arg12[%c0_57, %c0_58, %c64_59], %42 {strides = array<i32>} : memref<8x16x128xbf16, #tpu.memory_space<vmem>>, vector<8x16x8xbf16>,
    %cst_60 = arith.constant 0.000000e+00 : bf16
    %44 = vector.broadcast %cst_60 : bf16 to vector<8x16x56xbf16>
    %c0_61 = arith.constant 0 : index
    %c0_62 = arith.constant 0 : index
    %c72_63 = arith.constant 72 : index
    %45 = vector.load %arg12[%c0_61, %c0_62, %c72_63] : memref<8x16x128xbf16, #tpu.memory_space<vmem>>, vector<8x16x56xbf16>
    tpu.vector_store %arg12[%c0_61, %c0_62, %c72_63], %44 {strides = array<i32>} : memref<8x16x128xbf16, #tpu.memory_space<vmem>>, vector<8x16x56xbf16>,
    %c0_64 = arith.constant 0 : index
    %c0_65 = arith.constant 0 : index
    %c0_66 = arith.constant 0 : index
    %46 = vector.load %arg12[%c0_64, %c0_65, %c0_66] : memref<8x16x128xbf16, #tpu.memory_space<vmem>>, vector<8x16x128xbf16>
    %47 = vector.shape_cast %46 : vector<8x16x128xbf16> to vector<128x128xbf16>
    %c0_67 = arith.constant 0 : index
    %c0_68 = arith.constant 0 : index
    %48 = vector.load %arg4[%c0_67, %c0_68] : memref<128x256xbf16, #tpu.memory_space<vmem>>, vector<128x128xbf16>
    %cst_69 = arith.constant dense<0.000000e+00> : vector<128x128xf32>
    %49 = tpu.matmul %23, %48, %cst_69 {dimension_numbers = #tpu.dot_dimension_numbers<[1], [0], [0], [1], [0, 0, 1, 1], [], []>} : vector<128x128xbf16>, vector<128x128xbf16>, vector<128x128xf32> -> vector<128x128xf32>
    %c0_70 = arith.constant 0 : index
    %c0_71 = arith.constant 0 : index
    %50 = vector.load %arg5[%c0_70, %c0_71] : memref<1x256xf32, #tpu.memory_space<vmem>>, vector<1x128xf32>
    %51 = vector.broadcast %50 : vector<1x128xf32> to vector<128x128xf32>
    %52 = arith.addf %49, %51 : vector<128x128xf32>
    %c0_72 = arith.constant 0 : index
    %c0_73 = arith.constant 0 : index
    %53 = vector.load %arg8[%c0_72, %c0_73] : memref<1x256xf32, #tpu.memory_space<vmem>>, vector<1x128xf32>
    %54 = vector.broadcast %53 : vector<1x128xf32> to vector<128x128xf32>
    %55 = arith.mulf %52, %54 : vector<128x128xf32>
    %c0_74 = arith.constant 0 : index
    %c0_75 = arith.constant 0 : index
    %56 = vector.load %arg9[%c0_74, %c0_75] : memref<1x256xf32, #tpu.memory_space<vmem>>, vector<1x128xf32>
    %57 = vector.broadcast %56 : vector<1x128xf32> to vector<128x128xf32>
    %58 = arith.addf %55, %57 : vector<128x128xf32>
    %cst_76 = arith.constant 0.000000e+00 : f32
    %59 = vector.broadcast %cst_76 : f32 to vector<128x128xf32>
    %60 = arith.maximumf %58, %59 : vector<128x128xf32>
    %c0_77 = arith.constant 0 : index
    %c0_78 = arith.constant 0 : index
    %61 = vector.load %arg6[%c0_77, %c0_78] : memref<128x512xbf16, #tpu.memory_space<vmem>>, vector<128x256xbf16>
    %cst_79 = arith.constant dense<0.000000e+00> : vector<128x256xf32>
    %62 = tpu.matmul %47, %61, %cst_79 {dimension_numbers = #tpu.dot_dimension_numbers<[1], [0], [0], [1], [0, 0, 1, 1], [], []>} : vector<128x128xbf16>, vector<128x256xbf16>, vector<128x256xf32> -> vector<128x256xf32>
    %c0_80 = arith.constant 0 : index
    %c0_81 = arith.constant 0 : index
    %63 = vector.load %arg7[%c0_80, %c0_81] : memref<1x512xf32, #tpu.memory_space<vmem>>, vector<1x256xf32>
    %64 = vector.broadcast %63 : vector<1x256xf32> to vector<128x256xf32>
    %65 = arith.addf %62, %64 : vector<128x256xf32>
    %66 = vector.extract_strided_slice %65 {offsets = [0, 0], sizes = [128, 128], strides = [1, 1]} : vector<128x256xf32> to vector<128x128xf32>
    %67 = arith.mulf %66, %60 : vector<128x128xf32>
    %68 = vector.extract_strided_slice %65 {offsets = [0, 128], sizes = [128, 128], strides = [1, 1]} : vector<128x256xf32> to vector<128x128xf32>
    %69 = arith.addf %67, %68 : vector<128x128xf32>
    %cst_82 = arith.constant 0.000000e+00 : f32
    %70 = vector.broadcast %cst_82 : f32 to vector<128x128xf32>
    %71 = arith.maximumf %69, %70 : vector<128x128xf32>
    %72 = vector.shape_cast %71 : vector<128x128xf32> to vector<1x8x16x128xf32>
    %c0_83 = arith.constant 0 : index
    %c0_84 = arith.constant 0 : index
    %c0_85 = arith.constant 0 : index
    %c0_86 = arith.constant 0 : index
    %73 = vector.load %arg10[%c0_83, %c0_84, %c0_85, %c0_86] : memref<1x8x16x256xf32, #tpu.memory_space<vmem>>, vector<1x8x16x128xf32>
    tpu.vector_store %arg10[%c0_83, %c0_84, %c0_85, %c0_86], %72 {strides = array<i32>} : memref<1x8x16x256xf32, #tpu.memory_space<vmem>>, vector<1x8x16x128xf32>,
    %c0_87 = arith.constant 0 : index
    %c128 = arith.constant 128 : index
    %74 = vector.load %arg4[%c0_87, %c128] : memref<128x256xbf16, #tpu.memory_space<vmem>>, vector<128x128xbf16>
    %cst_88 = arith.constant dense<0.000000e+00> : vector<128x128xf32>
    %75 = tpu.matmul %23, %74, %cst_88 {dimension_numbers = #tpu.dot_dimension_numbers<[1], [0], [0], [1], [0, 0, 1, 1], [], []>} : vector<128x128xbf16>, vector<128x128xbf16>, vector<128x128xf32> -> vector<128x128xf32>
    %c0_89 = arith.constant 0 : index
    %c128_90 = arith.constant 128 : index
    %76 = vector.load %arg5[%c0_89, %c128_90] : memref<1x256xf32, #tpu.memory_space<vmem>>, vector<1x128xf32>
    %77 = vector.broadcast %76 : vector<1x128xf32> to vector<128x128xf32>
    %78 = arith.addf %75, %77 : vector<128x128xf32>
    %c0_91 = arith.constant 0 : index
    %c128_92 = arith.constant 128 : index
    %79 = vector.load %arg8[%c0_91, %c128_92] : memref<1x256xf32, #tpu.memory_space<vmem>>, vector<1x128xf32>
    %80 = vector.broadcast %79 : vector<1x128xf32> to vector<128x128xf32>
    %81 = arith.mulf %78, %80 : vector<128x128xf32>
    %c0_93 = arith.constant 0 : index
    %c128_94 = arith.constant 128 : index
    %82 = vector.load %arg9[%c0_93, %c128_94] : memref<1x256xf32, #tpu.memory_space<vmem>>, vector<1x128xf32>
    %83 = vector.broadcast %82 : vector<1x128xf32> to vector<128x128xf32>
    %84 = arith.addf %81, %83 : vector<128x128xf32>
    %cst_95 = arith.constant 0.000000e+00 : f32
    %85 = vector.broadcast %cst_95 : f32 to vector<128x128xf32>
    %86 = arith.maximumf %84, %85 : vector<128x128xf32>
    %c0_96 = arith.constant 0 : index
    %c256 = arith.constant 256 : index
    %87 = vector.load %arg6[%c0_96, %c256] : memref<128x512xbf16, #tpu.memory_space<vmem>>, vector<128x256xbf16>
    %cst_97 = arith.constant dense<0.000000e+00> : vector<128x256xf32>
    %88 = tpu.matmul %47, %87, %cst_97 {dimension_numbers = #tpu.dot_dimension_numbers<[1], [0], [0], [1], [0, 0, 1, 1], [], []>} : vector<128x128xbf16>, vector<128x256xbf16>, vector<128x256xf32> -> vector<128x256xf32>
    %c0_98 = arith.constant 0 : index
    %c256_99 = arith.constant 256 : index
    %89 = vector.load %arg7[%c0_98, %c256_99] : memref<1x512xf32, #tpu.memory_space<vmem>>, vector<1x256xf32>
    %90 = vector.broadcast %89 : vector<1x256xf32> to vector<128x256xf32>
    %91 = arith.addf %88, %90 : vector<128x256xf32>
    %92 = vector.extract_strided_slice %91 {offsets = [0, 0], sizes = [128, 128], strides = [1, 1]} : vector<128x256xf32> to vector<128x128xf32>
    %93 = arith.mulf %92, %86 : vector<128x128xf32>
    %94 = vector.extract_strided_slice %91 {offsets = [0, 128], sizes = [128, 128], strides = [1, 1]} : vector<128x256xf32> to vector<128x128xf32>
    %95 = arith.addf %93, %94 : vector<128x128xf32>
    %cst_100 = arith.constant 0.000000e+00 : f32
    %96 = vector.broadcast %cst_100 : f32 to vector<128x128xf32>
    %97 = arith.maximumf %95, %96 : vector<128x128xf32>
    %98 = vector.shape_cast %97 : vector<128x128xf32> to vector<1x8x16x128xf32>
    %c0_101 = arith.constant 0 : index
    %c0_102 = arith.constant 0 : index
    %c0_103 = arith.constant 0 : index
    %c128_104 = arith.constant 128 : index
    %99 = vector.load %arg10[%c0_101, %c0_102, %c0_103, %c128_104] : memref<1x8x16x256xf32, #tpu.memory_space<vmem>>, vector<1x8x16x128xf32>
    tpu.vector_store %arg10[%c0_101, %c0_102, %c0_103, %c128_104], %98 {strides = array<i32>} : memref<1x8x16x256xf32, #tpu.memory_space<vmem>>, vector<1x8x16x128xf32>,
    return
  }
  func.func @transform_0(%arg0: i32, %arg1: i32) -> (i32, i32, i32, i32, i32) {
    %c0_i32 = arith.constant 0 : i32
    %c0_i32_0 = arith.constant 0 : i32
    %c0_i32_1 = arith.constant 0 : i32
    %c0_i32_2 = arith.constant 0 : i32
    return %arg0, %arg1, %c0_i32, %c0_i32_0, %c0_i32_1 : i32, i32, i32, i32, i32
  }
  func.func @transform_1(%arg0: i32, %arg1: i32) -> (i32, i32, i32, i32, i32) {
    %c0_i32 = arith.constant 0 : i32
    %c0_i32_0 = arith.constant 0 : i32
    %c0_i32_1 = arith.constant 0 : i32
    %c0_i32_2 = arith.constant 0 : i32
    return %arg0, %arg1, %c0_i32, %c0_i32_0, %c0_i32_1 : i32, i32, i32, i32, i32
  }
  func.func @transform_2(%arg0: i32, %arg1: i32) -> (i32, i32) {
    %c0_i32 = arith.constant 0 : i32
    %c0_i32_0 = arith.constant 0 : i32
    %c0_i32_1 = arith.constant 0 : i32
    return %c0_i32, %c0_i32_0 : i32, i32
  }
  func.func @transform_3(%arg0: i32, %arg1: i32) -> (i32, i32) {
    %c0_i32 = arith.constant 0 : i32
    %c0_i32_0 = arith.constant 0 : i32
    %c0_i32_1 = arith.constant 0 : i32
    return %c0_i32, %c0_i32_0 : i32, i32
  }
  func.func @transform_4(%arg0: i32, %arg1: i32) -> (i32, i32) {
    %c0_i32 = arith.constant 0 : i32
    %c0_i32_0 = arith.constant 0 : i32
    %c0_i32_1 = arith.constant 0 : i32
    return %c0_i32, %c0_i32_0 : i32, i32
  }
  func.func @transform_5(%arg0: i32, %arg1: i32) -> (i32, i32) {
    %c0_i32 = arith.constant 0 : i32
    %c0_i32_0 = arith.constant 0 : i32
    %c0_i32_1 = arith.constant 0 : i32
    return %c0_i32, %c0_i32_0 : i32, i32
  }
  func.func @transform_6(%arg0: i32, %arg1: i32) -> (i32, i32) {
    %c0_i32 = arith.constant 0 : i32
    %c0_i32_0 = arith.constant 0 : i32
    %c0_i32_1 = arith.constant 0 : i32
    return %c0_i32, %c0_i32_0 : i32, i32
  }
  func.func @transform_7(%arg0: i32, %arg1: i32) -> (i32, i32) {
    %c0_i32 = arith.constant 0 : i32
    %c0_i32_0 = arith.constant 0 : i32
    %c0_i32_1 = arith.constant 0 : i32
    return %c0_i32, %c0_i32_0 : i32, i32
  }
  func.func @transform_8(%arg0: i32, %arg1: i32) -> (i32, i32, i32, i32) {
    %c0_i32 = arith.constant 0 : i32
    %c0_i32_0 = arith.constant 0 : i32
    %c0_i32_1 = arith.constant 0 : i32
    return %arg0, %arg1, %c0_i32, %c0_i32_0 : i32, i32, i32, i32
  }
}

</mosaic_0001>

<bundles_post_ra>
// kernel: sa_forward.2
= control target key start
LH: loop header
LB: loop body
LE: loop exit
PB: predicated region body
PF: predicated region fallthrough
CT: control target
= control target key end

     0   :  { %s2151_s15 = smov 0   ;;  %s2153_s16 = smov 0   ;;  %s2946_s0 = inlined_call_operand.vmem [shape: bf16[2,2,10,18,8], index: 0, kind: input, shape index: {}]   ;;  %s2947_s1 = inlined_call_operand.vmem [shape: bf16[128,256], index: 1, kind: input, shape index: {}]   ;;  %s2948_s2 = inlined_call_operand.vmem [shape: f32[1,256], index: 2, kind: input, shape index: {}]   ;;  %s2949_s3 = inlined_call_operand.vmem [shape: f32[2,2,8,256], index: 3, kind: output, shape index: {0}]   ;;  %s2950_s4 = inlined_call_operand.vmem [shape: f32[2,2,8,256], index: 4, kind: output, shape index: {1}]  }
   0x1   :  { %s2155_s17 = smov 0   ;;  %s2157_s18 = smov 0  }
   0x2   :  { %s2159_s19 = smov 0  }
   0x3 LB: > { %s24_s20 = sadd.s32 1, %s2107_s17  ;;  %s27_s21 = sadd.s32 1, %s2111_s18  ;;  %s2115_s19 = sphi %s2159_s19, %s15_s19   ;;  %s2111_s18 = sphi %s2157_s18, %s2958_s18   ;;  %s2107_s17 = sphi %s2155_s17, %s2957_s17   ;;  %s2103_s16 = sphi %s2153_s16, %s2956_s16   ;;  %s2099_s15 = sphi %s2151_s15, %s2955_s15  }
   0x4   : > { %p25_p0 = scmp.ge.s32.totalorder %s24_s20, 2  ;;  %p1860_p1 = scmp.ge.s32.totalorder %s2115_s19, 1 }
   0x5   : > { %p187_p2 = scmp.lt.s32.totalorder %s2115_s19, 5 }
   0x6   : > { %s2960_s20 = smov (%p25_p0, %s24_s20), 0  ;;  %s2962_s21 = smov (!%p25_p0, %s27_s21), %s2111_s18 }
   0x7   : > { %p188_p3 = pnand %p1860_p1, %p187_p2  ;;  %p29_p4 = scmp.ge.s32.totalorder %s2962_s21, 2 }
   0x8   : > { %p230_p5 = scmp.lt.s32.totalorder (!%p188_p3), %s2103_s16, 1  ;;  %p232_p6 = scmp.lt.s32.totalorder (!%p188_p3), %s2099_s15, 1 }
   0x9   : > { %s2964_s21 = smov (%p29_p4, %s2962_s21), 0  ;;  %191 = sbr.rel (%p188_p3) target bundleno = 624 (0x270), region = 32 }
   0xa   : > { %s2117_s29 = smov (!%p188_p3), 24   ;;  %s2118_s30 = smov (!%p188_p3), 16  }
   0xb   : > { %s2119_s5 = smov (!%p188_p3), 8   ;;  %s2120_s6 = smov (!%p188_p3), 32  }
   0xc   : > { %s2121_s7 = smov (!%p188_p3), 40   ;;  %s2122_s8 = smov (!%p188_p3), 48  }
   0xd   : > { %s2123_s9 = smov (!%p188_p3), 56   ;;  %s2124_s10 = smov (!%p188_p3), 64  }
   0xe   : > { %s2966_s16 = smov (!%p230_p5, %s2103_s16), 1  ;;  %s2968_s15 = smov (!%p232_p6, %s2099_s15), 1  ;;  %vm589_vm0 = vcmask 1042432   ;;  %vm590_vm1 = vcmask 1046532   ;;  %vm305_vm2 = vsmask.f32 3328 }
   0xf   : > { %s2003_s22 = smul.u32 60, %s2966_s16  ;;  %vm306_vm3 = vsmask.f32 7440  ;;  %vm288_vm4 = vcmask 60416   ;;  %vm2199_vm5 = vmor %vm589_vm0, %vm590_vm1  ;;  %vm548_vm7 = vcmask 126016   ;;  %vm696_vm8 = vcmask 191616  }
  0x10   : > { %s2002_s23 = smul.u32 30, %s2968_s15  ;;  %vm2248_vm6 = vmor %vm305_vm2, %vm306_vm3  ;;  %vm763_vm9 = vcmask 257216   ;;  %vm852_vm10 = vcmask 322816   ;;  %vm925_vm11 = vcmask 388416   ;;  %vm992_vm12 = vcmask 454016  }
  0x11   : > { %vm1081_vm13 = vcmask 519616   ;;  %vm1154_vm14 = vcmask 585216   ;;  %vm1171_vm15 = vcmask 1044032  }
  0x12   : > { %s236_s24 = sadd.s32 %s2003_s22, %s2002_s23 }
  0x13   : > { %s1861_s25 = sshll.u32 %s236_s24, 2 }
  0x14   : > { %s2190_s28 = scalar_lea.vmem %s2946_s0, %s1861_s25 }
  0x15   : > { %v261_v0 = vld [vmem:[%s2190_s28 + $0xc] sm:$0xf]  ;;  %v262_v1 = vld [vmem:[%s2190_s28 + $0x10] sm:$0xf]  ;;  %v258_v2 = vld [vmem:[%s2190_s28] sm:$0xf] }
  0x16   : > { %715 = vrot.lane.b32.xlu0 %v261_v0, %s2117_s29  ;;  %717 = vrot.lane.b32.xlu1 %v262_v1, %s2117_s29  ;;  %v259_v3 = vld [vmem:[%s2190_s28 + $0x4] sm:$0xf]  ;;  %v1868_v5 = vrot.slane %v258_v2, 9  ;;  %v260_v6 = vld [vmem:[%s2190_s28 + $0x8] sm:$0x1]  ;;  %v1869_v7 = vrot.slane %v261_v0, 9 }
  0x17   : > { %289 = vst.msk [vmem:[#allocation2] sm:$0xf] %vm288_vm4, %v258_v2  ;;  %291 = vst.msk [vmem:[#allocation2 + $0x8] sm:$0xf] %vm288_vm4, %v261_v0  ;;  %v594_v8 = vrot.slane %v259_v3, 5  ;;  %v597_v9 = vrot.slane %v260_v6, 5 }
  0x18   : > { %292 = vst.msk [vmem:[#allocation2 + $0xc] sm:$0xf] %vm288_vm4, %v262_v1  ;;  %v601_v10 = vrot.slane %v262_v1, 5  ;;  %v263_v11 = vld [vmem:[%s2190_s28 + $0x14] sm:$0x1]  ;;  %v309_v12 = vshrl.u32 %v258_v2, 16 }
  0x19   : > { %290 = vst.msk [vmem:[#allocation2 + $0x4] sm:$0xf] %vm288_vm4, %v259_v3  ;;  %v312_v13 = vshll.u32 %v258_v2, 16  ;;  %v318_v14 = vshll.u32 %v259_v3, 16  ;;  %v333_v15 = vshrl.u32 %v261_v0, 16  ;;  %v595_v17 = vsel %vm2199_vm5, %v1868_v5, %v594_v8 }
  0x1a   : > { %v2210_v16 = vld [vmem:[%s2190_s28 + $0x1c] sm:$0xf]  ;;  %v596_v18 = vrot.slane %v594_v8, 4  ;;  %v603_v19 = vrot.slane %v601_v10, 4  ;;  %v604_v20 = vrot.slane %v263_v11, 5  ;;  %648 = vrot.lane.b32.xlu0 %v595_v17, %s2118_s30  ;;  %v2222_v22 = vsel %vm2199_vm5, %v1869_v7, %v601_v10 }
  0x1b   : > { %v2215_v21 = vld [vmem:[%s2190_s28 + $0x18] sm:$0xf]  ;;  %294 = vst.msk [vmem:[#allocation2 + $0x14] sm:$0xf] %vm288_vm4, %v2210_v16  ;;  %v311_v23 = vrot.slane %v309_v12, 4  ;;  %v314_v24 = vrot.slane %v312_v13, 5 }
  0x1c   : > { %v320_v25 = vrot.slane %v318_v14, 5  ;;  %v2225_v26 = vld [vmem:[%s2190_s28 + $0x28] sm:$0xf]  ;;  %293 = vst.msk [vmem:[#allocation2 + $0x10] sm:$0xf] %vm288_vm4, %v2215_v21  ;;  %v598_v27 = vsel %vm2199_vm5, %v596_v18, %v597_v9  ;;  %v335_v28 = vrot.slane %v333_v15, 4  ;;  %v2244_v37 = vsel %vm2199_vm5, %v603_v19, %v604_v20 }
  0x1d   : > { %v336_v29 = vshll.u32 %v261_v0, 16  ;;  %v342_v30 = vshll.u32 %v262_v1, 16  ;;  %v2232_v31 = vld [vmem:[%s2190_s28 + $0x24] sm:$0xf]  ;;  %296 = vst.msk [vmem:[#allocation2 + $0x1c] sm:$0xf] %vm288_vm4, %v2225_v26  ;;  %650 = vrot.lane.b32.xlu1 %v598_v27, %s2118_s30  ;;  %v315_v32 = vor.u32 %v314_v24, %v311_v23 }
  0x1e   : > { %v322_v33 = vshrl.u32 %v259_v3, 16  ;;  %v328_v34 = vshll.u32 %v260_v6, 16  ;;  %v346_v35 = vshrl.u32 %v262_v1, 16  ;;  %v2238_v36 = vld [vmem:[%s2190_s28 + $0x34] sm:$0xf]  ;;  %v352_v41 = vshll.u32 %v263_v11, 16  ;;  %652 = vrot.lane.b32.xlu0 %v2222_v22, %s2118_s30 }
  0x1f   : > { %295 = vst.msk [vmem:[#allocation2 + $0x18] sm:$0xf] %vm288_vm4, %v2232_v31  ;;  %v338_v39 = vrot.slane %v336_v29, 5  ;;  %v344_v40 = vrot.slane %v342_v30, 5  ;;  %v2253_v42 = vld [vmem:[%s2190_s28 + $0x30] sm:$0xf] }
  0x20   : > { %298 = vst.msk [vmem:[#allocation2 + $0x24] sm:$0xf] %vm288_vm4, %v2238_v36  ;;  %v316_v43 = vrot.slane %v315_v32, 4  ;;  %v324_v44 = vrot.slane %v322_v33, 4  ;;  %v348_v45 = vrot.slane %v346_v35, 4  ;;  %v330_v47 = vrot.slane %v328_v34, 5 }
  0x21   : > { %297 = vst.msk [vmem:[#allocation2 + $0x20] sm:$0xf] %vm288_vm4, %v2253_v42  ;;  %v339_v46 = vor.u32 %v338_v39, %v335_v28  ;;  %v366_v48 = vshll.u32 %v2210_v16, 16  ;;  %v2263_v49 = vld [vmem:[%s2190_s28 + $0x40] sm:$0xf]  ;;  %654 = vrot.lane.b32.xlu1 %v2244_v37, %s2118_s30  ;;  %v354_v53 = vrot.slane %v352_v41, 5 }
  0x22   : > { %v321_v50 = vsel %vm2248_vm6, %v316_v43, %v320_v25  ;;  %v325_v51 = vor.u32 %v324_v44, %v320_v25  ;;  %v349_v52 = vor.u32 %v348_v45, %v344_v40  ;;  %v2270_v54 = vld [vmem:[%s2190_s28 + $0x3c] sm:$0xf]  ;;  %300 = vst.msk [vmem:[#allocation2 + $0x2c] sm:$0xf] %vm288_vm4, %v2263_v49  ;;  %v370_v56 = vshrl.u32 %v2210_v16, 16 }
  0x23   : > { %v340_v55 = vrot.slane %v339_v46, 4  ;;  %v357_v57 = vshrl.u32 %v2215_v21, 16  ;;  %v360_v58 = vshll.u32 %v2215_v21, 16  ;;  %299 = vst.msk [vmem:[#allocation2 + $0x28] sm:$0xf] %vm288_vm4, %v2270_v54  ;;  %500 = vrot.lane.b32.xlu0 %v321_v50, %s2119_s5  ;;  %v368_v2 = vrot.slane %v366_v48, 5 }
  0x24   : > { %v326_v59 = vrot.slane %v325_v51, 4  ;;  %v350_v60 = vrot.slane %v349_v52, 4  ;;  %v372_v3 = vrot.slane %v370_v56, 4  ;;  %v266_v5 = vld [vmem:[%s2190_s28 + $0x20] sm:$0x1]  ;;  %v608_v17 = vrot.slane %v2210_v16, 5 }
  0x25   : > { %v345_v61 = vsel %vm2248_vm6, %v340_v55, %v344_v40  ;;  %v359_v62 = vrot.slane %v357_v57, 4  ;;  %v362_v63 = vrot.slane %v360_v58, 5  ;;  %v376_v8 = vshll.u32 %v266_v5, 16  ;;  %v2293_v9 = vld [vmem:[%s2190_s28 + $0x4c] sm:$0xf] }
  0x26   : > { %504 = vrot.lane.b32.xlu1 %v345_v61, %s2119_s5  ;;  %v331_v0 = vsel %vm2248_vm6, %v326_v59, %v330_v47  ;;  %v355_v1 = vsel %vm2248_vm6, %v350_v60, %v354_v53  ;;  %v373_v7 = vor.u32 %v372_v3, %v368_v2  ;;  %302 = vst.msk [vmem:[#allocation2 + $0x34] sm:$0xf] %vm288_vm4, %v2293_v9  ;;  %v2298_v11 = vld [vmem:[%s2190_s28 + $0x48] sm:$0xf]  ;;  %v1870_v18 = vrot.slane %v2215_v21, 9 }
  0x27   : > { %502 = vrot.lane.b32.xlu0 %v331_v0, %s2119_s5  ;;  %v363_v6 = vor.u32 %v362_v63, %v359_v62  ;;  %301 = vst.msk [vmem:[#allocation2 + $0x30] sm:$0xf] %vm288_vm4, %v2298_v11  ;;  %v378_v13 = vrot.slane %v376_v8, 5  ;;  %v610_v19 = vrot.slane %v608_v17, 4  ;;  %v611_v20 = vrot.slane %v266_v5, 5 }
  0x28   : > { %v374_v12 = vrot.slane %v373_v7, 4  ;;  %v609_v23 = vsel %vm2199_vm5, %v1870_v18, %v608_v17  ;;  %v381_v24 = vshrl.u32 %v2232_v31, 16  ;;  %v384_v25 = vshll.u32 %v2232_v31, 16  ;;  %v269_v34 = vld [vmem:[%s2190_s28 + $0x2c] sm:$0x1] }
  0x29   : > { %v364_v10 = vrot.slane %v363_v6, 4  ;;  %v612_v27 = vsel %vm2199_vm5, %v610_v19, %v611_v20  ;;  %v390_v28 = vshll.u32 %v2225_v26, 16  ;;  %v394_v29 = vshrl.u32 %v2225_v26, 16  ;;  %v2336_v40 = vld [vmem:[%s2190_s28 + $0x58] sm:$0xf] }
  0x2a   : > { %506 = vrot.lane.b32.xlu1 %v355_v1, %s2119_s5  ;;  %v379_v15 = vsel %vm2248_vm6, %v374_v12, %v378_v13  ;;  %v386_v30 = vrot.slane %v384_v25, 5  ;;  %v400_v39 = vshll.u32 %v269_v34, 16  ;;  %v2339_v41 = vld [vmem:[%s2190_s28 + $0x54] sm:$0xf]  ;;  %304 = vst.msk [vmem:[#allocation2 + $0x3c] sm:$0xf] %vm288_vm4, %v2336_v40 }
  0x2b   : > { %719 = vrot.lane.b32.xlu0 %v2215_v21, %s2117_s29  ;;  %v369_v14 = vsel %vm2248_vm6, %v364_v10, %v368_v2  ;;  %v392_v32 = vrot.slane %v390_v28, 5  ;;  %v396_v33 = vrot.slane %v394_v29, 4  ;;  %303 = vst.msk [vmem:[#allocation2 + $0x38] sm:$0xf] %vm288_vm4, %v2339_v41  ;;  %v615_v46 = vrot.slane %v2225_v26, 5 }
  0x2c   : > { %v1871_v47 = vrot.slane %v2232_v31, 9  ;;  %v618_v50 = vrot.slane %v269_v34, 5  ;;  %v405_v53 = vshrl.u32 %v2253_v42, 16  ;;  %v408_v55 = vshll.u32 %v2253_v42, 16  ;;  %v272_v62 = vld [vmem:[%s2190_s28 + $0x38] sm:$0x1] }
  0x2d   : > { %v617_v48 = vrot.slane %v615_v46, 4  ;;  %v414_v56 = vshll.u32 %v2238_v36, 16  ;;  %v418_v57 = vshrl.u32 %v2238_v36, 16  ;;  %v622_v6 = vrot.slane %v2238_v36, 5  ;;  %v275_v25 = vld [vmem:[%s2190_s28 + $0x44] sm:$0x1] }
  0x2e   : > { %721 = vrot.lane.b32.xlu1 %v2210_v16, %s2117_s29  ;;  %v616_v51 = vsel %vm2199_vm5, %v1871_v47, %v615_v46  ;;  %v407_v58 = vrot.slane %v405_v53, 4  ;;  %v410_v59 = vrot.slane %v408_v55, 5  ;;  %v1872_v7 = vrot.slane %v2253_v42, 9 }
  0x2f   : > { %804 = vrot.lane.b32.xlu0 %v345_v61, %s2120_s6  ;;  %v619_v52 = vsel %vm2199_vm5, %v617_v48, %v618_v50  ;;  %v416_v60 = vrot.slane %v414_v56, 5  ;;  %v420_v61 = vrot.slane %v418_v57, 4  ;;  %v624_v8 = vrot.slane %v622_v6, 4 }
  0x30   : > { %v411_v63 = vor.u32 %v410_v59, %v407_v58  ;;  %v625_v10 = vrot.slane %v272_v62, 5  ;;  %v2399_v12 = vsel %vm2199_vm5, %v1872_v7, %v622_v6  ;;  %v429_v13 = vshrl.u32 %v2270_v54, 16 }
  0x31   : > { %v421_v0 = vor.u32 %v420_v61, %v416_v60  ;;  %v438_v17 = vshll.u32 %v2263_v49, 16  ;;  %v442_v18 = vshrl.u32 %v2263_v49, 16  ;;  %v448_v29 = vshll.u32 %v275_v25, 16 }
  0x32   : > { %806 = vrot.lane.b32.xlu1 %v355_v1, %s2120_s6  ;;  %v424_v1 = vshll.u32 %v272_v62, 16  ;;  %v412_v2 = vrot.slane %v411_v63, 4  ;;  %v431_v19 = vrot.slane %v429_v13, 4  ;;  %v453_v56 = vshrl.u32 %v2298_v11, 16 }
  0x33   : > { %808 = vrot.lane.b32.xlu0 %v369_v14, %s2120_s6  ;;  %v422_v3 = vrot.slane %v421_v0, 4  ;;  %v456_v57 = vshll.u32 %v2298_v11, 16  ;;  %v462_v59 = vshll.u32 %v2293_v9, 16 }
  0x34   : > { %v426_v5 = vrot.slane %v424_v1, 5  ;;  %v455_v62 = vrot.slane %v453_v56, 4 }
  0x35   : > { %v458_v63 = vrot.slane %v456_v57, 5  ;;  %v464_v1 = vrot.slane %v462_v59, 5 }
  0x36   : > { %810 = vrot.lane.b32.xlu1 %v379_v15, %s2120_s6 }
  0x37   : > { %877 = vrot.lane.b32.xlu0 %v2222_v22, %s2121_s7  ;;  %v383_v22 = vrot.slane %v381_v24, 4  ;;  %v444_v24 = vrot.slane %v442_v18, 4  ;;  %v636_v18 = vrot.slane %v2293_v9, 5 }
  0x39   : > { %v387_v35 = vor.u32 %v386_v30, %v383_v22 }
  0x3a   : > { %879 = vrot.lane.b32.xlu1 %v2244_v37, %s2121_s7  ;;  %v397_v37 = vor.u32 %v396_v33, %v392_v32 }
  0x3b   : > { %881 = vrot.lane.b32.xlu0 %v609_v23, %s2121_s7  ;;  %v388_v43 = vrot.slane %v387_v35, 4 }
  0x3d   : > { %v393_v44 = vsel %vm2248_vm6, %v388_v43, %v392_v32  ;;  %v450_v32 = vrot.slane %v448_v29, 5  ;;  %v1873_v43 = vrot.slane %v2270_v54, 9  ;;  %v477_v29 = vshrl.u32 %v2339_v41, 16 }
  0x3e   : > { %883 = vrot.lane.b32.xlu1 %v612_v27, %s2121_s7 }
  0x3f   : > { %944 = vrot.lane.b32.xlu0 %v2215_v21, %s2122_s8  ;;  %v402_v21 = vrot.slane %v400_v39, 5 }
  0x42   : > { %946 = vrot.lane.b32.xlu1 %v2210_v16, %s2122_s8  ;;  %v398_v16 = vrot.slane %v397_v37, 4  ;;  %v629_v37 = vrot.slane %v2263_v49, 5 }
  0x43   : > { %948 = vrot.lane.b32.xlu0 %v2232_v31, %s2122_s8 }
  0x44   : > { %v403_v45 = vsel %vm2248_vm6, %v398_v16, %v402_v21  ;;  %v631_v21 = vrot.slane %v629_v37, 4  ;;  %v2446_v46 = vsel %vm2199_vm5, %v1873_v43, %v629_v37 }
  0x46   : > { %950 = vrot.lane.b32.xlu1 %v2225_v26, %s2122_s8 }
  0x47   : > { %1033 = vrot.lane.b32.xlu0 %v369_v14, %s2123_s9 }
  0x4a   : > { %1035 = vrot.lane.b32.xlu1 %v379_v15, %s2123_s9 }
  0x4b   : > { %1037 = vrot.lane.b32.xlu0 %v393_v44, %s2123_s9 }
  0x4e   : > { %1039 = vrot.lane.b32.xlu1 %v403_v45, %s2123_s9 }
  0x4f   : > { %1106 = vrot.lane.b32.xlu0 %v609_v23, %s2124_s10 }
  0x52   : > { %1108 = vrot.lane.b32.xlu1 %v612_v27, %s2124_s10 }
  0x53   : > { %508 = vrot.lane.b32.xlu0 %v369_v14, %s2119_s5  ;;  %v432_v14 = vshll.u32 %v2270_v54, 16 }
  0x55   : > { %v434_v20 = vrot.slane %v432_v14, 5 }
  0x56   : > { %510 = vrot.lane.b32.xlu1 %v379_v15, %s2119_s5  ;;  %v2406_v15 = vsel %vm2199_vm5, %v624_v8, %v625_v10 }
  0x57   : > { %1110 = vrot.lane.b32.xlu0 %v616_v51, %s2124_s10 }
  0x5a   : > { %1112 = vrot.lane.b32.xlu1 %v619_v52, %s2124_s10 }
  0x5b   : > { %512 = vrot.lane.b32.xlu0 %v393_v44, %s2119_s5 }
  0x5e   : > { %514 = vrot.lane.b32.xlu1 %v403_v45, %s2119_s5 }
  0x5f   : > { %656 = vrot.lane.b32.xlu0 %v609_v23, %s2118_s30  ;;  %v440_v23 = vrot.slane %v438_v17, 5 }
  0x61   : > { %v445_v28 = vor.u32 %v444_v24, %v440_v23  ;;  %v638_v24 = vrot.slane %v636_v18, 4 }
  0x62   : > { %658 = vrot.lane.b32.xlu1 %v612_v27, %s2118_s30  ;;  %v435_v27 = vor.u32 %v434_v20, %v431_v19  ;;  %v1874_v20 = vrot.slane %v2298_v11, 9 }
  0x63   : > { %660 = vrot.lane.b32.xlu0 %v616_v51, %s2118_s30  ;;  %v446_v30 = vrot.slane %v445_v28, 4 }
  0x64   : > { %v436_v22 = vrot.slane %v435_v27, 4  ;;  %v2528_v28 = vsel %vm2199_vm5, %v1874_v20, %v636_v18  ;;  %v2650_v18 = vld [vmem:[%s2190_s28 + $0x60] sm:$0xf]  ;;  %v2062_v20 = vld [vmem:[%s2947_s1 + $0x34] ss:$8 sps:$4 sm:$0xff]  }
  0x65   : > { %v2431_v34 = vsel %vm2248_vm6, %v446_v30, %v450_v32 }
  0x66   : > { %662 = vrot.lane.b32.xlu1 %v619_v52, %s2118_s30 }
  0x67   : > { %723 = vrot.lane.b32.xlu0 %v2232_v31, %s2117_s29  ;;  %v417_v31 = vsel %vm2248_vm6, %v412_v2, %v416_v60  ;;  %v466_v60 = vshrl.u32 %v2293_v9, 16 }
  0x69   : > { %v468_v2 = vrot.slane %v466_v60, 4  ;;  %v643_v60 = vrot.slane %v2336_v40, 5 }
  0x6a   : > { %725 = vrot.lane.b32.xlu1 %v2225_v26, %s2117_s29  ;;  %v427_v26 = vsel %vm2248_vm6, %v422_v3, %v426_v5  ;;  %v278_v5 = vld [vmem:[%s2190_s28 + $0x50] sm:$0x1] }
  0x6b   : > { %727 = vrot.lane.b32.xlu0 %v2253_v42, %s2117_s29  ;;  %v469_v6 = vor.u32 %v468_v2, %v464_v1  ;;  %v472_v7 = vshll.u32 %v278_v5, 16  ;;  %v645_v2 = vrot.slane %v643_v60, 4 }
  0x6e   : > { %729 = vrot.lane.b32.xlu1 %v2238_v36, %s2117_s29 }
  0x6f   : > { %812 = vrot.lane.b32.xlu0 %v393_v44, %s2120_s6  ;;  %v632_v44 = vrot.slane %v275_v25, 5  ;;  %v639_v25 = vrot.slane %v278_v5, 5  ;;  %v2055_v5 = vld [vmem:[%s2947_s1 + $0x60] ss:$8 sps:$4 sm:$0xff]  }
  0x71   : > { %v2452_v48 = vsel %vm2199_vm5, %v631_v21, %v632_v44  ;;  %v2537_v32 = vsel %vm2199_vm5, %v638_v24, %v639_v25  ;;  %v2550_v21 = vld [vmem:[%s2190_s28 + $0x5c] sm:$0x1]  ;;  %v2662_v24 = vld [vmem:[%s2190_s28 + $0x64] sm:$0xf]  ;;  %v781_v25 = vshrl.u32 %v2650_v18, 16 }
  0x72   : > { %814 = vrot.lane.b32.xlu1 %v403_v45, %s2120_s6 }
  0x73   : > { %816 = vrot.lane.b32.xlu0 %v417_v31, %s2120_s6 }
  0x76   : > { %818 = vrot.lane.b32.xlu1 %v427_v26, %s2120_s6 }
  0x77   : > { %885 = vrot.lane.b32.xlu0 %v616_v51, %s2121_s7 }
  0x7a   : > { %887 = vrot.lane.b32.xlu1 %v619_v52, %s2121_s7 }
  0x7b   : > { %889 = vrot.lane.b32.xlu0 %v2399_v12, %s2121_s7 }
  0x7e   : > { %891 = vrot.lane.b32.xlu1 %v2406_v15, %s2121_s7 }
  0x7f   : > { %952 = vrot.lane.b32.xlu0 %v2253_v42, %s2122_s8  ;;  %v2426_v42 = vsel %vm2248_vm6, %v436_v22, %v440_v23  ;;  %v480_v22 = vshll.u32 %v2339_v41, 16 }
  0x82   : > { %954 = vrot.lane.b32.xlu1 %v2238_v36, %s2122_s8 }
  0x83   : > { %956 = vrot.lane.b32.xlu0 %v2270_v54, %s2122_s8 }
  0x86   : > { %958 = vrot.lane.b32.xlu1 %v2263_v49, %s2122_s8 }
  0x87   : > { %1041 = vrot.lane.b32.xlu0 %v417_v31, %s2123_s9 }
  0x88   : > { %v716_v36 = vpop.permute.xlu0 %715  ;;  %v718_v33 = vpop.permute.xlu1 %717 }
  0x8a   : > { %1043 = vrot.lane.b32.xlu1 %v427_v26, %s2123_s9 }
  0x8b   : > { %1045 = vrot.lane.b32.xlu0 %v2426_v42, %s2123_s9 }
  0x8c   : > { %v649_v35 = vpop.permute.xlu0 %648 }
  0x8e   : > { %1047 = vrot.lane.b32.xlu1 %v2431_v34, %s2123_s9 }
  0x8f   : > { %v651_v39 = vpop.permute.xlu1 %650  ;;  %1114 = vrot.lane.b32.xlu0 %v2399_v12, %s2124_s10 }
  0x90   : > { %v653_v16 = vpop.permute.xlu0 %652 }
  0x92   : > { %1116 = vrot.lane.b32.xlu1 %v2406_v15, %s2124_s10 }
  0x93   : > { %v655_v45 = vpop.permute.xlu1 %654  ;;  %516 = vrot.lane.b32.xlu0 %v417_v31, %s2119_s5  ;;  %v459_v31 = vor.u32 %v458_v63, %v455_v62  ;;  %v2054_v62 = vld [vmem:[%s2947_s1 + $0x74] ss:$8 sps:$4 sm:$0xff]  }
  0x94   : > { %1970 = vmatprep.subr.bf16.mxu1 %v2054_v62 }
  0x95   : > { %v501_v47 = vpop.permute.xlu0 %500  ;;  %1971 = vmatpush3.bf16.msra.mxu1 %v2054_v62 }
  0x96   : > { %518 = vrot.lane.b32.xlu1 %v427_v26, %s2119_s5  ;;  %549 = vst.msk [vmem:[#allocation2] sm:$0xf] %vm548_vm7, %v501_v47  ;;  %v496_v47 = vshll.u32 %v2550_v21, 16 }
  0x97   : > { %697 = vst.msk [vmem:[#allocation2] sm:$0xf] %vm696_vm8, %v649_v35  ;;  %1118 = vrot.lane.b32.xlu0 %v2446_v46, %s2124_s10  ;;  %v482_v35 = vrot.slane %v480_v22, 5  ;;  %v790_v22 = vshll.u32 %v2662_v24, 16 }
  0x98   : > { %v505_v50 = vpop.permute.xlu1 %504  ;;  %764 = vst.msk [vmem:[#allocation2] sm:$0xf] %vm763_vm9, %v716_v36  ;;  %v490_v36 = vshrl.u32 %v2336_v40, 16 }
  0x99   : > { %551 = vst.msk [vmem:[#allocation2 + $0x8] sm:$0xf] %vm548_vm7, %v505_v50  ;;  %v503_v51 = vpop.permute.xlu0 %502  ;;  %v2125_v50 = vmov 0  }
  0x9a   : > { %699 = vst.msk [vmem:[#allocation2 + $0x8] sm:$0xf] %vm696_vm8, %v653_v16  ;;  %1120 = vrot.lane.b32.xlu1 %v2452_v48, %s2124_s10  ;;  %v492_v43 = vrot.slane %v490_v36, 4 }
  0x9b   : > { %550 = vst.msk [vmem:[#allocation2 + $0x4] sm:$0xf] %vm548_vm7, %v503_v51  ;;  %520 = vrot.lane.b32.xlu0 %v2426_v42, %s2119_s5 }
  0x9c   : > { %698 = vst.msk [vmem:[#allocation2 + $0x4] sm:$0xf] %vm696_vm8, %v651_v39  ;;  %v507_v52 = vpop.permute.xlu1 %506 }
  0x9d   : > { %552 = vst.msk [vmem:[#allocation2 + $0xc] sm:$0xf] %vm548_vm7, %v507_v52  ;;  %v720_v53 = vpop.permute.xlu0 %719  ;;  %v498_v52 = vrot.slane %v496_v47, 5 }
  0x9e   : > { %765 = vst.msk [vmem:[#allocation2 + $0x4] sm:$0xf] %vm763_vm9, %v718_v33  ;;  %522 = vrot.lane.b32.xlu1 %v2431_v34, %s2119_s5  ;;  %766 = vst.msk [vmem:[#allocation2 + $0x8] sm:$0xf] %vm763_vm9, %v720_v53 }
  0x9f   : > { %700 = vst.msk [vmem:[#allocation2 + $0xc] sm:$0xf] %vm696_vm8, %v655_v45  ;;  %664 = vrot.lane.b32.xlu0 %v2399_v12, %s2118_s30  ;;  %v470_v12 = vrot.slane %v469_v6, 4 }
  0xa0   : > { %v722_v55 = vpop.permute.xlu1 %721 }
  0xa1   : > { %767 = vst.msk [vmem:[#allocation2 + $0xc] sm:$0xf] %vm763_vm9, %v722_v55  ;;  %v805_v58 = vpop.permute.xlu0 %804 }
  0xa2   : > { %666 = vrot.lane.b32.xlu1 %v2406_v15, %s2118_s30  ;;  %853 = vst.msk [vmem:[#allocation2] sm:$0xf] %vm852_vm10, %v805_v58 }
  0xa3   : > { %668 = vrot.lane.b32.xlu0 %v2446_v46, %s2118_s30 }
  0xa4   : > { %v807_v61 = vpop.permute.xlu1 %806 }
  0xa5   : > { %854 = vst.msk [vmem:[#allocation2 + $0x4] sm:$0xf] %vm852_vm10, %v807_v61  ;;  %v809_v0 = vpop.permute.xlu0 %808  ;;  %v2053_v61 = vld [vmem:[%s2947_s1 + $0x70] ss:$8 sps:$4 sm:$0xff]  }
  0xa6   : > { %670 = vrot.lane.b32.xlu1 %v2452_v48, %s2118_s30  ;;  %855 = vst.msk [vmem:[#allocation2 + $0x8] sm:$0xf] %vm852_vm10, %v809_v0  ;;  %v1875_v0 = vrot.slane %v2339_v41, 9  ;;  %1938 = vmatprep.subr.bf16.mxu0 %v2053_v61 }
  0xa7   : > { %731 = vrot.lane.b32.xlu0 %v2270_v54, %s2117_s29  ;;  %v460_v54 = vrot.slane %v459_v31, 4  ;;  %1939 = vmatpush3.bf16.msra.mxu0 %v2053_v61  ;;  %v2056_v31 = vld [vmem:[%s2947_s1 + $0x64] ss:$8 sps:$4 sm:$0xff]   ;;  %v872_v61 = vrot.slane %v2662_v24, 5 }
  0xa8   : > { %v811_v3 = vpop.permute.xlu1 %810  ;;  %v2617_v6 = vsel %vm2199_vm5, %v1875_v0, %v643_v60  ;;  %1940 = vmatprep.subr.bf16.mxu0 %v2055_v5  ;;  %1972 = vmatprep.subr.bf16.mxu1 %v2056_v31  ;;  %v2731_v0 = vld [vmem:[%s2190_s28 + $0x6c] sm:$0xf] }
  0xa9   : > { %856 = vst.msk [vmem:[#allocation2 + $0xc] sm:$0xf] %vm852_vm10, %v811_v3  ;;  %v878_v26 = vpop.permute.xlu0 %877  ;;  %v2506_v14 = vsel %vm2248_vm6, %v460_v54, %v464_v1  ;;  %v646_v3 = vrot.slane %v2550_v21, 5  ;;  %1973 = vmatpush3.bf16.msra.mxu1 %v2056_v31  ;;  %v2057_v54 = vld [vmem:[%s2947_s1 + $0x50] ss:$8 sps:$4 sm:$0xff]  }
  0xaa   : > { %733 = vrot.lane.b32.xlu1 %v2263_v49, %s2117_s29  ;;  %926 = vst.msk [vmem:[#allocation2] sm:$0xf] %vm925_vm11, %v878_v26  ;;  %v474_v49 = vrot.slane %v472_v7, 5  ;;  %v2693_v21 = vld [vmem:[%s2190_s28 + $0x68] sm:$0x1] }
  0xab   : > { %735 = vrot.lane.b32.xlu0 %v2298_v11, %s2117_s29  ;;  %1941 = vmatpush3.bf16.msra.mxu0 %v2055_v5  ;;  %v800_v47 = vshll.u32 %v2693_v21, 16  ;;  %v2738_v5 = vld [vmem:[%s2190_s28 + $0x70] sm:$0xf] }
  0xac   : > { %v880_v8 = vpop.permute.xlu1 %879  ;;  %v2513_v17 = vsel %vm2248_vm6, %v470_v12, %v474_v49  ;;  %1942 = vmatprep.subr.bf16.mxu0 %v2057_v54 }
  0xad   : > { %927 = vst.msk [vmem:[#allocation2 + $0x4] sm:$0xf] %vm925_vm11, %v880_v8  ;;  %v882_v10 = vpop.permute.xlu0 %881  ;;  %v2624_v8 = vsel %vm2199_vm5, %v645_v2, %v646_v3  ;;  %v875_v2 = vrot.slane %v2693_v21, 5 }
  0xae   : > { %737 = vrot.lane.b32.xlu1 %v2293_v9, %s2117_s29  ;;  %928 = vst.msk [vmem:[#allocation2 + $0x8] sm:$0xf] %vm925_vm11, %v882_v10  ;;  %v2058_v10 = vld [vmem:[%s2947_s1 + $0x54] ss:$8 sps:$4 sm:$0xff]  }
  0xaf   : > { %820 = vrot.lane.b32.xlu0 %v2426_v42, %s2120_s6  ;;  %v486_v42 = vshll.u32 %v2336_v40, 16  ;;  %1974 = vmatprep.subr.bf16.mxu1 %v2058_v10 }
  0xb0   : > { %v884_v13 = vpop.permute.xlu1 %883  ;;  %1943 = vmatpush3.bf16.msra.mxu0 %v2057_v54  ;;  %1975 = vmatpush3.bf16.msra.mxu1 %v2058_v10  ;;  %v1019_v10 = vshll.u32 %v2738_v5, 16 }
  0xb1   : > { %929 = vst.msk [vmem:[#allocation2 + $0xc] sm:$0xf] %vm925_vm11, %v884_v13  ;;  %v945_v15 = vpop.permute.xlu0 %944  ;;  %v488_v39 = vrot.slane %v486_v42, 5  ;;  %v2059_v13 = vld [vmem:[%s2947_s1 + $0x40] ss:$8 sps:$4 sm:$0xff]  }
  0xb2   : > { %822 = vrot.lane.b32.xlu1 %v2431_v34, %s2120_s6  ;;  %993 = vst.msk [vmem:[#allocation2] sm:$0xf] %vm992_vm12, %v945_v15  ;;  %v479_v34 = vrot.slane %v477_v29, 4  ;;  %1944 = vmatprep.subr.bf16.mxu0 %v2059_v13  ;;  %v2064_v42 = vld [vmem:[%s2947_s1 + $0x24] ss:$8 sps:$4 sm:$0xff]  }
  0xb3   : > { %824 = vrot.lane.b32.xlu0 %v2506_v14, %s2120_s6 }
  0xb4   : > { %v947_v19 = vpop.permute.xlu1 %946  ;;  %v483_v44 = vor.u32 %v482_v35, %v479_v34  ;;  %1945 = vmatpush3.bf16.msra.mxu0 %v2059_v13  ;;  %v792_v35 = vrot.slane %v790_v22, 5 }
  0xb5   : > { %994 = vst.msk [vmem:[#allocation2 + $0x4] sm:$0xf] %vm992_vm12, %v947_v19  ;;  %v949_v23 = vpop.permute.xlu0 %948  ;;  %v2061_v19 = vld [vmem:[%s2947_s1 + $0x30] ss:$8 sps:$4 sm:$0xff]  }
  0xb6   : > { %826 = vrot.lane.b32.xlu1 %v2513_v17, %s2120_s6  ;;  %995 = vst.msk [vmem:[#allocation2 + $0x8] sm:$0xf] %vm992_vm12, %v949_v23  ;;  %1946 = vmatprep.subr.bf16.mxu0 %v2061_v19 }
  0xb7   : > { %893 = vrot.lane.b32.xlu0 %v2446_v46, %s2121_s7  ;;  %v493_v46 = vor.u32 %v492_v43, %v488_v39  ;;  %v2066_v43 = vld [vmem:[%s2947_s1 + $0x14] ss:$8 sps:$4 sm:$0xff]  }
  0xb8   : > { %v951_v27 = vpop.permute.xlu1 %950  ;;  %1947 = vmatpush3.bf16.msra.mxu0 %v2061_v19 }
  0xb9   : > { %996 = vst.msk [vmem:[#allocation2 + $0xc] sm:$0xf] %vm992_vm12, %v951_v27  ;;  %v1034_v30 = vpop.permute.xlu0 %1033  ;;  %v494_v51 = vrot.slane %v493_v46, 4  ;;  %v784_v27 = vshll.u32 %v2650_v18, 16 }
  0xba   : > { %895 = vrot.lane.b32.xlu1 %v2452_v48, %s2121_s7  ;;  %1082 = vst.msk [vmem:[#allocation2] sm:$0xf] %vm1081_vm13, %v1034_v30  ;;  %v2063_v30 = vld [vmem:[%s2947_s1 + $0x20] ss:$8 sps:$4 sm:$0xff]  }
  0xbb   : > { %897 = vrot.lane.b32.xlu0 %v2528_v28, %s2121_s7  ;;  %v2579_v57 = vsel %vm2248_vm6, %v494_v51, %v498_v52  ;;  %1948 = vmatprep.subr.bf16.mxu0 %v2063_v30 }
  0xbc   : > { %v1036_v33 = vpop.permute.xlu1 %1035  ;;  %1949 = vmatpush3.bf16.msra.mxu0 %v2063_v30 }
  0xbd   : > { %1083 = vst.msk [vmem:[#allocation2 + $0x4] sm:$0xf] %vm1081_vm13, %v1036_v33  ;;  %v1038_v37 = vpop.permute.xlu0 %1037  ;;  %v786_v33 = vrot.slane %v784_v27, 5 }
  0xbe   : > { %899 = vrot.lane.b32.xlu1 %v2537_v32, %s2121_s7  ;;  %1084 = vst.msk [vmem:[#allocation2 + $0x8] sm:$0xf] %vm1081_vm13, %v1038_v37 }
  0xbf   : > { %960 = vrot.lane.b32.xlu0 %v2298_v11, %s2122_s8  ;;  %v484_v11 = vrot.slane %v483_v44, 4 }
  0xc0   : > { %v1040_v16 = vpop.permute.xlu1 %1039 }
  0xc1   : > { %1085 = vst.msk [vmem:[#allocation2 + $0xc] sm:$0xf] %vm1081_vm13, %v1040_v16  ;;  %v1107_v45 = vpop.permute.xlu0 %1106  ;;  %v2572_v55 = vsel %vm2248_vm6, %v484_v11, %v488_v39  ;;  %v2065_v39 = vld [vmem:[%s2947_s1 + $0x10] ss:$8 sps:$4 sm:$0xff]  }
  0xc2   : > { %962 = vrot.lane.b32.xlu1 %v2293_v9, %s2122_s8  ;;  %1155 = vst.msk [vmem:[#allocation2] sm:$0xf] %vm1154_vm14, %v1107_v45  ;;  %1950 = vmatprep.subr.bf16.mxu0 %v2065_v39 }
  0xc3   : > { %1172 = vst.msk [vmem:[#allocation2] sm:$0xf] %vm1171_vm15, %v2125_v50  ;;  %964 = vrot.lane.b32.xlu0 %v2339_v41, %s2122_s8  ;;  %1951 = vmatpush3.bf16.msra.mxu0 %v2065_v39 }
  0xc4   : > { %v1109_v48 = vpop.permute.xlu1 %1108 }
  0xc5   : > { %1156 = vst.msk [vmem:[#allocation2 + $0x4] sm:$0xf] %vm1154_vm14, %v1109_v48  ;;  %v509_v9 = vpop.permute.xlu0 %508  ;;  %v2068_v48 = vld [vmem:[%s2947_s1 + $0x4] ss:$8 sps:$4 sm:$0xff]  }
  0xc6   : > { %1173 = vst.msk [vmem:[#allocation2 + $0x4] sm:$0xf] %vm1171_vm15, %v2125_v50  ;;  %966 = vrot.lane.b32.xlu1 %v2336_v40, %s2122_s8 }
  0xc7   : > { %553 = vst.msk [vmem:[#allocation2 + $0x10] sm:$0xf] %vm548_vm7, %v509_v9  ;;  %1049 = vrot.lane.b32.xlu0 %v2506_v14, %s2123_s9 }
  0xc8   : > { %v511_v53 = vpop.permute.xlu1 %510 }
  0xc9   : > { %554 = vst.msk [vmem:[#allocation2 + $0x14] sm:$0xf] %vm548_vm7, %v511_v53  ;;  %v1111_v56 = vpop.permute.xlu0 %1110  ;;  %v802_v53 = vrot.slane %v800_v47, 5 }
  0xca   : > { %1051 = vrot.lane.b32.xlu1 %v2513_v17, %s2123_s9  ;;  %1157 = vst.msk [vmem:[#allocation2 + $0x8] sm:$0xf] %vm1154_vm14, %v1111_v56 }
  0xcb   : > { %1174 = vst.msk [vmem:[#allocation2 + $0x8] sm:$0xf] %vm1171_vm15, %v2125_v50  ;;  %1053 = vrot.lane.b32.xlu0 %v2572_v55, %s2123_s9 }
  0xcc   : > { %v1113_v58 = vpop.permute.xlu1 %1112 }
  0xcd   : > { %1158 = vst.msk [vmem:[#allocation2 + $0xc] sm:$0xf] %vm1154_vm14, %v1113_v58  ;;  %v513_v59 = vpop.permute.xlu0 %512  ;;  %v2069_v51 = vld [vmem:[#allocation2] sm:$0xff]  }
  0xce   : > { %1175 = vst.msk [vmem:[#allocation2 + $0xc] sm:$0xf] %vm1171_vm15, %v2125_v50  ;;  %1055 = vrot.lane.b32.xlu1 %v2579_v57, %s2123_s9  ;;  %1954 = vmatprep.mubr.bf16.mxu0 %v2069_v51 }
  0xcf   : > { %555 = vst.msk [vmem:[#allocation2 + $0x18] sm:$0xf] %vm548_vm7, %v513_v59  ;;  %1122 = vrot.lane.b32.xlu0 %v2528_v28, %s2124_s10  ;;  %1986 = vmatprep.mubr.bf16.mxu1 %v2069_v51 }
  0xd0   : > { %v515_v63 = vpop.permute.xlu1 %514 }
  0xd1   : > { %556 = vst.msk [vmem:[#allocation2 + $0x1c] sm:$0xf] %vm548_vm7, %v515_v63  ;;  %v657_v1 = vpop.permute.xlu0 %656  ;;  %v1876_v63 = vrot.slane %v2650_v18, 9 }
  0xd2   : > { %1124 = vrot.lane.b32.xlu1 %v2537_v32, %s2124_s10  ;;  %701 = vst.msk [vmem:[#allocation2 + $0x10] sm:$0xf] %vm696_vm8, %v657_v1  ;;  %v874_v1 = vrot.slane %v872_v61, 4 }
  0xd3   : > { %524 = vrot.lane.b32.xlu0 %v2506_v14, %s2119_s5  ;;  %v2060_v14 = vld [vmem:[%s2947_s1 + $0x44] ss:$8 sps:$4 sm:$0xff]   ;;  %v2743_v31 = vsel %vm2199_vm5, %v1876_v63, %v872_v61 }
  0xd4   : > { %v659_v26 = vpop.permute.xlu1 %658  ;;  %1976 = vmatprep.subr.bf16.mxu1 %v2060_v14 }
  0xd5   : > { %702 = vst.msk [vmem:[#allocation2 + $0x14] sm:$0xf] %vm696_vm8, %v659_v26  ;;  %v661_v7 = vpop.permute.xlu0 %660  ;;  %1977 = vmatpush3.bf16.msra.mxu1 %v2060_v14  ;;  %v2070_v56 = vld [vmem:[#allocation2 + $0x8] sm:$0xff]   ;;  %v1010_v26 = vshrl.u32 %v2731_v0, 16 }
  0xd6   : > { %526 = vrot.lane.b32.xlu1 %v2513_v17, %s2119_s5  ;;  %703 = vst.msk [vmem:[#allocation2 + $0x18] sm:$0xf] %vm696_vm8, %v661_v7  ;;  %1978 = vmatprep.subr.bf16.mxu1 %v2062_v20  ;;  %v1013_v7 = vshll.u32 %v2731_v0, 16 }
  0xd7   : > { %1126 = vrot.lane.b32.xlu0 %v2617_v6, %s2124_s10  ;;  %v1012_v13 = vrot.slane %v1010_v26, 4 }
  0xd8   : > { %v663_v12 = vpop.permute.xlu1 %662  ;;  %v1015_v14 = vrot.slane %v1013_v7, 5 }
  0xd9   : > { %704 = vst.msk [vmem:[#allocation2 + $0x1c] sm:$0xf] %vm696_vm8, %v663_v12  ;;  %v724_v49 = vpop.permute.xlu0 %723  ;;  %1979 = vmatpush3.bf16.msra.mxu1 %v2062_v20  ;;  %v1023_v12 = vshrl.u32 %v2738_v5, 16  ;;  %v287_v20 = vld [vmem:[%s2190_s28 + $0x74] sm:$0x1] }
  0xda   : > { %1128 = vrot.lane.b32.xlu1 %v2624_v8, %s2124_s10  ;;  %768 = vst.msk [vmem:[#allocation2 + $0x10] sm:$0xf] %vm763_vm9, %v724_v49  ;;  %1980 = vmatprep.subr.bf16.mxu1 %v2064_v42 }
  0xdb   : > { %528 = vrot.lane.b32.xlu0 %v2572_v55, %s2119_s5 }
  0xdc   : > { %v726_v15 = vpop.permute.xlu1 %725 }
  0xdd   : > { %769 = vst.msk [vmem:[#allocation2 + $0x14] sm:$0xf] %vm763_vm9, %v726_v15  ;;  %v728_v17 = vpop.permute.xlu0 %727  ;;  %1981 = vmatpush3.bf16.msra.mxu1 %v2064_v42  ;;  %v1021_v15 = vrot.slane %v1019_v10, 5 }
  0xde   : > { %530 = vrot.lane.b32.xlu1 %v2579_v57, %s2119_s5  ;;  %770 = vst.msk [vmem:[#allocation2 + $0x18] sm:$0xf] %vm763_vm9, %v728_v17  ;;  %1982 = vmatprep.subr.bf16.mxu1 %v2066_v43  ;;  %v1025_v17 = vrot.slane %v1023_v12, 4 }
  0xdf   : > { %672 = vrot.lane.b32.xlu0 %v2528_v28, %s2118_s30  ;;  %v794_v28 = vshrl.u32 %v2662_v24, 16 }
  0xe0   : > { %v730_v23 = vpop.permute.xlu1 %729  ;;  %v1026_v27 = vor.u32 %v1025_v17, %v1021_v15 }
  0xe1   : > { %771 = vst.msk [vmem:[#allocation2 + $0x1c] sm:$0xf] %vm763_vm9, %v730_v23  ;;  %v813_v29 = vpop.permute.xlu0 %812  ;;  %v796_v37 = vrot.slane %v794_v28, 4  ;;  %1983 = vmatpush3.bf16.msra.mxu1 %v2066_v43  ;;  %v1016_v23 = vor.u32 %v1015_v14, %v1012_v13 }
  0xe2   : > { %674 = vrot.lane.b32.xlu1 %v2537_v32, %s2118_s30  ;;  %857 = vst.msk [vmem:[#allocation2 + $0x10] sm:$0xf] %vm852_vm10, %v813_v29  ;;  %v783_v32 = vrot.slane %v781_v25, 4  ;;  %1984 = vmatprep.subr.bf16.mxu1 %v2068_v48  ;;  %v1029_v29 = vshll.u32 %v287_v20, 16  ;;  %v1027_v28 = vrot.slane %v1026_v27, 4 }
  0xe3   : > { %676 = vrot.lane.b32.xlu0 %v2617_v6, %s2118_s30  ;;  %v797_v46 = vor.u32 %v796_v37, %v792_v35  ;;  %v1877_v37 = vrot.slane %v2731_v0, 9 }
  0xe4   : > { %v815_v36 = vpop.permute.xlu1 %814  ;;  %v787_v44 = vor.u32 %v786_v33, %v783_v32  ;;  %v1031_v30 = vrot.slane %v1029_v29, 5  ;;  %v1101_v33 = vrot.slane %v2738_v5, 5 }
  0xe5   : > { %858 = vst.msk [vmem:[#allocation2 + $0x14] sm:$0xf] %vm852_vm10, %v815_v36  ;;  %v817_v34 = vpop.permute.xlu0 %816  ;;  %v798_v52 = vrot.slane %v797_v46, 4  ;;  %1985 = vmatpush3.bf16.msra.mxu1 %v2068_v48 }
  0xe6   : > { %678 = vrot.lane.b32.xlu1 %v2624_v8, %s2118_s30  ;;  %859 = vst.msk [vmem:[#allocation2 + $0x18] sm:$0xf] %vm852_vm10, %v817_v34  ;;  %v1032_v34 = vsel %vm2248_vm6, %v1027_v28, %v1031_v30  ;;  %v1103_v38 = vrot.slane %v1101_v33, 4 }
  0xe7   : > { %739 = vrot.lane.b32.xlu0 %v2339_v41, %s2117_s29  ;;  %v2067_v41 = vld [vmem:[%s2947_s1] ss:$8 sps:$4 sm:$0xff]  }
  0xe8   : > { %v819_v16 = vpop.permute.xlu1 %818  ;;  %1952 = vmatprep.subr.bf16.mxu0 %v2067_v41  ;;  %1987 = vmatmul.mubr.bf16.vlgmr.msra.gmra.mxu1 %v2070_v56 }
  0xe9   : > { %860 = vst.msk [vmem:[#allocation2 + $0x1c] sm:$0xf] %vm852_vm10, %v819_v16  ;;  %v886_v45 = vpop.permute.xlu0 %885  ;;  %1953 = vmatpush3.bf16.msra.mxu0 %v2067_v41  ;;  %v1104_v16 = vrot.slane %v287_v20, 5 }
  0xea   : > { %741 = vrot.lane.b32.xlu1 %v2336_v40, %s2117_s29  ;;  %930 = vst.msk [vmem:[#allocation2 + $0x10] sm:$0xf] %vm925_vm11, %v886_v45  ;;  %v788_v40 = vrot.slane %v787_v44, 4  ;;  %v1102_v44 = vsel %vm2199_vm5, %v1877_v37, %v1101_v33 }
  0xeb   : > { %743 = vrot.lane.b32.xlu0 %v2650_v18, %s2117_s29  ;;  %v1105_v46 = vsel %vm2199_vm5, %v1103_v38, %v1104_v16 }
  0xec   : > { %v888_v11 = vpop.permute.xlu1 %887  ;;  %v2717_v59 = vsel %vm2248_vm6, %v788_v40, %v792_v35  ;;  %1955 = vmatmul.mubr.bf16.vlgmr.msra.gmra.mxu0 %v2070_v56 }
  0xed   : > { %931 = vst.msk [vmem:[#allocation2 + $0x14] sm:$0xf] %vm925_vm11, %v888_v11  ;;  %v890_v9 = vpop.permute.xlu0 %889 }
  0xee   : > { %745 = vrot.lane.b32.xlu1 %v2662_v24, %s2117_s29  ;;  %932 = vst.msk [vmem:[#allocation2 + $0x18] sm:$0xf] %vm925_vm11, %v890_v9 }
  0xef   : > { %828 = vrot.lane.b32.xlu0 %v2572_v55, %s2120_s6  ;;  %v803_v55 = vsel %vm2248_vm6, %v798_v52, %v802_v53 }
  0xf0   : > { %v892_v58 = vpop.permute.xlu1 %891 }
  0xf1   : > { %933 = vst.msk [vmem:[#allocation2 + $0x1c] sm:$0xf] %vm925_vm11, %v892_v58  ;;  %v953_v60 = vpop.permute.xlu0 %952 }
  0xf2   : > { %830 = vrot.lane.b32.xlu1 %v2579_v57, %s2120_s6  ;;  %997 = vst.msk [vmem:[#allocation2 + $0x10] sm:$0xf] %vm992_vm12, %v953_v60 }
  0xf3   : > { %832 = vrot.lane.b32.xlu0 %v2717_v59, %s2120_s6 }
  0xf4   : > { %v955_v62 = vpop.permute.xlu1 %954 }
  0xf5   : > { %998 = vst.msk [vmem:[#allocation2 + $0x14] sm:$0xf] %vm992_vm12, %v955_v62  ;;  %v957_v57 = vpop.permute.xlu0 %956 }
  0xf6   : > { %834 = vrot.lane.b32.xlu1 %v803_v55, %s2120_s6  ;;  %999 = vst.msk [vmem:[#allocation2 + $0x18] sm:$0xf] %vm992_vm12, %v957_v57 }
  0xf7   : > { %901 = vrot.lane.b32.xlu0 %v2617_v6, %s2121_s7  ;;  %v876_v6 = vsel %vm2199_vm5, %v874_v1, %v875_v2 }
  0xf8   : > { %v959_v3 = vpop.permute.xlu1 %958 }
  0xf9   : > { %1000 = vst.msk [vmem:[#allocation2 + $0x1c] sm:$0xf] %vm992_vm12, %v959_v3  ;;  %v1042_v54 = vpop.permute.xlu0 %1041 }
  0xfa   : > { %903 = vrot.lane.b32.xlu1 %v2624_v8, %s2121_s7  ;;  %1086 = vst.msk [vmem:[#allocation2 + $0x10] sm:$0xf] %vm1081_vm13, %v1042_v54 }
  0xfb   : > { %905 = vrot.lane.b32.xlu0 %v2743_v31, %s2121_s7 }
  0xfc   : > { %v1044_v49 = vpop.permute.xlu1 %1043 }
  0xfd   : > { %1087 = vst.msk [vmem:[#allocation2 + $0x14] sm:$0xf] %vm1081_vm13, %v1044_v49  ;;  %v1046_v8 = vpop.permute.xlu0 %1045 }
  0xfe   : > { %907 = vrot.lane.b32.xlu1 %v876_v6, %s2121_s7  ;;  %1088 = vst.msk [vmem:[#allocation2 + $0x18] sm:$0xf] %vm1081_vm13, %v1046_v8 }
  0xff   : > { %968 = vrot.lane.b32.xlu0 %v2650_v18, %s2122_s8  ;;  %v1017_v18 = vrot.slane %v1016_v23, 4 }
 0x100   : > { %v1048_v19 = vpop.permute.xlu1 %1047 }
 0x101   : > { %1089 = vst.msk [vmem:[#allocation2 + $0x1c] sm:$0xf] %vm1081_vm13, %v1048_v19  ;;  %v1115_v25 = vpop.permute.xlu0 %1114  ;;  %v1022_v36 = vsel %vm2248_vm6, %v1017_v18, %v1021_v15 }
 0x102   : > { %970 = vrot.lane.b32.xlu1 %v2662_v24, %s2122_s8  ;;  %1159 = vst.msk [vmem:[#allocation2 + $0x10] sm:$0xf] %vm1154_vm14, %v1115_v25 }
 0x103   : > { %1176 = vst.msk [vmem:[#allocation2 + $0x10] sm:$0xf] %vm1171_vm15, %v2125_v50  ;;  %972 = vrot.lane.b32.xlu0 %v2731_v0, %s2122_s8 }
 0x104   : > { %v1117_v22 = vpop.permute.xlu1 %1116 }
 0x105   : > { %1160 = vst.msk [vmem:[#allocation2 + $0x14] sm:$0xf] %vm1154_vm14, %v1117_v22  ;;  %v517_v24 = vpop.permute.xlu0 %516 }
 0x106   : > { %1177 = vst.msk [vmem:[#allocation2 + $0x14] sm:$0xf] %vm1171_vm15, %v2125_v50  ;;  %974 = vrot.lane.b32.xlu1 %v2738_v5, %s2122_s8  ;;  %s1862_s8 = sshll.u32 %s2968_s15, 1 }
 0x107   : > { %557 = vst.msk [vmem:[#allocation2 + $0x20] sm:$0xf] %vm548_vm7, %v517_v24  ;;  %1057 = vrot.lane.b32.xlu0 %v2717_v59, %s2123_s9 }
 0x108   : > { %v519_v42 = vpop.permute.xlu1 %518 }
 0x109   : > { %558 = vst.msk [vmem:[#allocation2 + $0x24] sm:$0xf] %vm548_vm7, %v519_v42  ;;  %v1119_v32 = vpop.permute.xlu0 %1118 }
 0x10a   : > { %1059 = vrot.lane.b32.xlu1 %v803_v55, %s2123_s9  ;;  %1161 = vst.msk [vmem:[#allocation2 + $0x18] sm:$0xf] %vm1154_vm14, %v1119_v32 }
 0x10b   : > { %1178 = vst.msk [vmem:[#allocation2 + $0x18] sm:$0xf] %vm1171_vm15, %v2125_v50  ;;  %1061 = vrot.lane.b32.xlu0 %v1022_v36, %s2123_s9 }
 0x10c   : > { %v1121_v35 = vpop.permute.xlu1 %1120 }
 0x10d   : > { %1162 = vst.msk [vmem:[#allocation2 + $0x1c] sm:$0xf] %vm1154_vm14, %v1121_v35  ;;  %v2071_v39 = vld [vmem:[#allocation2 + $0x10] sm:$0xff]   ;;  %v521_v43 = vpop.permute.xlu0 %520 }
 0x10e   : > { %1179 = vst.msk [vmem:[#allocation2 + $0x1c] sm:$0xf] %vm1171_vm15, %v2125_v50  ;;  %1063 = vrot.lane.b32.xlu1 %v1032_v34, %s2123_s9  ;;  %1958 = vmatprep.mubr.bf16.mxu0 %v2071_v39  ;;  %s1863_s9 = sshll.u32 %s2966_s16, 2 }
 0x10f   : > { %559 = vst.msk [vmem:[#allocation2 + $0x28] sm:$0xf] %vm548_vm7, %v521_v43  ;;  %1990 = vmatprep.mubr.bf16.mxu1 %v2071_v39  ;;  %1130 = vrot.lane.b32.xlu0 %v2743_v31, %s2124_s10 }
 0x110   : > { %v523_v21 = vpop.permute.xlu1 %522 }
 0x111   : > { %560 = vst.msk [vmem:[#allocation2 + $0x2c] sm:$0xf] %vm548_vm7, %v523_v21  ;;  %v665_v45 = vpop.permute.xlu0 %664 }
 0x112   : > { %1132 = vrot.lane.b32.xlu1 %v876_v6, %s2124_s10  ;;  %705 = vst.msk [vmem:[#allocation2 + $0x20] sm:$0xf] %vm696_vm8, %v665_v45 }
 0x113   : > { %1134 = vrot.lane.b32.xlu0 %v1102_v44, %s2124_s10 }
 0x114   : > { %v667_v47 = vpop.permute.xlu1 %666 }
 0x115   : > { %706 = vst.msk [vmem:[#allocation2 + $0x24] sm:$0xf] %vm696_vm8, %v667_v47  ;;  %v2072_v41 = vld [vmem:[#allocation2 + $0x18] sm:$0xff]   ;;  %v669_v48 = vpop.permute.xlu0 %668 }
 0x116   : > { %1136 = vrot.lane.b32.xlu1 %v1105_v46, %s2124_s10  ;;  %707 = vst.msk [vmem:[#allocation2 + $0x28] sm:$0xf] %vm696_vm8, %v669_v48  ;;  %1959 = vmatmul.mubr.bf16.gmra.mxu0 %v2072_v41  ;;  %s245_s10 = sadd.s32 %s1863_s9, %s1862_s8 }
 0x117   : > { %1991 = vmatmul.mubr.bf16.gmra.mxu1 %v2072_v41  ;;  %s1864_s5 = sshll.u32 %s245_s10, 3 }
 0x118   : > { %v671_v11 = vpop.permute.xlu1 %670  ;;  %s247_s11 = scalar_lea.vmem %s2949_s3, %s1864_s5  ;;  %s256_s14 = scalar_lea.vmem %s2950_s4, %s1864_s5 }
 0x119   : > { %708 = vst.msk [vmem:[#allocation2 + $0x2c] sm:$0xf] %vm696_vm8, %v671_v11  ;;  %v732_v40 = vpop.permute.xlu0 %731 }
 0x11a   : > { %772 = vst.msk [vmem:[#allocation2 + $0x20] sm:$0xf] %vm763_vm9, %v732_v40 }
 0x11c   : > { %v734_v4 = vpop.permute.xlu1 %733 }
 0x11d   : > { %773 = vst.msk [vmem:[#allocation2 + $0x24] sm:$0xf] %vm763_vm9, %v734_v4  ;;  %v736_v9 = vpop.permute.xlu0 %735 }
 0x11e   : > { %774 = vst.msk [vmem:[#allocation2 + $0x28] sm:$0xf] %vm763_vm9, %v736_v9 }
 0x120   : > { %v738_v51 = vpop.permute.xlu1 %737 }
 0x121   : > { %775 = vst.msk [vmem:[#allocation2 + $0x2c] sm:$0xf] %vm763_vm9, %v738_v51  ;;  %v821_v52 = vpop.permute.xlu0 %820  ;;  %v2884_v51 = vld [vmem:[%s2948_s2] ss:$0 sm:$0xff] }
 0x122   : > { %861 = vst.msk [vmem:[#allocation2 + $0x20] sm:$0xf] %vm852_vm10, %v821_v52 }
 0x124   : > { %v823_v53 = vpop.permute.xlu1 %822 }
 0x125   : > { %862 = vst.msk [vmem:[#allocation2 + $0x24] sm:$0xf] %vm852_vm10, %v823_v53  ;;  %v825_v56 = vpop.permute.xlu0 %824 }
 0x126   : > { %863 = vst.msk [vmem:[#allocation2 + $0x28] sm:$0xf] %vm852_vm10, %v825_v56 }
 0x128   : > { %v827_v58 = vpop.permute.xlu1 %826 }
 0x129   : > { %864 = vst.msk [vmem:[#allocation2 + $0x2c] sm:$0xf] %vm852_vm10, %v827_v58  ;;  %v894_v59 = vpop.permute.xlu0 %893 }
 0x12a   : > { %934 = vst.msk [vmem:[#allocation2 + $0x20] sm:$0xf] %vm925_vm11, %v894_v59 }
 0x12c   : > { %v896_v60 = vpop.permute.xlu1 %895 }
 0x12d   : > { %935 = vst.msk [vmem:[#allocation2 + $0x24] sm:$0xf] %vm925_vm11, %v896_v60  ;;  %v898_v55 = vpop.permute.xlu0 %897 }
 0x12e   : > { %936 = vst.msk [vmem:[#allocation2 + $0x28] sm:$0xf] %vm925_vm11, %v898_v55 }
 0x130   : > { %v900_v61 = vpop.permute.xlu1 %899 }
 0x131   : > { %937 = vst.msk [vmem:[#allocation2 + $0x2c] sm:$0xf] %vm925_vm11, %v900_v61  ;;  %v961_v62 = vpop.permute.xlu0 %960 }
 0x132   : > { %1001 = vst.msk [vmem:[#allocation2 + $0x20] sm:$0xf] %vm992_vm12, %v961_v62 }
 0x134   : > { %v963_v63 = vpop.permute.xlu1 %962 }
 0x135   : > { %1002 = vst.msk [vmem:[#allocation2 + $0x24] sm:$0xf] %vm992_vm12, %v963_v63  ;;  %v965_v57 = vpop.permute.xlu0 %964 }
 0x136   : > { %1003 = vst.msk [vmem:[#allocation2 + $0x28] sm:$0xf] %vm992_vm12, %v965_v57 }
 0x138   : > { %v967_v0 = vpop.permute.xlu1 %966 }
 0x139   : > { %1004 = vst.msk [vmem:[#allocation2 + $0x2c] sm:$0xf] %vm992_vm12, %v967_v0  ;;  %v1050_v1 = vpop.permute.xlu0 %1049 }
 0x13a   : > { %1090 = vst.msk [vmem:[#allocation2 + $0x20] sm:$0xf] %vm1081_vm13, %v1050_v1 }
 0x13c   : > { %v1052_v2 = vpop.permute.xlu1 %1051 }
 0x13d   : > { %1091 = vst.msk [vmem:[#allocation2 + $0x24] sm:$0xf] %vm1081_vm13, %v1052_v2  ;;  %v1054_v3 = vpop.permute.xlu0 %1053 }
 0x13e   : > { %1092 = vst.msk [vmem:[#allocation2 + $0x28] sm:$0xf] %vm1081_vm13, %v1054_v3 }
 0x140   : > { %v1056_v5 = vpop.permute.xlu1 %1055 }
 0x141   : > { %1093 = vst.msk [vmem:[#allocation2 + $0x2c] sm:$0xf] %vm1081_vm13, %v1056_v5  ;;  %v1123_v31 = vpop.permute.xlu0 %1122 }
 0x142   : > { %1163 = vst.msk [vmem:[#allocation2 + $0x20] sm:$0xf] %vm1154_vm14, %v1123_v31 }
 0x143   : > { %1180 = vst.msk [vmem:[#allocation2 + $0x20] sm:$0xf] %vm1171_vm15, %v2125_v50 }
 0x144   : > { %v1125_v26 = vpop.permute.xlu1 %1124 }
 0x145   : > { %1164 = vst.msk [vmem:[#allocation2 + $0x24] sm:$0xf] %vm1154_vm14, %v1125_v26  ;;  %v525_v7 = vpop.permute.xlu0 %524 }
 0x146   : > { %1181 = vst.msk [vmem:[#allocation2 + $0x24] sm:$0xf] %vm1171_vm15, %v2125_v50 }
 0x147   : > { %561 = vst.msk [vmem:[#allocation2 + $0x30] sm:$0xf] %vm548_vm7, %v525_v7 }
 0x148   : > { %v527_v54 = vpop.permute.xlu1 %526 }
 0x149   : > { %562 = vst.msk [vmem:[#allocation2 + $0x34] sm:$0xf] %vm548_vm7, %v527_v54  ;;  %v1127_v6 = vpop.permute.xlu0 %1126 }
 0x14a   : > { %1165 = vst.msk [vmem:[#allocation2 + $0x28] sm:$0xf] %vm1154_vm14, %v1127_v6 }
 0x14b   : > { %1182 = vst.msk [vmem:[#allocation2 + $0x28] sm:$0xf] %vm1171_vm15, %v2125_v50 }
 0x14c   : > { %v1129_v10 = vpop.permute.xlu1 %1128 }
 0x14d   : > { %1166 = vst.msk [vmem:[#allocation2 + $0x2c] sm:$0xf] %vm1154_vm14, %v1129_v10  ;;  %v2073_v12 = vld [vmem:[#allocation2 + $0x20] sm:$0xff]   ;;  %v529_v49 = vpop.permute.xlu0 %528 }
 0x14e   : > { %1183 = vst.msk [vmem:[#allocation2 + $0x2c] sm:$0xf] %vm1171_vm15, %v2125_v50  ;;  %1962 = vmatprep.mubr.bf16.mxu0 %v2073_v12  ;;  %1994 = vmatprep.mubr.bf16.mxu1 %v2073_v12 }
 0x14f   : > { %563 = vst.msk [vmem:[#allocation2 + $0x38] sm:$0xf] %vm548_vm7, %v529_v49 }
 0x150   : > { %v531_v13 = vpop.permute.xlu1 %530 }
 0x151   : > { %564 = vst.msk [vmem:[#allocation2 + $0x3c] sm:$0xf] %vm548_vm7, %v531_v13  ;;  %v673_v14 = vpop.permute.xlu0 %672 }
 0x152   : > { %709 = vst.msk [vmem:[#allocation2 + $0x30] sm:$0xf] %vm696_vm8, %v673_v14 }
 0x154   : > { %v675_v8 = vpop.permute.xlu1 %674 }
 0x155   : > { %710 = vst.msk [vmem:[#allocation2 + $0x34] sm:$0xf] %vm696_vm8, %v675_v8  ;;  %v2074_v15 = vld [vmem:[#allocation2 + $0x28] sm:$0xff]   ;;  %v677_v17 = vpop.permute.xlu0 %676 }
 0x156   : > { %711 = vst.msk [vmem:[#allocation2 + $0x38] sm:$0xf] %vm696_vm8, %v677_v17  ;;  %1963 = vmatmul.mubr.bf16.gmra.mxu0 %v2074_v15  ;;  %1995 = vmatmul.mubr.bf16.gmra.mxu1 %v2074_v15 }
 0x158   : > { %v679_v19 = vpop.permute.xlu1 %678 }
 0x159   : > { %712 = vst.msk [vmem:[#allocation2 + $0x3c] sm:$0xf] %vm696_vm8, %v679_v19  ;;  %v740_v20 = vpop.permute.xlu0 %739 }
 0x15a   : > { %776 = vst.msk [vmem:[#allocation2 + $0x30] sm:$0xf] %vm763_vm9, %v740_v20 }
 0x15c   : > { %v742_v23 = vpop.permute.xlu1 %741 }
 0x15d   : > { %777 = vst.msk [vmem:[#allocation2 + $0x34] sm:$0xf] %vm763_vm9, %v742_v23  ;;  %v744_v25 = vpop.permute.xlu0 %743 }
 0x15e   : > { %778 = vst.msk [vmem:[#allocation2 + $0x38] sm:$0xf] %vm763_vm9, %v744_v25 }
 0x160   : > { %v746_v27 = vpop.permute.xlu1 %745 }
 0x161   : > { %779 = vst.msk [vmem:[#allocation2 + $0x3c] sm:$0xf] %vm763_vm9, %v746_v27  ;;  %v829_v29 = vpop.permute.xlu0 %828 }
 0x162   : > { %865 = vst.msk [vmem:[#allocation2 + $0x30] sm:$0xf] %vm852_vm10, %v829_v29 }
 0x164   : > { %v831_v22 = vpop.permute.xlu1 %830 }
 0x165   : > { %866 = vst.msk [vmem:[#allocation2 + $0x34] sm:$0xf] %vm852_vm10, %v831_v22  ;;  %v833_v18 = vpop.permute.xlu0 %832 }
 0x166   : > { %867 = vst.msk [vmem:[#allocation2 + $0x38] sm:$0xf] %vm852_vm10, %v833_v18 }
 0x168   : > { %v835_v24 = vpop.permute.xlu1 %834 }
 0x169   : > { %868 = vst.msk [vmem:[#allocation2 + $0x3c] sm:$0xf] %vm852_vm10, %v835_v24  ;;  %v902_v28 = vpop.permute.xlu0 %901 }
 0x16a   : > { %938 = vst.msk [vmem:[#allocation2 + $0x30] sm:$0xf] %vm925_vm11, %v902_v28 }
 0x16c   : > { %v904_v30 = vpop.permute.xlu1 %903 }
 0x16d   : > { %939 = vst.msk [vmem:[#allocation2 + $0x34] sm:$0xf] %vm925_vm11, %v904_v30  ;;  %v906_v42 = vpop.permute.xlu0 %905 }
 0x16e   : > { %940 = vst.msk [vmem:[#allocation2 + $0x38] sm:$0xf] %vm925_vm11, %v906_v42 }
 0x170   : > { %v908_v36 = vpop.permute.xlu1 %907 }
 0x171   : > { %941 = vst.msk [vmem:[#allocation2 + $0x3c] sm:$0xf] %vm925_vm11, %v908_v36  ;;  %v969_v32 = vpop.permute.xlu0 %968 }
 0x172   : > { %1005 = vst.msk [vmem:[#allocation2 + $0x30] sm:$0xf] %vm992_vm12, %v969_v32 }
 0x174   : > { %v971_v33 = vpop.permute.xlu1 %970 }
 0x175   : > { %1006 = vst.msk [vmem:[#allocation2 + $0x34] sm:$0xf] %vm992_vm12, %v971_v33  ;;  %v973_v34 = vpop.permute.xlu0 %972 }
 0x176   : > { %1007 = vst.msk [vmem:[#allocation2 + $0x38] sm:$0xf] %vm992_vm12, %v973_v34 }
 0x178   : > { %v975_v35 = vpop.permute.xlu1 %974 }
 0x179   : > { %1008 = vst.msk [vmem:[#allocation2 + $0x3c] sm:$0xf] %vm992_vm12, %v975_v35  ;;  %v1058_v37 = vpop.permute.xlu0 %1057 }
 0x17a   : > { %1094 = vst.msk [vmem:[#allocation2 + $0x30] sm:$0xf] %vm1081_vm13, %v1058_v37 }
 0x17c   : > { %v1060_v39 = vpop.permute.xlu1 %1059 }
 0x17d   : > { %1095 = vst.msk [vmem:[#allocation2 + $0x34] sm:$0xf] %vm1081_vm13, %v1060_v39  ;;  %v1062_v43 = vpop.permute.xlu0 %1061 }
 0x17e   : > { %1096 = vst.msk [vmem:[#allocation2 + $0x38] sm:$0xf] %vm1081_vm13, %v1062_v43 }
 0x180   : > { %v1064_v38 = vpop.permute.xlu1 %1063 }
 0x181   : > { %1097 = vst.msk [vmem:[#allocation2 + $0x3c] sm:$0xf] %vm1081_vm13, %v1064_v38  ;;  %v1131_v16 = vpop.permute.xlu0 %1130 }
 0x182   : > { %1167 = vst.msk [vmem:[#allocation2 + $0x30] sm:$0xf] %vm1154_vm14, %v1131_v16 }
 0x183   : > { %1184 = vst.msk [vmem:[#allocation2 + $0x30] sm:$0xf] %vm1171_vm15, %v2125_v50 }
 0x184   : > { %v1133_v21 = vpop.permute.xlu1 %1132 }
 0x185   : > { %1168 = vst.msk [vmem:[#allocation2 + $0x34] sm:$0xf] %vm1154_vm14, %v1133_v21  ;;  %v1135_v44 = vpop.permute.xlu0 %1134 }
 0x186   : > { %1185 = vst.msk [vmem:[#allocation2 + $0x34] sm:$0xf] %vm1171_vm15, %v2125_v50 }
 0x187   : > { %1169 = vst.msk [vmem:[#allocation2 + $0x38] sm:$0xf] %vm1154_vm14, %v1135_v44 }
 0x188   : > { %v1137_v45 = vpop.permute.xlu1 %1136  ;;  %1186 = vst.msk [vmem:[#allocation2 + $0x38] sm:$0xf] %vm1171_vm15, %v2125_v50 }
 0x189   : > { %1170 = vst.msk [vmem:[#allocation2 + $0x3c] sm:$0xf] %vm1154_vm14, %v1137_v45 }
 0x18a   : > { %1187 = vst.msk [vmem:[#allocation2 + $0x3c] sm:$0xf] %vm1171_vm15, %v2125_v50  ;;  %v2889_v50 = vld [vmem:[%s2948_s2 + $0x1] ss:$0 sm:$0xff] }
 0x18d   : > { %v2075_v46 = vld [vmem:[#allocation2 + $0x30] sm:$0xff]  }
 0x18e   : > { %1966 = vmatprep.mubr.bf16.mxu0 %v2075_v46  ;;  %1998 = vmatprep.mubr.bf16.mxu1 %v2075_v46 }
 0x191   : > { %v2076_v47 = vld [vmem:[#allocation2 + $0x38] sm:$0xff]  }
 0x192   : > { %1967 = vmatmul.mubr.bf16.gmra.mxu0 %v2076_v47  ;;  %1999 = vmatmul.mubr.bf16.gmra.mxu1 %v2076_v47 }
 0x1a8   : > { %v1988_v48 = vpop.f32.mrf.mxu1 }
 0x1a9   : > { %v1594_v63 = vadd.f32 %v1988_v48, %v2889_v50 }
 0x1aa   : > { %v1585_v40 = vpop.f32.mrf.mxu1 }
 0x1ab   : > { %v1586_v58 = vadd.f32 %v2889_v50, %v1585_v40  ;;  %v1671_v26 = vmul.f32 %v1594_v63, %v1594_v63 }
 0x1ac   : > { %v1956_v41 = vpop.f32.mrf.mxu0  ;;  %v1989_v9 = vpop.f32.mrf.mxu1 }
 0x1ad   : > { %v1366_v62 = vadd.f32 %v1956_v41, %v2884_v51  ;;  %v1669_v0 = vmul.f32 %v1586_v58, %v1586_v58  ;;  %v1597_v54 = vadd.f32 %v1989_v9, %v2889_v50 }
 0x1ae   : > { %v1357_v11 = vpop.f32.mrf.mxu0  ;;  %v1588_v53 = vpop.f32.mrf.mxu1 }
 0x1af   : > { %v1358_v56 = vadd.f32 %v2884_v51, %v1357_v11  ;;  %v1589_v60 = vadd.f32 %v2889_v50, %v1588_v53  ;;  %v1443_v31 = vmul.f32 %v1366_v62, %v1366_v62  ;;  %v1672_v15 = vmul.f32 %v1597_v54, %v1597_v54 }
 0x1b0   : > { %v1957_v4 = vpop.f32.mrf.mxu0 }
 0x1b1   : > { %v1441_v57 = vmul.f32 %v1358_v56, %v1358_v56  ;;  %v1670_v2 = vmul.f32 %v1589_v60, %v1589_v60  ;;  %v1369_v7 = vadd.f32 %v1957_v4, %v2884_v51  ;;  %v1648_v12 = vadd.f32 %v1589_v60, %v1586_v58 }
 0x1b2   : > { %v1360_v52 = vpop.f32.mrf.mxu0 }
 0x1b3   : > { %v1361_v59 = vadd.f32 %v2884_v51, %v1360_v52  ;;  %v1685_v49 = vadd.f32 %v1670_v2, %v1669_v0  ;;  %v1444_v8 = vmul.f32 %v1369_v7, %v1369_v7  ;;  %v1649_v20 = vadd.f32 %v1648_v12, %v1594_v63 }
 0x1b5   : > { %v1442_v1 = vmul.f32 %v1361_v59, %v1361_v59  ;;  %v1420_v6 = vadd.f32 %v1361_v59, %v1358_v56  ;;  %v1686_v23 = vadd.f32 %v1685_v49, %v1671_v26  ;;  %v1650_v28 = vadd.f32 %v1649_v20, %v1597_v54 }
 0x1b7   : > { %v1457_v10 = vadd.f32 %v1442_v1, %v1441_v57  ;;  %v1421_v17 = vadd.f32 %v1420_v6, %v1366_v62  ;;  %v1687_v30 = vadd.f32 %v1686_v23, %v1672_v15 }
 0x1b9   : > { %v1458_v19 = vadd.f32 %v1457_v10, %v1443_v31  ;;  %v1422_v18 = vadd.f32 %v1421_v17, %v1369_v7 }
 0x1bb   : > { %v1459_v24 = vadd.f32 %v1458_v19, %v1444_v8 }
 0x1d6   : > { %v1960_v55 = vpop.f32.mrf.mxu0 }
 0x1d7   : > { %v1992_v61 = vpop.f32.mrf.mxu1  ;;  %v1382_v37 = vadd.f32 %v1960_v55, %v2884_v51 }
 0x1d8   : > { %v1373_v3 = vpop.f32.mrf.mxu0  ;;  %v1610_v39 = vadd.f32 %v1992_v61, %v2889_v50 }
 0x1d9   : > { %v1601_v5 = vpop.f32.mrf.mxu1  ;;  %v1374_v25 = vadd.f32 %v2884_v51, %v1373_v3  ;;  %v1447_v41 = vmul.f32 %v1382_v37, %v1382_v37 }
 0x1da   : > { %v1961_v13 = vpop.f32.mrf.mxu0  ;;  %v1602_v27 = vadd.f32 %v2889_v50, %v1601_v5  ;;  %v1675_v48 = vmul.f32 %v1610_v39, %v1610_v39 }
 0x1db   : > { %v1993_v14 = vpop.f32.mrf.mxu1  ;;  %v1445_v42 = vmul.f32 %v1374_v25, %v1374_v25  ;;  %v1423_v43 = vadd.f32 %v1422_v18, %v1374_v25  ;;  %v1385_v11 = vadd.f32 %v1961_v13, %v2884_v51 }
 0x1dc   : > { %v1376_v29 = vpop.f32.mrf.mxu0  ;;  %v1673_v36 = vmul.f32 %v1602_v27, %v1602_v27  ;;  %v1651_v38 = vadd.f32 %v1650_v28, %v1602_v27  ;;  %v1613_v40 = vadd.f32 %v1993_v14, %v2889_v50 }
 0x1dd   : > { %v1604_v22 = vpop.f32.mrf.mxu1  ;;  %v1377_v32 = vadd.f32 %v2884_v51, %v1376_v29  ;;  %v1460_v16 = vadd.f32 %v1459_v24, %v1445_v42  ;;  %v1448_v59 = vmul.f32 %v1385_v11, %v1385_v11 }
 0x1de   : > { %v1605_v33 = vadd.f32 %v2889_v50, %v1604_v22  ;;  %v1688_v21 = vadd.f32 %v1687_v30, %v1673_v36  ;;  %v1676_v60 = vmul.f32 %v1613_v40, %v1613_v40 }
 0x1df   : > { %v1446_v44 = vmul.f32 %v1377_v32, %v1377_v32  ;;  %v1424_v4 = vadd.f32 %v1423_v43, %v1377_v32 }
 0x1e0   : > { %v1674_v45 = vmul.f32 %v1605_v33, %v1605_v33  ;;  %v1652_v52 = vadd.f32 %v1651_v38, %v1605_v33 }
 0x1e1   : > { %v1461_v9 = vadd.f32 %v1460_v16, %v1446_v44  ;;  %v1425_v55 = vadd.f32 %v1424_v4, %v1382_v37 }
 0x1e2   : > { %v1689_v53 = vadd.f32 %v1688_v21, %v1674_v45  ;;  %v1653_v62 = vadd.f32 %v1652_v52, %v1610_v39 }
 0x1e3   : > { %v1462_v61 = vadd.f32 %v1461_v9, %v1447_v41  ;;  %v1426_v3 = vadd.f32 %v1425_v55, %v1385_v11 }
 0x1e4   : > { %v1690_v63 = vadd.f32 %v1689_v53, %v1675_v48  ;;  %v1654_v31 = vadd.f32 %v1653_v62, %v1613_v40 }
 0x1e5   : > { %v1463_v5 = vadd.f32 %v1462_v61, %v1448_v59 }
 0x1e6   : > { %v1691_v26 = vadd.f32 %v1690_v63, %v1676_v60 }
 0x216   : > { %v1964_v34 = vpop.f32.mrf.mxu0  ;;  %v1996_v35 = vpop.f32.mrf.mxu1 }
 0x217   : > { %v1398_v12 = vadd.f32 %v1964_v34, %v2884_v51  ;;  %v1626_v49 = vadd.f32 %v1996_v35, %v2889_v50 }
 0x218   : > { %v1389_v46 = vpop.f32.mrf.mxu0  ;;  %v1617_v47 = vpop.f32.mrf.mxu1 }
 0x219   : > { %v1390_v57 = vadd.f32 %v2884_v51, %v1389_v46  ;;  %v1618_v0 = vadd.f32 %v2889_v50, %v1617_v47  ;;  %v1451_v20 = vmul.f32 %v1398_v12, %v1398_v12  ;;  %v1679_v23 = vmul.f32 %v1626_v49, %v1626_v49 }
 0x21a   : > { %v1965_v56 = vpop.f32.mrf.mxu0  ;;  %v1997_v58 = vpop.f32.mrf.mxu1 }
 0x21b   : > { %v1449_v7 = vmul.f32 %v1390_v57, %v1390_v57  ;;  %v1677_v54 = vmul.f32 %v1618_v0, %v1618_v0  ;;  %v1427_v13 = vadd.f32 %v1426_v3, %v1390_v57  ;;  %v1655_v14 = vadd.f32 %v1654_v31, %v1618_v0 }
 0x21c   : > { %v1392_v1 = vpop.f32.mrf.mxu0  ;;  %v1620_v2 = vpop.f32.mrf.mxu1  ;;  %v1401_v29 = vadd.f32 %v1965_v56, %v2884_v51  ;;  %v1629_v22 = vadd.f32 %v1997_v58, %v2889_v50 }
 0x21d   : > { %v1393_v6 = vadd.f32 %v2884_v51, %v1392_v1  ;;  %v1621_v10 = vadd.f32 %v2889_v50, %v1620_v2  ;;  %v1464_v8 = vadd.f32 %v1463_v5, %v1449_v7  ;;  %v1692_v15 = vadd.f32 %v1691_v26, %v1677_v54 }
 0x21e   : > { %v1452_v32 = vmul.f32 %v1401_v29, %v1401_v29  ;;  %v1680_v33 = vmul.f32 %v1629_v22, %v1629_v22 }
 0x21f   : > { %v1450_v17 = vmul.f32 %v1393_v6, %v1393_v6  ;;  %v1678_v19 = vmul.f32 %v1621_v10, %v1621_v10  ;;  %v1428_v25 = vadd.f32 %v1427_v13, %v1393_v6  ;;  %v1656_v27 = vadd.f32 %v1655_v14, %v1621_v10 }
 0x221   : > { %v1465_v18 = vadd.f32 %v1464_v8, %v1450_v17  ;;  %v1693_v24 = vadd.f32 %v1692_v15, %v1678_v19  ;;  %v1429_v42 = vadd.f32 %v1428_v25, %v1398_v12  ;;  %v1657_v36 = vadd.f32 %v1656_v27, %v1626_v49 }
 0x223   : > { %v1466_v34 = vadd.f32 %v1465_v18, %v1451_v20  ;;  %v1694_v35 = vadd.f32 %v1693_v24, %v1679_v23  ;;  %v1430_v44 = vadd.f32 %v1429_v42, %v1401_v29  ;;  %v1658_v46 = vadd.f32 %v1657_v36, %v1629_v22 }
 0x225   : > { %v1467_v11 = vadd.f32 %v1466_v34, %v1452_v32  ;;  %v1695_v40 = vadd.f32 %v1694_v35, %v1680_v33 }
 0x252   : > { %v1968_v28 = vpop.f32.mrf.mxu0  ;;  %v2000_v30 = vpop.f32.mrf.mxu1 }
 0x253   : > { %v1414_v41 = vadd.f32 %v1968_v28, %v2884_v51  ;;  %v1642_v48 = vadd.f32 %v2000_v30, %v2889_v50 }
 0x254   : > { %v1405_v37 = vpop.f32.mrf.mxu0  ;;  %v1633_v39 = vpop.f32.mrf.mxu1 }
 0x255   : > { %v1406_v43 = vadd.f32 %v2884_v51, %v1405_v37  ;;  %v1634_v38 = vadd.f32 %v2889_v50, %v1633_v39  ;;  %v1455_v1 = vmul.f32 %v1414_v41, %v1414_v41  ;;  %v1683_v2 = vmul.f32 %v1642_v48, %v1642_v48 }
 0x256   : > { %v1969_v16 = vpop.f32.mrf.mxu0  ;;  %v2001_v21 = vpop.f32.mrf.mxu1 }
 0x257   : > { %v1453_v45 = vmul.f32 %v1406_v43, %v1406_v43  ;;  %v1681_v47 = vmul.f32 %v1634_v38, %v1634_v38  ;;  %v1431_v52 = vadd.f32 %v1430_v44, %v1406_v43  ;;  %v1659_v53 = vadd.f32 %v1658_v46, %v1634_v38 }
 0x258   : > { %v1408_v4 = vpop.f32.mrf.mxu0  ;;  %v1636_v9 = vpop.f32.mrf.mxu1  ;;  %v1417_v55 = vadd.f32 %v1969_v16, %v2884_v51  ;;  %v1645_v61 = vadd.f32 %v2001_v21, %v2889_v50 }
 0x259   : > { %v1409_v56 = vadd.f32 %v2884_v51, %v1408_v4  ;;  %v1637_v58 = vadd.f32 %v2889_v50, %v1636_v9  ;;  %v1468_v59 = vadd.f32 %v1467_v11, %v1453_v45  ;;  %v1696_v60 = vadd.f32 %v1695_v40, %v1681_v47 }
 0x25a   : > { %v1456_v7 = vmul.f32 %v1417_v55, %v1417_v55  ;;  %v1684_v54 = vmul.f32 %v1645_v61, %v1645_v61 }
 0x25b   : > { %v1432_v62 = vadd.f32 %v1431_v52, %v1409_v56  ;;  %v1454_v63 = vmul.f32 %v1409_v56, %v1409_v56  ;;  %v1660_v57 = vadd.f32 %v1659_v53, %v1637_v58  ;;  %v1682_v0 = vmul.f32 %v1637_v58, %v1637_v58 }
 0x25d   : > { %v1433_v3 = vadd.f32 %v1432_v62, %v1414_v41  ;;  %v1469_v5 = vadd.f32 %v1468_v59, %v1454_v63  ;;  %v1661_v31 = vadd.f32 %v1660_v57, %v1642_v48  ;;  %v1697_v26 = vadd.f32 %v1696_v60, %v1682_v0 }
 0x25f   : > { %v1434_v6 = vadd.f32 %v1433_v3, %v1417_v55  ;;  %v1470_v10 = vadd.f32 %v1469_v5, %v1455_v1  ;;  %v1662_v12 = vadd.f32 %v1661_v31, %v1645_v61  ;;  %v1698_v51 = vadd.f32 %v1697_v26, %v1683_v2 }
 0x261   : > { %v1435_v50 = vrot.slane %v1434_v6, 4  ;;  %v1471_v49 = vadd.f32 %v1470_v10, %v1456_v7  ;;  %v1663_v13 = vrot.slane %v1662_v12, 4  ;;  %v1699_v14 = vadd.f32 %v1698_v51, %v1684_v54 }
 0x263   : > { %v1436_v8 = vadd.f32 %v1435_v50, %v1434_v6  ;;  %v1472_v15 = vrot.slane %v1471_v49, 4  ;;  %v1664_v17 = vadd.f32 %v1663_v13, %v1662_v12  ;;  %v1700_v19 = vrot.slane %v1699_v14, 4 }
 0x265   : > { %v1437_v20 = vrot.slane %v1436_v8, 2  ;;  %v1473_v23 = vadd.f32 %v1472_v15, %v1471_v49  ;;  %v1665_v25 = vrot.slane %v1664_v17, 2  ;;  %v1701_v27 = vadd.f32 %v1700_v19, %v1699_v14 }
 0x267   : > { %v1438_v29 = vadd.f32 %v1437_v20, %v1436_v8  ;;  %v1474_v22 = vrot.slane %v1473_v23, 2  ;;  %v1666_v18 = vadd.f32 %v1665_v25, %v1664_v17  ;;  %v1702_v24 = vrot.slane %v1701_v27, 2 }
 0x269   : > { %v1439_v28 = vrot.slane %v1438_v29, 1  ;;  %v1475_v30 = vadd.f32 %v1474_v22, %v1473_v23  ;;  %v1667_v42 = vrot.slane %v1666_v18, 1  ;;  %v1703_v36 = vadd.f32 %v1702_v24, %v1701_v27 }
 0x26b   : > { %v1440_v32 = vadd.f32 %v1439_v28, %v1438_v29  ;;  %v1476_v33 = vrot.slane %v1475_v30, 1  ;;  %v1668_v34 = vadd.f32 %v1667_v42, %v1666_v18  ;;  %v1704_v35 = vrot.slane %v1703_v36, 1 }
 0x26d   : > { %v1477_v37 = vadd.f32 %v1476_v33, %v1475_v30  ;;  %1478 = vst [vmem:[%s247_s11] sm:$0xff] %v1440_v32  ;;  %v1705_v39 = vadd.f32 %v1704_v35, %v1703_v36  ;;  %1706 = vst [vmem:[%s247_s11 + $0x8] sm:$0xff] %v1668_v34 }
 0x26f   : > { %1479 = vst [vmem:[%s256_s14] sm:$0xff] %v1477_v37  ;;  %1707 = vst [vmem:[%s256_s14 + $0x8] sm:$0xff] %v1705_v39 }
 0x270 PF: > { %s15_s19 = sadd.s32 1, %s2115_s19   ;;  %s2955_s15 = smov %s2107_s17 }
 0x271   : > { %p12_p7 = scmp.ge.s32.totalorder %s15_s19, 6   ;;  %s2956_s16 = smov %s2111_s18 }
 0x272   : > { %s2957_s17 = smov %s2960_s20  ;;  %s2958_s18 = smov %s2964_s21 }
 0x273   :  { %14 = sbr.rel (!%p12_p7) target bundleno = 3 (0x3), region = 74 }

// kernel: sa_forward.3
= control target key start
LH: loop header
LB: loop body
LE: loop exit
PB: predicated region body
PF: predicated region fallthrough
CT: control target
= control target key end

     0   :  { %s6136_s0 = inlined_call_operand.vmem [shape: bf16[2,2,10,18,8], index: 0, kind: input, shape index: {}]   ;;  %s6137_s1 = inlined_call_operand.vmem [shape: bf16[2,2,10,18,8], index: 1, kind: input, shape index: {}]   ;;  %s6138_s2 = inlined_call_operand.vmem [shape: bf16[128,256], index: 2, kind: input, shape index: {}]   ;;  %s6139_s3 = inlined_call_operand.vmem [shape: f32[1,256], index: 3, kind: input, shape index: {}]   ;;  %s6140_s4 = inlined_call_operand.vmem [shape: bf16[128,512], index: 4, kind: input, shape index: {}]   ;;  %s6141_s5 = inlined_call_operand.vmem [shape: f32[1,512], index: 5, kind: input, shape index: {}]   ;;  %s6142_s6 = inlined_call_operand.vmem [shape: f32[1,256], index: 6, kind: input, shape index: {}]   ;;  %s6143_s7 = inlined_call_operand.vmem [shape: f32[1,256], index: 7, kind: input, shape index: {}]   ;;  %s6144_s8 = inlined_call_operand.hbm [shape: f32[2,16,16,256], index: 8, kind: output, shape index: {}]  }
   0x1   :  { %6164 = sst [smem:[#allocation10_spill]] %s6136_s0 }
   0x2   :  { %6165 = sst [smem:[#allocation11_spill]] %s6137_s1 }
   0x3   :  { %6166 = sst [smem:[#allocation12_spill]] %s6138_s2 }
   0x4   :  { %13 = vsyncpa [#allocation5], 0 }
   0x5   :  { %15 = vsyncpa [#allocation5 + $0x1], 0  ;;  %s4008_s27 = smov 0   ;;  %s4010_s28 = smov 0  }
   0x6   :  { %s4012_s29 = smov 0   ;;  %s4014_s30 = smov 0  }
   0x7   :  { %s4016_s9 = smov 0   ;;  %s4018_s10 = smov 0  }
   0x8   :  { %s4020_s11 = smov 0   ;;  %s4022_s12 = smov 0  }
   0x9 LB: > { %6167 = sst [smem:[#allocation7_spill]] %s3946_s11  ;;  %s3493_s13 = sadd.s32 4294967295, %s3950_s12   ;;  %s3950_s12 = sphi %s4022_s12, %s21_s12   ;;  %s3946_s11 = sphi %s4020_s11, %s6189_s11   ;;  %s3942_s10 = sphi %s4018_s10, %s6194_s10   ;;  %s3938_s9 = sphi %s4016_s9, %s6187_s9   ;;  %s3934_s30 = sphi %s4014_s30, %s6193_s30   ;;  %s3930_s29 = sphi %s4012_s29, %s6192_s29   ;;  %s3926_s28 = sphi %s4010_s28, %s6191_s28   ;;  %s3922_s27 = sphi %s4008_s27, %s6190_s27  }
   0xa   : > { %s3494_s14 = sadd.s32 4294967294, %s3950_s12   ;;  %s30_s15 = sadd.s32 1, %s3942_s10 }
   0xb   : > { %p31_p0 = scmp.ge.s32.totalorder %s30_s15, 2  ;;  %s33_s16 = sadd.s32 1, %s3946_s11 }
   0xc   : > { %p234_p1 = scmp.ne.s32.totalorder %s3930_s29, %s3926_s28  ;;  %p235_p2 = scmp.eq.s32.totalorder %s3493_s13, 3 }
   0xd   : > { %s6196_s15 = smov (%p31_p0, %s30_s15), 0  ;;  %s6198_s16 = smov (!%p31_p0, %s33_s16), %s3946_s11 }
   0xe   : > { %6168 = sst [smem:[#allocation8_spill]] %s6196_s15  ;;  %s220_s17 = ssub.s32 %s3942_s10, %s6196_s15 }
   0xf   : > { %p4059_p3 = por %p235_p2, %p234_p1  ;;  %p35_p4 = scmp.ge.s32.totalorder %s6198_s16, 2 }
  0x10   : > { %p240_p5 = scmp.ne.s32.totalorder %s3926_s28, %s3922_s27  ;;  %p241_p6 = scmp.eq.s32.totalorder %s3494_s14, 3 }
  0x11   : > { %p3497_p7 = scmp.ge.s32.totalorder %s3950_s12, 1  ;;  %s6200_s16 = smov (%p35_p4, %s6198_s16), 0 }
  0x12   : > { %6170 = sst [smem:[#allocation9_spill]] %s6200_s16  ;;  %p4068_p8 = por %p241_p6, %p240_p5 }
  0x13   : > { %p301_p9 = scmp.lt.s32.totalorder %s3950_s12, 5  ;;  %s219_s20 = ssub.s32 %s3946_s11, %s6200_s16 }
  0x14   : > { %s224_s21 = sadd.s32 1, %s3930_s29  ;;  %s221_s22 = sor.u32 %s220_s17, %s219_s20 }
  0x15   : > { %p302_p10 = pnand %p3497_p7, %p301_p9  ;;  %p222_p11 = scmp.eq.s32.totalorder %s221_s22, 0 }
  0x16   : > { %p348_p12 = scmp.lt.s32.totalorder (!%p302_p10), %s3938_s9, 1  ;;  %p350_p13 = scmp.lt.s32.totalorder (!%p302_p10), %s3934_s30, 1 }
  0x17   : > { %s4077_s23 = scalar_select %p222_p11, %s3930_s29, %s224_s21  }
  0x18   : > { %305 = sbr.rel (%p302_p10) target bundleno = 903 (0x387), region = 52  ;;  %s6172_s0 = sld [smem:[#allocation10_spill]] (!%p302_p10) }
  0x19   : > { %s6177_s1 = sld [smem:[#allocation11_spill]] (!%p302_p10)  ;;  %s6155_s20 = smov (!%p302_p10), 56  }
  0x1a   : > { %s6153_s21 = smov (!%p302_p10), 64   ;;  %s6179_s2 = sld [smem:[#allocation12_spill]] (!%p302_p10) }
  0x1b   : > { %s6186_s15 = smov (!%p302_p10), 56  }
  0x1d   : > { %s349_s24 = scalar_select %p348_p12, %s3938_s9, 1  ;;  %vm415_vm0 = vsmask.f32 3328  ;;  %vm416_vm1 = vsmask.f32 7440  ;;  %vm398_vm2 = vcmask 60416  }
  0x1e   : > { %s351_s25 = scalar_select %p350_p13, %s3934_s30, 1  ;;  %vm4140_vm3 = vmor %vm415_vm0, %vm416_vm1  ;;  %vm699_vm4 = vcmask 1042432   ;;  %vm700_vm5 = vcmask 1046532   ;;  %vm658_vm7 = vcmask 126016   ;;  %vm806_vm8 = vcmask 191616  }
  0x1f   : > { %s3696_s26 = smul.u32 60, %s349_s24  ;;  %s6149_s24 = smov 8   ;;  %vm4316_vm6 = vmor %vm699_vm4, %vm700_vm5  ;;  %vm873_vm9 = vcmask 257216   ;;  %vm962_vm10 = vcmask 322816   ;;  %vm1035_vm11 = vcmask 388416   ;;  %vm1102_vm12 = vcmask 454016  }
  0x20   : > { %s3695_s13 = smul.u32 30, %s351_s25  ;;  %s6147_s25 = smov 16   ;;  %vm1191_vm13 = vcmask 519616   ;;  %vm1264_vm14 = vcmask 585216   ;;  %vm1281_vm15 = vcmask 1044032  }
  0x22   : > { %s4083_s14 = sadd.s32 %s3696_s26, %s3695_s13  ;;  %s6145_s26 = smov 24  }
  0x23   : > { %s3499_s17 = sshll.u32 %s4083_s14, 2  ;;  %s6151_s13 = smov 32  }
  0x24   : > { %s4091_s22 = scalar_lea.vmem %s6172_s0, %s3499_s17  ;;  %s6159_s14 = smov 40  }
  0x25   : > { %v4094_v0 = vld [vmem:[%s4091_s22 + $0xc] sm:$0xf]  ;;  %v4097_v1 = vld [vmem:[%s4091_s22 + $0x10] sm:$0xf]  ;;  %v4100_v2 = vld [vmem:[%s4091_s22] sm:$0xf] }
  0x26   : > { %v443_v3 = vshrl.u32 %v4094_v0, 16  ;;  %v446_v4 = vshll.u32 %v4094_v0, 16  ;;  %v452_v5 = vshll.u32 %v4097_v1, 16  ;;  %v4106_v6 = vld [vmem:[%s4091_s22 + $0x4] sm:$0xf]  ;;  %v419_v7 = vshrl.u32 %v4100_v2, 16 }
  0x27   : > { %401 = vst.msk [vmem:[#allocation2 + $0x8] sm:$0xf] %vm398_vm2, %v4094_v0  ;;  %399 = vst.msk [vmem:[#allocation2] sm:$0xf] %vm398_vm2, %v4100_v2  ;;  %v422_v8 = vshll.u32 %v4100_v2, 16  ;;  %v428_v9 = vshll.u32 %v4106_v6, 16 }
  0x28   : > { %402 = vst.msk [vmem:[#allocation2 + $0xc] sm:$0xf] %vm398_vm2, %v4097_v1  ;;  %v4118_v10 = vld [vmem:[%s4091_s22 + $0x14] sm:$0x1]  ;;  %v456_v11 = vshrl.u32 %v4097_v1, 16  ;;  %v432_v12 = vshrl.u32 %v4106_v6, 16 }
  0x29   : > { %400 = vst.msk [vmem:[#allocation2 + $0x4] sm:$0xf] %vm398_vm2, %v4106_v6  ;;  %v445_v13 = vrot.slane %v443_v3, 4  ;;  %v448_v14 = vrot.slane %v446_v4, 5  ;;  %v454_v15 = vrot.slane %v452_v5, 5  ;;  %v421_v16 = vrot.slane %v419_v7, 4 }
  0x2a   : > { %v4125_v17 = vld [vmem:[%s4091_s22 + $0x8] sm:$0x1]  ;;  %v424_v18 = vrot.slane %v422_v8, 5  ;;  %v430_v19 = vrot.slane %v428_v9, 5  ;;  %v458_v20 = vrot.slane %v456_v11, 4  ;;  %v462_v21 = vshll.u32 %v4118_v10, 16 }
  0x2b   : > { %v4129_v22 = vld [vmem:[%s4091_s22 + $0x1c] sm:$0xf]  ;;  %v449_v23 = vor.u32 %v448_v14, %v445_v13  ;;  %v434_v24 = vrot.slane %v432_v12, 4  ;;  %v438_v25 = vshll.u32 %v4125_v17, 16  ;;  %v4133_v26 = vld [vmem:[%s4091_s22 + $0x20] sm:$0x1] }
  0x2c   : > { %v476_v27 = vshll.u32 %v4129_v22, 16  ;;  %404 = vst.msk [vmem:[#allocation2 + $0x14] sm:$0xf] %vm398_vm2, %v4129_v22  ;;  %v425_v29 = vor.u32 %v424_v18, %v421_v16  ;;  %v459_v30 = vor.u32 %v458_v20, %v454_v15  ;;  %v464_v31 = vrot.slane %v462_v21, 5  ;;  %v4146_v33 = vld [vmem:[%s4091_s22 + $0x18] sm:$0xf] }
  0x2d   : > { %v480_v32 = vshrl.u32 %v4129_v22, 16  ;;  %v4149_v34 = vld [vmem:[%s4091_s22 + $0x28] sm:$0xf]  ;;  %v450_v35 = vrot.slane %v449_v23, 4  ;;  %v435_v36 = vor.u32 %v434_v24, %v430_v19  ;;  %v440_v37 = vrot.slane %v438_v25, 5  ;;  %s6184_s0 = smov 40  }
  0x2e   : > { %v478_v38 = vrot.slane %v476_v27, 5  ;;  %v4152_v39 = vld [vmem:[%s4091_s22 + $0x2c] sm:$0x1]  ;;  %403 = vst.msk [vmem:[#allocation2 + $0x10] sm:$0xf] %vm398_vm2, %v4146_v33  ;;  %v426_v40 = vrot.slane %v425_v29, 4 }
  0x2f   : > { %406 = vst.msk [vmem:[#allocation2 + $0x1c] sm:$0xf] %vm398_vm2, %v4149_v34  ;;  %v460_v41 = vrot.slane %v459_v30, 4  ;;  %v482_v42 = vrot.slane %v480_v32, 4  ;;  %v486_v43 = vshll.u32 %v4133_v26, 16  ;;  %v4164_v45 = vsel %vm4140_vm3, %v450_v35, %v454_v15 }
  0x30   : > { %v4160_v44 = vld [vmem:[%s4091_s22 + $0x24] sm:$0xf]  ;;  %v436_v46 = vrot.slane %v435_v36, 4  ;;  %v467_v47 = vshrl.u32 %v4146_v33, 16  ;;  %v470_v48 = vshll.u32 %v4146_v33, 16  ;;  %614 = vrot.lane.b32.xlu1 %v4164_v45, %s6149_s24  ;;  %v431_v50 = vsel %vm4140_vm3, %v426_v40, %v430_v19 }
  0x31   : > { %v4169_v49 = vld [vmem:[%s4091_s22 + $0x34] sm:$0xf]  ;;  %405 = vst.msk [vmem:[#allocation2 + $0x18] sm:$0xf] %vm398_vm2, %v4160_v44  ;;  %v4179_v51 = vsel %vm4140_vm3, %v460_v41, %v464_v31  ;;  %v483_v52 = vor.u32 %v482_v42, %v478_v38  ;;  %v488_v53 = vrot.slane %v486_v43, 5  ;;  %610 = vrot.lane.b32.xlu0 %v431_v50, %s6149_s24  ;;  %v500_v58 = vshll.u32 %v4149_v34, 16 }
  0x32   : > { %v4182_v54 = vld [vmem:[%s4091_s22 + $0x30] sm:$0xf]  ;;  %408 = vst.msk [vmem:[#allocation2 + $0x24] sm:$0xf] %vm398_vm2, %v4169_v49  ;;  %v441_v55 = vsel %vm4140_vm3, %v436_v46, %v440_v37  ;;  %v469_v56 = vrot.slane %v467_v47, 4  ;;  %v472_v57 = vrot.slane %v470_v48, 5 }
  0x33   : > { %v4191_v59 = vld [vmem:[%s4091_s22 + $0x40] sm:$0xf]  ;;  %407 = vst.msk [vmem:[#allocation2 + $0x20] sm:$0xf] %vm398_vm2, %v4182_v54  ;;  %v484_v60 = vrot.slane %v483_v52, 4  ;;  %v504_v61 = vshrl.u32 %v4149_v34, 16 }
  0x34   : > { %v510_v62 = vshll.u32 %v4152_v39, 16  ;;  %v491_v63 = vshrl.u32 %v4160_v44, 16  ;;  %v4199_v3 = vld [vmem:[%s4091_s22 + $0x38] sm:$0x1]  ;;  %410 = vst.msk [vmem:[#allocation2 + $0x2c] sm:$0xf] %vm398_vm2, %v4191_v59  ;;  %v473_v4 = vor.u32 %v472_v57, %v469_v56  ;;  %616 = vrot.lane.b32.xlu1 %v4179_v51, %s6149_s24 }
  0x35   : > { %v502_v5 = vrot.slane %v500_v58, 5  ;;  %v494_v7 = vshll.u32 %v4160_v44, 16  ;;  %v524_v8 = vshll.u32 %v4169_v49, 16  ;;  %v4206_v9 = vld [vmem:[%s4091_s22 + $0x3c] sm:$0xf]  ;;  %v4212_v11 = vsel %vm4140_vm3, %v484_v60, %v488_v53  ;;  %612 = vrot.lane.b32.xlu0 %v441_v55, %s6149_s24 }
  0x36   : > { %v506_v12 = vrot.slane %v504_v61, 4  ;;  %v512_v13 = vrot.slane %v510_v62, 5  ;;  %v493_v14 = vrot.slane %v491_v63, 4  ;;  %v4215_v15 = vld [vmem:[%s4091_s22 + $0x4c] sm:$0xf]  ;;  %v474_v16 = vrot.slane %v473_v4, 4 }
  0x37   : > { %409 = vst.msk [vmem:[#allocation2 + $0x28] sm:$0xf] %vm398_vm2, %v4206_v9  ;;  %v496_v18 = vrot.slane %v494_v7, 5  ;;  %v526_v19 = vrot.slane %v524_v8, 5  ;;  %v528_v20 = vshrl.u32 %v4169_v49, 16  ;;  %v534_v23 = vshll.u32 %v4199_v3, 16 }
  0x38   : > { %412 = vst.msk [vmem:[#allocation2 + $0x34] sm:$0xf] %vm398_vm2, %v4215_v15  ;;  %v507_v21 = vor.u32 %v506_v12, %v502_v5  ;;  %v515_v24 = vshrl.u32 %v4182_v54, 16  ;;  %v518_v25 = vshll.u32 %v4182_v54, 16  ;;  %v4227_v27 = vld [vmem:[%s4091_s22 + $0x48] sm:$0xf]  ;;  %v4231_v29 = vsel %vm4140_vm3, %v474_v16, %v478_v38  ;;  %620 = vrot.lane.b32.xlu1 %v4212_v11, %s6149_s24 }
  0x39   : > { %v497_v30 = vor.u32 %v496_v18, %v493_v14  ;;  %v530_v31 = vrot.slane %v528_v20, 4  ;;  %v4234_v32 = vld [vmem:[%s4091_s22 + $0x44] sm:$0x1]  ;;  %v548_v35 = vshll.u32 %v4191_v59, 16  ;;  %v4238_v36 = vld [vmem:[%s4091_s22 + $0x58] sm:$0xf]  ;;  %618 = vrot.lane.b32.xlu0 %v4231_v29, %s6149_s24 }
  0x3a   : > { %411 = vst.msk [vmem:[#allocation2 + $0x30] sm:$0xf] %vm398_vm2, %v4227_v27  ;;  %v508_v37 = vrot.slane %v507_v21, 4  ;;  %v536_v40 = vrot.slane %v534_v23, 5  ;;  %v517_v41 = vrot.slane %v515_v24, 4  ;;  %v520_v38 = vrot.slane %v518_v25, 5 }
  0x3b   : > { %v4245_v42 = vld [vmem:[%s4091_s22 + $0x54] sm:$0xf]  ;;  %414 = vst.msk [vmem:[#allocation2 + $0x3c] sm:$0xf] %vm398_vm2, %v4238_v36  ;;  %v498_v43 = vrot.slane %v497_v30, 4  ;;  %v531_v46 = vor.u32 %v530_v31, %v526_v19  ;;  %v550_v47 = vrot.slane %v548_v35, 5 }
  0x3c   : > { %v552_v48 = vshrl.u32 %v4191_v59, 16  ;;  %413 = vst.msk [vmem:[#allocation2 + $0x38] sm:$0xf] %vm398_vm2, %v4245_v42  ;;  %v4256_v50 = vsel %vm4140_vm3, %v508_v37, %v512_v13  ;;  %v521_v52 = vor.u32 %v520_v38, %v517_v41  ;;  %v558_v53 = vshll.u32 %v4234_v32, 16  ;;  %v4261_v56 = vld [vmem:[%s4091_s22 + $0x50] sm:$0x1] }
  0x3d   : > { %v539_v55 = vshrl.u32 %v4206_v9, 16  ;;  %v4265_v57 = vsel %vm4140_vm3, %v498_v43, %v502_v5  ;;  %v532_v58 = vrot.slane %v531_v46, 4  ;;  %v542_v61 = vshll.u32 %v4206_v9, 16  ;;  %624 = vrot.lane.b32.xlu1 %v4256_v50, %s6149_s24  ;;  %v4279_v14 = vld [vmem:[%s4091_s22 + $0x5c] sm:$0x1] }
  0x3e   : > { %v554_v60 = vrot.slane %v552_v48, 4  ;;  %v522_v62 = vrot.slane %v521_v52, 4  ;;  %v560_v63 = vrot.slane %v558_v53, 5  ;;  %v572_v7 = vshll.u32 %v4215_v15, 16  ;;  %622 = vrot.lane.b32.xlu0 %v4265_v57, %s6149_s24 }
  0x3f   : > { %v541_v4 = vrot.slane %v539_v55, 4  ;;  %v4275_v5 = vsel %vm4140_vm3, %v532_v58, %v536_v40  ;;  %v544_v12 = vrot.slane %v542_v61, 5  ;;  %v576_v13 = vshrl.u32 %v4215_v15, 16 }
  0x40   : > { %v555_v8 = vor.u32 %v554_v60, %v550_v47  ;;  %v4283_v16 = vsel %vm4140_vm3, %v522_v62, %v526_v19  ;;  %v574_v18 = vrot.slane %v572_v7, 5  ;;  %v582_v20 = vshll.u32 %v4261_v56, 16 }
  0x41   : > { %v563_v21 = vshrl.u32 %v4227_v27, 16  ;;  %v545_v24 = vor.u32 %v544_v12, %v541_v4  ;;  %v578_v25 = vrot.slane %v576_v13, 4  ;;  %v566_v30 = vshll.u32 %v4227_v27, 16  ;;  %628 = vrot.lane.b32.xlu1 %v4275_v5, %s6149_s24 }
  0x42   : > { %v556_v23 = vrot.slane %v555_v8, 4  ;;  %v584_v31 = vrot.slane %v582_v20, 5  ;;  %v596_v37 = vshll.u32 %v4238_v36, 16  ;;  %v600_v19 = vshrl.u32 %v4238_v36, 16  ;;  %626 = vrot.lane.b32.xlu0 %v4283_v16, %s6149_s24 }
  0x43   : > { %v565_v35 = vrot.slane %v563_v21, 4  ;;  %v546_v41 = vrot.slane %v545_v24, 4  ;;  %v579_v38 = vor.u32 %v578_v25, %v574_v18  ;;  %v568_v43 = vrot.slane %v566_v30, 5 }
  0x44   : > { %v4296_v40 = vsel %vm4140_vm3, %v556_v23, %v560_v63  ;;  %v598_v46 = vrot.slane %v596_v37, 5  ;;  %v602_v48 = vrot.slane %v600_v19, 4  ;;  %v606_v52 = vshll.u32 %v4279_v14, 16 }
  0x45   : > { %v587_v53 = vshrl.u32 %v4245_v42, 16  ;;  %v4302_v55 = vsel %vm4140_vm3, %v546_v41, %v550_v47  ;;  %v580_v58 = vrot.slane %v579_v38, 4  ;;  %v569_v60 = vor.u32 %v568_v43, %v565_v35  ;;  %632 = vrot.lane.b32.xlu1 %v4296_v40, %s6149_s24 }
  0x46   : > { %v590_v61 = vshll.u32 %v4245_v42, 16  ;;  %v603_v62 = vor.u32 %v602_v48, %v598_v46  ;;  %v608_v63 = vrot.slane %v606_v52, 5  ;;  %630 = vrot.lane.b32.xlu0 %v4302_v55, %s6149_s24  ;;  %v704_v12 = vrot.slane %v4106_v6, 5 }
  0x47   : > { %v589_v4 = vrot.slane %v587_v53, 4  ;;  %v4311_v7 = vsel %vm4140_vm3, %v580_v58, %v584_v31  ;;  %v570_v8 = vrot.slane %v569_v60, 4  ;;  %v707_v24 = vrot.slane %v4125_v17, 5 }
  0x48   : > { %v592_v47 = vrot.slane %v590_v61, 5  ;;  %v604_v13 = vrot.slane %v603_v62, 4  ;;  %v706_v30 = vrot.slane %v704_v12, 4  ;;  %v711_v31 = vrot.slane %v4097_v1, 5 }
  0x49   : > { %v4322_v21 = vsel %vm4140_vm3, %v570_v8, %v574_v18  ;;  %636 = vrot.lane.b32.xlu1 %v4311_v7, %s6149_s24  ;;  %v3501_v18 = vrot.slane %v4100_v2, 9  ;;  %v714_v19 = vrot.slane %v4118_v10, 5  ;;  %v718_v41 = vrot.slane %v4129_v22, 5 }
  0x4a   : > { %v593_v23 = vor.u32 %v592_v47, %v589_v4  ;;  %634 = vrot.lane.b32.xlu0 %v4322_v21, %s6149_s24  ;;  %v4331_v6 = vsel %vm4140_vm3, %v604_v13, %v608_v63  ;;  %v708_v17 = vsel %vm4316_vm6, %v706_v30, %v707_v24  ;;  %v713_v37 = vrot.slane %v711_v31, 4 }
  0x4b   : > { %v705_v2 = vsel %vm4316_vm6, %v3501_v18, %v704_v12  ;;  %v3502_v38 = vrot.slane %v4094_v0, 9  ;;  %v721_v48 = vrot.slane %v4133_v26, 5  ;;  %v725_v10 = vrot.slane %v4149_v34, 5 }
  0x4c   : > { %v594_v25 = vrot.slane %v593_v23, 4  ;;  %v4354_v43 = vsel %vm4316_vm6, %v713_v37, %v714_v19  ;;  %v3503_v53 = vrot.slane %v4146_v33, 9  ;;  %v728_v26 = vrot.slane %v4152_v39, 5 }
  0x4d   : > { %640 = vrot.lane.b32.xlu1 %v4331_v6, %s6149_s24  ;;  %v4360_v52 = vsel %vm4316_vm6, %v3502_v38, %v711_v31  ;;  %v727_v60 = vrot.slane %v725_v10, 4  ;;  %v732_v61 = vrot.slane %v4169_v49, 5  ;;  %v3504_v63 = vrot.slane %v4160_v44, 9 }
  0x4e   : > { %v4337_v35 = vsel %vm4140_vm3, %v594_v25, %v598_v46  ;;  %v720_v46 = vrot.slane %v718_v41, 4  ;;  %v4375_v62 = vsel %vm4316_vm6, %v3503_v53, %v718_v41  ;;  %v735_v39 = vrot.slane %v4199_v3, 5 }
  0x4f   : > { %638 = vrot.lane.b32.xlu0 %v4337_v35, %s6149_s24  ;;  %v4384_v4 = vsel %vm4316_vm6, %v727_v60, %v728_v26  ;;  %v734_v8 = vrot.slane %v732_v61, 4  ;;  %v739_v47 = vrot.slane %v4191_v59, 5  ;;  %v4390_v12 = vsel %vm4316_vm6, %v3504_v63, %v725_v10  ;;  %v4512_v63 = vld [vmem:[%s4091_s22 + $0x68] sm:$0x1] }
  0x50   : > { %v4369_v58 = vsel %vm4316_vm6, %v720_v46, %v721_v48  ;;  %v3505_v13 = vrot.slane %v4182_v54, 9  ;;  %v742_v3 = vrot.slane %v4234_v32, 5  ;;  %v746_v25 = vrot.slane %v4215_v15, 5 }
  0x51   : > { %760 = vrot.lane.b32.xlu1 %v708_v17, %s6147_s25  ;;  %v4399_v23 = vsel %vm4316_vm6, %v734_v8, %v735_v39  ;;  %v741_v24 = vrot.slane %v739_v47, 4  ;;  %v3506_v31 = vrot.slane %v4206_v9, 9  ;;  %v749_v32 = vrot.slane %v4261_v56, 5 }
  0x52   : > { %v4405_v30 = vsel %vm4316_vm6, %v3505_v13, %v732_v61  ;;  %v748_v17 = vrot.slane %v746_v25, 4  ;;  %v753_v37 = vrot.slane %v4238_v36, 5  ;;  %v3507_v41 = vrot.slane %v4227_v27, 9 }
  0x53   : > { %758 = vrot.lane.b32.xlu0 %v705_v2, %s6147_s25  ;;  %v4414_v18 = vsel %vm4316_vm6, %v741_v24, %v742_v3  ;;  %v4420_v19 = vsel %vm4316_vm6, %v3506_v31, %v739_v47  ;;  %v756_v56 = vrot.slane %v4279_v14, 5  ;;  %v3508_v48 = vrot.slane %v4245_v42, 9 }
  0x54   : > { %v4429_v2 = vsel %vm4316_vm6, %v748_v17, %v749_v32  ;;  %v755_v38 = vrot.slane %v753_v37, 4  ;;  %v4434_v46 = vsel %vm4316_vm6, %v3507_v41, %v746_v25  ;;  %v910_v13 = vshll.u32 %v4512_v63, 16 }
  0x55   : > { %764 = vrot.lane.b32.xlu1 %v4354_v43, %s6147_s25  ;;  %v4447_v53 = vsel %vm4316_vm6, %v3508_v48, %v753_v37 }
  0x56   : > { %v4443_v10 = vsel %vm4316_vm6, %v755_v38, %v756_v56  ;;  %v912_v17 = vrot.slane %v910_v13, 5 }
  0x57   : > { %762 = vrot.lane.b32.xlu0 %v4360_v52, %s6147_s25 }
  0x59   : > { %768 = vrot.lane.b32.xlu1 %v4369_v58, %s6147_s25 }
  0x5b   : > { %766 = vrot.lane.b32.xlu0 %v4375_v62, %s6147_s25 }
  0x5d   : > { %772 = vrot.lane.b32.xlu1 %v4384_v4, %s6147_s25 }
  0x5f   : > { %770 = vrot.lane.b32.xlu0 %v4390_v12, %s6147_s25 }
  0x61   : > { %776 = vrot.lane.b32.xlu1 %v4399_v23, %s6147_s25 }
  0x63   : > { %774 = vrot.lane.b32.xlu0 %v4405_v30, %s6147_s25 }
  0x65   : > { %780 = vrot.lane.b32.xlu1 %v4414_v18, %s6147_s25 }
  0x67   : > { %778 = vrot.lane.b32.xlu0 %v4420_v19, %s6147_s25 }
  0x69   : > { %784 = vrot.lane.b32.xlu1 %v4429_v2, %s6147_s25 }
  0x6b   : > { %782 = vrot.lane.b32.xlu0 %v4434_v46, %s6147_s25 }
  0x6d   : > { %788 = vrot.lane.b32.xlu1 %v4443_v10, %s6147_s25 }
  0x6f   : > { %786 = vrot.lane.b32.xlu0 %v4447_v53, %s6147_s25 }
  0x71   : > { %827 = vrot.lane.b32.xlu1 %v4097_v1, %s6145_s26  ;;  %v4485_v1 = vld [vmem:[%s4091_s22 + $0x60] sm:$0xf] }
  0x73   : > { %825 = vrot.lane.b32.xlu0 %v4094_v0, %s6145_s26  ;;  %v4482_v0 = vld [vmem:[%s4091_s22 + $0x64] sm:$0xf] }
  0x74   : > { %v900_v14 = vshll.u32 %v4482_v0, 16  ;;  %v904_v60 = vshrl.u32 %v4482_v0, 16 }
  0x75   : > { %831 = vrot.lane.b32.xlu1 %v4129_v22, %s6145_s26 }
  0x76   : > { %v902_v26 = vrot.slane %v900_v14, 5  ;;  %v906_v61 = vrot.slane %v904_v60, 4 }
  0x77   : > { %829 = vrot.lane.b32.xlu0 %v4146_v33, %s6145_s26 }
  0x78   : > { %v907_v47 = vor.u32 %v906_v61, %v902_v26 }
  0x79   : > { %835 = vrot.lane.b32.xlu1 %v4149_v34, %s6145_s26 }
  0x7a   : > { %v908_v31 = vrot.slane %v907_v47, 4 }
  0x7b   : > { %833 = vrot.lane.b32.xlu0 %v4160_v44, %s6145_s26 }
  0x7c   : > { %v4547_v60 = vsel %vm4140_vm3, %v908_v31, %v912_v17 }
  0x7d   : > { %839 = vrot.lane.b32.xlu1 %v4169_v49, %s6145_s26 }
  0x7f   : > { %837 = vrot.lane.b32.xlu0 %v4182_v54, %s6145_s26 }
  0x81   : > { %843 = vrot.lane.b32.xlu1 %v4191_v59, %s6145_s26 }
  0x83   : > { %841 = vrot.lane.b32.xlu0 %v4206_v9, %s6145_s26 }
  0x85   : > { %847 = vrot.lane.b32.xlu1 %v4215_v15, %s6145_s26 }
  0x87   : > { %845 = vrot.lane.b32.xlu0 %v4227_v27, %s6145_s26 }
  0x89   : > { %851 = vrot.lane.b32.xlu1 %v4238_v36, %s6145_s26 }
  0x8b   : > { %849 = vrot.lane.b32.xlu0 %v4245_v42, %s6145_s26 }
  0x8d   : > { %855 = vrot.lane.b32.xlu1 %v4482_v0, %s6145_s26 }
  0x8f   : > { %853 = vrot.lane.b32.xlu0 %v4485_v1, %s6145_s26  ;;  %s4530_s26 = scalar_lea.vmem %s6177_s1, %s3499_s17  ;;  %s6157_s17 = smov 48  }
  0x90   : > { %v4534_v38 = vld [vmem:[%s4530_s26 + $0x4] sm:$0xf]  ;;  %v1314_v56 = vld [vmem:[%s4530_s26] sm:$0xf] }
  0x91   : > { %916 = vrot.lane.b32.xlu1 %v4179_v51, %s6151_s13  ;;  %v891_v51 = vshrl.u32 %v4485_v1, 16  ;;  %1345 = vst.msk [vmem:[#allocation3 + $0x4] sm:$0xf] %vm398_vm2, %v4534_v38  ;;  %v1361_v48 = vshrl.u32 %v1314_v56, 16  ;;  %v1364_v14 = vshll.u32 %v1314_v56, 16 }
  0x92   : > { %1344 = vst.msk [vmem:[#allocation3] sm:$0xf] %vm398_vm2, %v1314_v56 }
  0x93   : > { %914 = vrot.lane.b32.xlu0 %v4164_v45, %s6151_s13  ;;  %v894_v45 = vshll.u32 %v4485_v1, 16  ;;  %v893_v8 = vrot.slane %v891_v51, 4  ;;  %v1366_v47 = vrot.slane %v1364_v14, 5  ;;  %v4580_v14 = vld [vmem:[%s4530_s26 + $0xc] sm:$0xf] }
  0x94   : > { %1346 = vst.msk [vmem:[#allocation3 + $0x8] sm:$0xf] %vm398_vm2, %v4580_v14 }
  0x95   : > { %920 = vrot.lane.b32.xlu1 %v4212_v11, %s6151_s13  ;;  %v896_v39 = vrot.slane %v894_v45, 5 }
  0x97   : > { %918 = vrot.lane.b32.xlu0 %v4231_v29, %s6151_s13  ;;  %v897_v3 = vor.u32 %v896_v39, %v893_v8  ;;  %v1370_v8 = vshll.u32 %v4534_v38, 16  ;;  %v1363_v39 = vrot.slane %v1361_v48, 4  ;;  %v4577_v48 = vld [vmem:[%s4530_s26 + $0x10] sm:$0xf] }
  0x98   : > { %1347 = vst.msk [vmem:[#allocation3 + $0xc] sm:$0xf] %vm398_vm2, %v4577_v48 }
  0x99   : > { %924 = vrot.lane.b32.xlu1 %v4256_v50, %s6151_s13  ;;  %v898_v37 = vrot.slane %v897_v3, 4  ;;  %v1367_v13 = vor.u32 %v1366_v47, %v1363_v39  ;;  %v4561_v3 = vrot.slane %v1370_v8, 5  ;;  %v4611_v47 = vld [vmem:[%s4530_s26 + $0x1c] sm:$0xf] }
  0x9a   : > { %1349 = vst.msk [vmem:[#allocation3 + $0x14] sm:$0xf] %vm398_vm2, %v4611_v47 }
  0x9b   : > { %922 = vrot.lane.b32.xlu0 %v4265_v57, %s6151_s13  ;;  %v4551_v45 = vsel %vm4140_vm3, %v898_v37, %v902_v26  ;;  %v3511_v37 = vrot.slane %v1314_v56, 9 }
  0x9d   : > { %928 = vrot.lane.b32.xlu1 %v4275_v5, %s6151_s13 }
  0x9f   : > { %926 = vrot.lane.b32.xlu0 %v4283_v16, %s6151_s13 }
  0xa1   : > { %932 = vrot.lane.b32.xlu1 %v4296_v40, %s6151_s13 }
  0xa2   : > { %v615_v24 = vpop.permute.xlu1 %614 }
  0xa3   : > { %930 = vrot.lane.b32.xlu0 %v4302_v55, %s6151_s13  ;;  %661 = vst.msk [vmem:[#allocation2 + $0x8] sm:$0xf] %vm658_vm7, %v615_v24  ;;  %v611_v25 = vpop.permute.xlu0 %610 }
  0xa4   : > { %659 = vst.msk [vmem:[#allocation2] sm:$0xf] %vm658_vm7, %v611_v25  ;;  %v4563_v25 = vrot.slane %v1367_v13, 4  ;;  %v4614_v13 = vld [vmem:[%s4530_s26 + $0x18] sm:$0xf] }
  0xa5   : > { %936 = vrot.lane.b32.xlu1 %v4311_v7, %s6151_s13  ;;  %1348 = vst.msk [vmem:[#allocation3 + $0x10] sm:$0xf] %vm398_vm2, %v4614_v13 }
  0xa6   : > { %v617_v32 = vpop.permute.xlu1 %616  ;;  %v1373_v31 = vsel %vm4140_vm3, %v4563_v25, %v4561_v3  ;;  %v1418_v25 = vshll.u32 %v4611_v47, 16 }
  0xa7   : > { %934 = vrot.lane.b32.xlu0 %v4322_v21, %s6151_s13  ;;  %662 = vst.msk [vmem:[#allocation2 + $0xc] sm:$0xf] %vm658_vm7, %v617_v32  ;;  %v613_v41 = vpop.permute.xlu0 %612  ;;  %v1642_v32 = vrot.slane %v4534_v38, 5 }
  0xa8   : > { %660 = vst.msk [vmem:[#allocation2 + $0x4] sm:$0xf] %vm658_vm7, %v613_v41 }
  0xa9   : > { %940 = vrot.lane.b32.xlu1 %v4331_v6, %s6151_s13 }
  0xaa   : > { %v621_v51 = vpop.permute.xlu1 %620 }
  0xab   : > { %938 = vrot.lane.b32.xlu0 %v4337_v35, %s6151_s13  ;;  %664 = vst.msk [vmem:[#allocation2 + $0x14] sm:$0xf] %vm658_vm7, %v621_v51  ;;  %v619_v61 = vpop.permute.xlu0 %618 }
  0xac   : > { %663 = vst.msk [vmem:[#allocation2 + $0x10] sm:$0xf] %vm658_vm7, %v619_v61 }
  0xad   : > { %944 = vrot.lane.b32.xlu1 %v4547_v60, %s6151_s13 }
  0xaf   : > { %942 = vrot.lane.b32.xlu0 %v4551_v45, %s6151_s13  ;;  %v625_v24 = vpop.permute.xlu1 %624 }
  0xb0   : > { %666 = vst.msk [vmem:[#allocation2 + $0x1c] sm:$0xf] %vm658_vm7, %v625_v24  ;;  %v623_v26 = vpop.permute.xlu0 %622 }
  0xb1   : > { %665 = vst.msk [vmem:[#allocation2 + $0x18] sm:$0xf] %vm658_vm7, %v623_v26  ;;  %989 = vrot.lane.b32.xlu1 %v4354_v43, %s6159_s14  ;;  %v4589_v43 = vsel %vm4316_vm6, %v3511_v37, %v1642_v32 }
  0xb3   : > { %987 = vrot.lane.b32.xlu0 %v4360_v52, %s6159_s14  ;;  %v629_v17 = vpop.permute.xlu1 %628 }
  0xb4   : > { %668 = vst.msk [vmem:[#allocation2 + $0x24] sm:$0xf] %vm658_vm7, %v629_v17  ;;  %v627_v41 = vpop.permute.xlu0 %626 }
  0xb5   : > { %667 = vst.msk [vmem:[#allocation2 + $0x20] sm:$0xf] %vm658_vm7, %v627_v41  ;;  %993 = vrot.lane.b32.xlu1 %v4369_v58, %s6159_s14 }
  0xb7   : > { %991 = vrot.lane.b32.xlu0 %v4375_v62, %s6159_s14  ;;  %v633_v52 = vpop.permute.xlu1 %632 }
  0xb8   : > { %670 = vst.msk [vmem:[#allocation2 + $0x2c] sm:$0xf] %vm658_vm7, %v633_v52  ;;  %v631_v56 = vpop.permute.xlu0 %630  ;;  %v4672_v52 = vld [vmem:[%s4530_s26 + $0x24] sm:$0xf] }
  0xb9   : > { %669 = vst.msk [vmem:[#allocation2 + $0x28] sm:$0xf] %vm658_vm7, %v631_v56  ;;  %997 = vrot.lane.b32.xlu1 %v4384_v4, %s6159_s14 }
  0xba   : > { %1350 = vst.msk [vmem:[#allocation3 + $0x18] sm:$0xf] %vm398_vm2, %v4672_v52 }
  0xbb   : > { %995 = vrot.lane.b32.xlu0 %v4390_v12, %s6159_s14  ;;  %v637_v51 = vpop.permute.xlu1 %636 }
  0xbc   : > { %672 = vst.msk [vmem:[#allocation2 + $0x34] sm:$0xf] %vm658_vm7, %v637_v51  ;;  %v635_v61 = vpop.permute.xlu0 %634 }
  0xbd   : > { %671 = vst.msk [vmem:[#allocation2 + $0x30] sm:$0xf] %vm658_vm7, %v635_v61  ;;  %1001 = vrot.lane.b32.xlu1 %v4399_v23, %s6159_s14 }
  0xbf   : > { %999 = vrot.lane.b32.xlu0 %v4405_v30, %s6159_s14  ;;  %v641_v8 = vpop.permute.xlu1 %640 }
  0xc0   : > { %674 = vst.msk [vmem:[#allocation2 + $0x3c] sm:$0xf] %vm658_vm7, %v641_v8 }
  0xc1   : > { %v639_v39 = vpop.permute.xlu0 %638  ;;  %1054 = vrot.lane.b32.xlu1 %v4146_v33, %s6157_s17 }
  0xc2   : > { %673 = vst.msk [vmem:[#allocation2 + $0x38] sm:$0xf] %vm658_vm7, %v639_v39  ;;  %v4730_v39 = vld [vmem:[%s4530_s26 + $0x30] sm:$0xf] }
  0xc3   : > { %1003 = vrot.lane.b32.xlu0 %v4420_v19, %s6159_s14  ;;  %v761_v24 = vpop.permute.xlu1 %760  ;;  %1352 = vst.msk [vmem:[#allocation3 + $0x20] sm:$0xf] %vm398_vm2, %v4730_v39 }
  0xc4   : > { %808 = vst.msk [vmem:[#allocation2 + $0x4] sm:$0xf] %vm806_vm8, %v761_v24 }
  0xc5   : > { %v759_v26 = vpop.permute.xlu0 %758  ;;  %1058 = vrot.lane.b32.xlu1 %v4160_v44, %s6157_s17 }
  0xc6   : > { %807 = vst.msk [vmem:[#allocation2] sm:$0xf] %vm806_vm8, %v759_v26 }
  0xc7   : > { %1056 = vrot.lane.b32.xlu0 %v4129_v22, %s6157_s17  ;;  %v765_v33 = vpop.permute.xlu1 %764 }
  0xc8   : > { %810 = vst.msk [vmem:[#allocation2 + $0xc] sm:$0xf] %vm806_vm8, %v765_v33  ;;  %v4763_v33 = vld [vmem:[%s4091_s22 + $0x70] sm:$0xf] }
  0xc9   : > { %v763_v17 = vpop.permute.xlu0 %762  ;;  %1143 = vrot.lane.b32.xlu1 %v4231_v29, %s6155_s20 }
  0xca   : > { %809 = vst.msk [vmem:[#allocation2 + $0x8] sm:$0xf] %vm806_vm8, %v763_v17 }
  0xcb   : > { %1060 = vrot.lane.b32.xlu0 %v4149_v34, %s6157_s17  ;;  %v769_v37 = vpop.permute.xlu1 %768 }
  0xcc   : > { %812 = vst.msk [vmem:[#allocation2 + $0x14] sm:$0xf] %vm806_vm8, %v769_v37  ;;  %v4767_v37 = vld [vmem:[%s4091_s22 + $0x6c] sm:$0xf] }
  0xcd   : > { %v767_v44 = vpop.permute.xlu0 %766  ;;  %1147 = vrot.lane.b32.xlu1 %v4265_v57, %s6155_s20 }
  0xce   : > { %811 = vst.msk [vmem:[#allocation2 + $0x10] sm:$0xf] %vm806_vm8, %v767_v44  ;;  %v1129_v44 = vshll.u32 %v4763_v33, 16 }
  0xcf   : > { %1145 = vrot.lane.b32.xlu0 %v4212_v11, %s6155_s20  ;;  %v773_v22 = vpop.permute.xlu1 %772 }
  0xd0   : > { %814 = vst.msk [vmem:[#allocation2 + $0x1c] sm:$0xf] %vm806_vm8, %v773_v22  ;;  %v1133_v22 = vshrl.u32 %v4763_v33, 16 }
  0xd1   : > { %v771_v41 = vpop.permute.xlu0 %770  ;;  %1216 = vrot.lane.b32.xlu1 %v4375_v62, %s6153_s21 }
  0xd2   : > { %813 = vst.msk [vmem:[#allocation2 + $0x18] sm:$0xf] %vm806_vm8, %v771_v41 }
  0xd3   : > { %1149 = vrot.lane.b32.xlu0 %v4256_v50, %s6155_s20  ;;  %v777_v34 = vpop.permute.xlu1 %776 }
  0xd4   : > { %816 = vst.msk [vmem:[#allocation2 + $0x24] sm:$0xf] %vm806_vm8, %v777_v34 }
  0xd5   : > { %v775_v29 = vpop.permute.xlu0 %774  ;;  %1220 = vrot.lane.b32.xlu1 %v4390_v12, %s6153_s21 }
  0xd6   : > { %815 = vst.msk [vmem:[#allocation2 + $0x20] sm:$0xf] %vm806_vm8, %v775_v29  ;;  %v1120_v29 = vshrl.u32 %v4767_v37, 16 }
  0xd7   : > { %1218 = vrot.lane.b32.xlu0 %v4369_v58, %s6153_s21  ;;  %v781_v11 = vpop.permute.xlu1 %780 }
  0xd8   : > { %818 = vst.msk [vmem:[#allocation2 + $0x2c] sm:$0xf] %vm806_vm8, %v781_v11  ;;  %v1131_v11 = vrot.slane %v1129_v44, 5 }
  0xd9   : > { %v779_v57 = vpop.permute.xlu0 %778  ;;  %1062 = vrot.lane.b32.xlu1 %v4182_v54, %s6157_s17  ;;  %v4669_v54 = vld [vmem:[%s4530_s26 + $0x28] sm:$0xf] }
  0xda   : > { %817 = vst.msk [vmem:[#allocation2 + $0x28] sm:$0xf] %vm806_vm8, %v779_v57  ;;  %v1135_v57 = vrot.slane %v1133_v22, 4  ;;  %v1385_v22 = vshrl.u32 %v4580_v14, 16 }
  0xdb   : > { %1222 = vrot.lane.b32.xlu0 %v4384_v4, %s6153_s21  ;;  %v785_v50 = vpop.permute.xlu1 %784  ;;  %1351 = vst.msk [vmem:[#allocation3 + $0x1c] sm:$0xf] %vm398_vm2, %v4669_v54 }
  0xdc   : > { %820 = vst.msk [vmem:[#allocation2 + $0x34] sm:$0xf] %vm806_vm8, %v785_v50 }
  0xdd   : > { %v783_v62 = vpop.permute.xlu0 %782  ;;  %1066 = vrot.lane.b32.xlu1 %v4206_v9, %s6157_s17 }
  0xde   : > { %819 = vst.msk [vmem:[#allocation2 + $0x30] sm:$0xf] %vm806_vm8, %v783_v62  ;;  %v1122_v62 = vrot.slane %v1120_v29, 4 }
  0xdf   : > { %1064 = vrot.lane.b32.xlu0 %v4169_v49, %s6157_s17  ;;  %v789_v58 = vpop.permute.xlu1 %788 }
  0xe0   : > { %822 = vst.msk [vmem:[#allocation2 + $0x3c] sm:$0xf] %vm806_vm8, %v789_v58 }
  0xe1   : > { %v787_v12 = vpop.permute.xlu0 %786  ;;  %1151 = vrot.lane.b32.xlu1 %v4283_v16, %s6155_s20 }
  0xe2   : > { %821 = vst.msk [vmem:[#allocation2 + $0x38] sm:$0xf] %vm806_vm8, %v787_v12  ;;  %v397_v12 = vld [vmem:[%s4091_s22 + $0x74] sm:$0x1]  ;;  %s6178_s22 = smov 24  }
  0xe3   : > { %1068 = vrot.lane.b32.xlu0 %v4191_v59, %s6157_s17  ;;  %v828_v49 = vpop.permute.xlu1 %827 }
  0xe4   : > { %875 = vst.msk [vmem:[#allocation2 + $0x4] sm:$0xf] %vm873_vm9, %v828_v49 }
  0xe5   : > { %v826_v9 = vpop.permute.xlu0 %825  ;;  %1155 = vrot.lane.b32.xlu1 %v4302_v55, %s6155_s20 }
  0xe6   : > { %874 = vst.msk [vmem:[#allocation2] sm:$0xf] %vm873_vm9, %v826_v9  ;;  %v1136_v9 = vor.u32 %v1135_v57, %v1131_v11  ;;  %v1319_v57 = vld [vmem:[%s4530_s26 + $0x14] sm:$0x1] }
  0xe7   : > { %1153 = vrot.lane.b32.xlu0 %v4275_v5, %s6155_s20  ;;  %v832_v16 = vpop.permute.xlu1 %831 }
  0xe8   : > { %877 = vst.msk [vmem:[#allocation2 + $0xc] sm:$0xf] %vm873_vm9, %v832_v16  ;;  %v1139_v16 = vshll.u32 %v397_v12, 16 }
  0xe9   : > { %v830_v4 = vpop.permute.xlu0 %829  ;;  %1224 = vrot.lane.b32.xlu1 %v4405_v30, %s6153_s21 }
  0xea   : > { %876 = vst.msk [vmem:[#allocation2 + $0x8] sm:$0xf] %vm873_vm9, %v830_v4 }
  0xeb   : > { %1157 = vrot.lane.b32.xlu0 %v4296_v40, %s6155_s20  ;;  %v836_v59 = vpop.permute.xlu1 %835 }
  0xec   : > { %879 = vst.msk [vmem:[#allocation2 + $0x14] sm:$0xf] %vm873_vm9, %v836_v59 }
  0xed   : > { %v834_v56 = vpop.permute.xlu0 %833  ;;  %1228 = vrot.lane.b32.xlu1 %v4420_v19, %s6153_s21 }
  0xee   : > { %878 = vst.msk [vmem:[#allocation2 + $0x10] sm:$0xf] %vm873_vm9, %v834_v56 }
  0xef   : > { %1226 = vrot.lane.b32.xlu0 %v4399_v23, %s6153_s21  ;;  %v840_v5 = vpop.permute.xlu1 %839 }
  0xf0   : > { %881 = vst.msk [vmem:[#allocation2 + $0x1c] sm:$0xf] %vm873_vm9, %v840_v5  ;;  %v1141_v5 = vrot.slane %v1139_v16, 5 }
  0xf1   : > { %v838_v55 = vpop.permute.xlu0 %837  ;;  %1005 = vrot.lane.b32.xlu1 %v4414_v18, %s6159_s14 }
  0xf2   : > { %880 = vst.msk [vmem:[#allocation2 + $0x18] sm:$0xf] %vm873_vm9, %v838_v55 }
  0xf3   : > { %1230 = vrot.lane.b32.xlu0 %v4414_v18, %s6153_s21  ;;  %v844_v40 = vpop.permute.xlu1 %843 }
  0xf4   : > { %883 = vst.msk [vmem:[#allocation2 + $0x24] sm:$0xf] %vm873_vm9, %v844_v40 }
  0xf5   : > { %v842_v30 = vpop.permute.xlu0 %841  ;;  %1009 = vrot.lane.b32.xlu1 %v4429_v2, %s6159_s14 }
  0xf6   : > { %882 = vst.msk [vmem:[#allocation2 + $0x20] sm:$0xf] %vm873_vm9, %v842_v30 }
  0xf7   : > { %1007 = vrot.lane.b32.xlu0 %v4434_v46, %s6159_s14  ;;  %v848_v23 = vpop.permute.xlu1 %847 }
  0xf8   : > { %885 = vst.msk [vmem:[#allocation2 + $0x2c] sm:$0xf] %vm873_vm9, %v848_v23  ;;  %v4808_v23 = vld [vmem:[%s4530_s26 + $0x40] sm:$0xf] }
  0xf9   : > { %v846_v19 = vpop.permute.xlu0 %845  ;;  %1072 = vrot.lane.b32.xlu1 %v4215_v15, %s6157_s17  ;;  %v4727_v15 = vld [vmem:[%s4530_s26 + $0x34] sm:$0xf]  ;;  %1355 = vst.msk [vmem:[#allocation3 + $0x2c] sm:$0xf] %vm398_vm2, %v4808_v23 }
  0xfa   : > { %884 = vst.msk [vmem:[#allocation2 + $0x28] sm:$0xf] %vm873_vm9, %v846_v19  ;;  %v4811_v19 = vld [vmem:[%s4530_s26 + $0x3c] sm:$0xf] }
  0xfb   : > { %1070 = vrot.lane.b32.xlu0 %v4227_v27, %s6157_s17  ;;  %v852_v18 = vpop.permute.xlu1 %851  ;;  %1353 = vst.msk [vmem:[#allocation3 + $0x24] sm:$0xf] %vm398_vm2, %v4727_v15  ;;  %1354 = vst.msk [vmem:[#allocation3 + $0x28] sm:$0xf] %vm398_vm2, %v4811_v19 }
  0xfc   : > { %887 = vst.msk [vmem:[#allocation2 + $0x34] sm:$0xf] %vm873_vm9, %v852_v18  ;;  %v1211_v18 = vrot.slane %v4763_v33, 5 }
  0xfd   : > { %v850_v51 = vpop.permute.xlu0 %849  ;;  %1076 = vrot.lane.b32.xlu1 %v4238_v36, %s6157_s17 }
  0xfe   : > { %886 = vst.msk [vmem:[#allocation2 + $0x30] sm:$0xf] %vm873_vm9, %v850_v51 }
  0xff   : > { %1074 = vrot.lane.b32.xlu0 %v4245_v42, %s6157_s17  ;;  %v856_v61 = vpop.permute.xlu1 %855 }
 0x100   : > { %889 = vst.msk [vmem:[#allocation2 + $0x3c] sm:$0xf] %vm873_vm9, %v856_v61 }
 0x101   : > { %v854_v8 = vpop.permute.xlu0 %853  ;;  %1161 = vrot.lane.b32.xlu1 %v4311_v7, %s6155_s20 }
 0x102   : > { %888 = vst.msk [vmem:[#allocation2 + $0x38] sm:$0xf] %vm873_vm9, %v854_v8 }
 0x103   : > { %1159 = vrot.lane.b32.xlu0 %v4322_v21, %s6155_s20  ;;  %v917_v27 = vpop.permute.xlu1 %916  ;;  %v982_v21 = vrot.slane %v4482_v0, 5 }
 0x104   : > { %964 = vst.msk [vmem:[#allocation2 + $0x4] sm:$0xf] %vm962_vm10, %v917_v27  ;;  %v1316_v27 = vld [vmem:[%s4530_s26 + $0x8] sm:$0x1] }
 0x105   : > { %v915_v36 = vpop.permute.xlu0 %914  ;;  %1165 = vrot.lane.b32.xlu1 %v4331_v6, %s6155_s20  ;;  %v984_v24 = vrot.slane %v982_v21, 4 }
 0x106   : > { %963 = vst.msk [vmem:[#allocation2] sm:$0xf] %vm962_vm10, %v915_v36 }
 0x107   : > { %1163 = vrot.lane.b32.xlu0 %v4337_v35, %s6155_s20  ;;  %v921_v42 = vpop.permute.xlu1 %920 }
 0x108   : > { %966 = vst.msk [vmem:[#allocation2 + $0xc] sm:$0xf] %vm962_vm10, %v921_v42  ;;  %v1213_v42 = vrot.slane %v1211_v18, 4 }
 0x109   : > { %v919_v7 = vpop.permute.xlu0 %918  ;;  %1234 = vrot.lane.b32.xlu1 %v4429_v2, %s6153_s21  ;;  %v985_v2 = vrot.slane %v4512_v63, 5 }
 0x10a   : > { %965 = vst.msk [vmem:[#allocation2 + $0x8] sm:$0xf] %vm962_vm10, %v919_v7 }
 0x10b   : > { %1232 = vrot.lane.b32.xlu0 %v4434_v46, %s6153_s21  ;;  %v925_v6 = vpop.permute.xlu1 %924  ;;  %v3509_v46 = vrot.slane %v4485_v1, 9  ;;  %v4776_v63 = vsel %vm4316_vm6, %v984_v24, %v985_v2  ;;  %v1394_v2 = vshll.u32 %v4577_v48, 16 }
 0x10c   : > { %968 = vst.msk [vmem:[#allocation2 + $0x14] sm:$0xf] %vm962_vm10, %v925_v6  ;;  %v3510_v6 = vrot.slane %v4767_v37, 9 }
 0x10d   : > { %v923_v35 = vpop.permute.xlu0 %922  ;;  %1238 = vrot.lane.b32.xlu1 %v4443_v10, %s6153_s21  ;;  %v4782_v34 = vsel %vm4316_vm6, %v3509_v46, %v982_v21  ;;  %v1380_v21 = vshll.u32 %v1316_v27, 16 }
 0x10e   : > { %967 = vst.msk [vmem:[#allocation2 + $0x10] sm:$0xf] %vm962_vm10, %v923_v35  ;;  %v1212_v44 = vsel %vm4316_vm6, %v3510_v6, %v1211_v18  ;;  %v1652_v18 = vrot.slane %v1319_v57, 5 }
 0x10f   : > { %1236 = vrot.lane.b32.xlu0 %v4447_v53, %s6153_s21  ;;  %v929_v26 = vpop.permute.xlu1 %928 }
 0x110   : > { %970 = vst.msk [vmem:[#allocation2 + $0x1c] sm:$0xf] %vm962_vm10, %v929_v26  ;;  %v1398_v26 = vshrl.u32 %v4577_v48, 16 }
 0x111   : > { %v927_v17 = vpop.permute.xlu0 %926  ;;  %1013 = vrot.lane.b32.xlu1 %v4443_v10, %s6159_s14  ;;  %v1123_v10 = vshll.u32 %v4767_v37, 16 }
 0x112   : > { %969 = vst.msk [vmem:[#allocation2 + $0x18] sm:$0xf] %vm962_vm10, %v927_v17  ;;  %v1382_v17 = vrot.slane %v1380_v21, 5  ;;  %v1400_v29 = vrot.slane %v1398_v26, 4  ;;  %v4906_v26 = vld [vmem:[%s4530_s26 + $0x4c] sm:$0xf] }
 0x113   : > { %1011 = vrot.lane.b32.xlu0 %v4447_v53, %s6159_s14  ;;  %v933_v41 = vpop.permute.xlu1 %932  ;;  %v1125_v58 = vrot.slane %v1123_v10, 5  ;;  %1357 = vst.msk [vmem:[#allocation3 + $0x34] sm:$0xf] %vm398_vm2, %v4906_v26 }
 0x114   : > { %972 = vst.msk [vmem:[#allocation2 + $0x24] sm:$0xf] %vm962_vm10, %v933_v41 }
 0x115   : > { %v931_v53 = vpop.permute.xlu0 %930  ;;  %1017 = vrot.lane.b32.xlu1 %v4776_v63, %s6159_s14  ;;  %v1126_v59 = vor.u32 %v1125_v58, %v1122_v62  ;;  %v1387_v62 = vrot.slane %v1385_v22, 4 }
 0x116   : > { %971 = vst.msk [vmem:[#allocation2 + $0x20] sm:$0xf] %vm962_vm10, %v931_v53  ;;  %v1644_v53 = vrot.slane %v1642_v32, 4 }
 0x117   : > { %1015 = vrot.lane.b32.xlu0 %v4782_v34, %s6159_s14  ;;  %v937_v50 = vpop.permute.xlu1 %936  ;;  %v1127_v40 = vrot.slane %v1126_v59, 4 }
 0x118   : > { %974 = vst.msk [vmem:[#allocation2 + $0x2c] sm:$0xf] %vm962_vm10, %v937_v50 }
 0x119   : > { %v935_v49 = vpop.permute.xlu0 %934  ;;  %1080 = vrot.lane.b32.xlu1 %v4482_v0, %s6157_s17  ;;  %v1137_v0 = vrot.slane %v1136_v9, 4  ;;  %v1404_v9 = vshll.u32 %v1319_v57, 16  ;;  %v3513_v57 = vrot.slane %v4614_v13, 9 }
 0x11a   : > { %973 = vst.msk [vmem:[#allocation2 + $0x28] sm:$0xf] %vm962_vm10, %v935_v49 }
 0x11b   : > { %1078 = vrot.lane.b32.xlu0 %v4485_v1, %s6157_s17  ;;  %v941_v4 = vpop.permute.xlu1 %940  ;;  %v1374_v1 = vshrl.u32 %v4534_v38, 16  ;;  %v1142_v51 = vsel %vm4140_vm3, %v1137_v0, %v1141_v5 }
 0x11c   : > { %976 = vst.msk [vmem:[#allocation2 + $0x34] sm:$0xf] %vm962_vm10, %v941_v4 }
 0x11d   : > { %v939_v56 = vpop.permute.xlu0 %938  ;;  %1084 = vrot.lane.b32.xlu1 %v4763_v33, %s6157_s17  ;;  %v1376_v61 = vrot.slane %v1374_v1, 4  ;;  %v1409_v1 = vshrl.u32 %v4614_v13, 16 }
 0x11e   : > { %975 = vst.msk [vmem:[#allocation2 + $0x30] sm:$0xf] %vm962_vm10, %v939_v56  ;;  %v1406_v56 = vrot.slane %v1404_v9, 5 }
 0x11f   : > { %1082 = vrot.lane.b32.xlu0 %v4767_v37, %s6157_s17  ;;  %v945_v55 = vpop.permute.xlu1 %944  ;;  %v1377_v7 = vor.u32 %v1376_v61, %v4561_v3  ;;  %v1649_v3 = vrot.slane %v4577_v48, 5 }
 0x120   : > { %978 = vst.msk [vmem:[#allocation2 + $0x3c] sm:$0xf] %vm962_vm10, %v945_v55  ;;  %v1412_v55 = vshll.u32 %v4614_v13, 16 }
 0x121   : > { %v943_v30 = vpop.permute.xlu0 %942  ;;  %1169 = vrot.lane.b32.xlu1 %v4547_v60, %s6155_s20  ;;  %v1132_v60 = vsel %vm4140_vm3, %v1127_v40, %v1131_v11  ;;  %v1378_v33 = vrot.slane %v1377_v7, 4  ;;  %v1645_v11 = vrot.slane %v1316_v27, 5  ;;  %v3512_v27 = vrot.slane %v4580_v14, 9 }
 0x122   : > { %977 = vst.msk [vmem:[#allocation2 + $0x38] sm:$0xf] %vm962_vm10, %v943_v30  ;;  %v1651_v30 = vrot.slane %v1649_v3, 4 }
 0x123   : > { %1167 = vrot.lane.b32.xlu0 %v4551_v45, %s6155_s20  ;;  %v990_v8 = vpop.permute.xlu1 %989  ;;  %v1214_v45 = vrot.slane %v397_v12, 5  ;;  %v1383_v10 = vsel %vm4140_vm3, %v1378_v33, %v1382_v17  ;;  %v1646_v38 = vsel %vm4316_vm6, %v1644_v53, %v1645_v11 }
 0x124   : > { %1037 = vst.msk [vmem:[#allocation2 + $0x4] sm:$0xf] %vm1035_vm11, %v990_v8  ;;  %v1653_v7 = vsel %vm4316_vm6, %v1651_v30, %v1652_v18 }
 0x125   : > { %v988_v36 = vpop.permute.xlu0 %987  ;;  %1173 = vrot.lane.b32.xlu1 %v1142_v51, %s6155_s20  ;;  %v1215_v46 = vsel %vm4316_vm6, %v1213_v42, %v1214_v45  ;;  %v1420_v51 = vrot.slane %v1418_v25, 5  ;;  %v1414_v42 = vrot.slane %v1412_v55, 5  ;;  %v1436_v25 = vshll.u32 %v4672_v52, 16  ;;  %v1325_v55 = vld [vmem:[%s4530_s26 + $0x2c] sm:$0x1] }
 0x126   : > { %1036 = vst.msk [vmem:[#allocation2] sm:$0xf] %vm1035_vm11, %v988_v36  ;;  %v1411_v36 = vrot.slane %v1409_v1, 4 }
 0x127   : > { %1171 = vrot.lane.b32.xlu0 %v1132_v60, %s6155_s20  ;;  %v994_v35 = vpop.permute.xlu1 %993 }
 0x128   : > { %1039 = vst.msk [vmem:[#allocation2 + $0xc] sm:$0xf] %vm1035_vm11, %v994_v35  ;;  %v1650_v35 = vsel %vm4316_vm6, %v3512_v27, %v1649_v3  ;;  %v1433_v3 = vshrl.u32 %v4672_v52, 16 }
 0x129   : > { %v992_v24 = vpop.permute.xlu0 %991  ;;  %1242 = vrot.lane.b32.xlu1 %v4776_v63, %s6153_s21  ;;  %v1388_v63 = vshll.u32 %v4580_v14, 16 }
 0x12a   : > { %1038 = vst.msk [vmem:[#allocation2 + $0x8] sm:$0xf] %vm1035_vm11, %v992_v24  ;;  %v1415_v24 = vor.u32 %v1414_v42, %v1411_v36  ;;  %v1663_v36 = vrot.slane %v4669_v54, 5 }
 0x12b   : > { %1240 = vrot.lane.b32.xlu0 %v4782_v34, %s6153_s21  ;;  %v998_v37 = vpop.permute.xlu1 %997  ;;  %v1396_v34 = vrot.slane %v1394_v2, 5  ;;  %v1390_v58 = vrot.slane %v1388_v63, 5 }
 0x12c   : > { %1041 = vst.msk [vmem:[#allocation2 + $0x14] sm:$0xf] %vm1035_vm11, %v998_v37  ;;  %v1656_v37 = vrot.slane %v4611_v47, 5  ;;  %v1416_v22 = vrot.slane %v1415_v24, 4 }
 0x12d   : > { %v996_v41 = vpop.permute.xlu0 %995  ;;  %1246 = vrot.lane.b32.xlu1 %v1215_v46, %s6153_s21  ;;  %v1401_v49 = vor.u32 %v1400_v29, %v1396_v34  ;;  %v1391_v16 = vor.u32 %v1390_v58, %v1387_v62  ;;  %v4909_v46 = vld [vmem:[%s4530_s26 + $0x48] sm:$0xf] }
 0x12e   : > { %1040 = vst.msk [vmem:[#allocation2 + $0x10] sm:$0xf] %vm1035_vm11, %v996_v41  ;;  %v3960_v41 = vmov 0   ;;  %v1658_v29 = vrot.slane %v1656_v37, 4  ;;  %v4933_v11 = vsel %vm4140_vm3, %v1416_v22, %v1420_v51 }
 0x12f   : > { %1244 = vrot.lane.b32.xlu0 %v1212_v44, %s6153_s21  ;;  %v1002_v50 = vpop.permute.xlu1 %1001  ;;  %v1402_v59 = vrot.slane %v1401_v49, 4  ;;  %v1392_v5 = vrot.slane %v1391_v16, 4  ;;  %1356 = vst.msk [vmem:[#allocation3 + $0x30] sm:$0xf] %vm398_vm2, %v4909_v46 }
 0x130   : > { %1043 = vst.msk [vmem:[#allocation2 + $0x1c] sm:$0xf] %vm1035_vm11, %v1002_v50 }
 0x131   : > { %v1000_v12 = vpop.permute.xlu0 %999  ;;  %1554 = vrot.lane.b32.xlu1 %v1383_v10, %s6149_s24  ;;  %v4890_v60 = vsel %vm4140_vm3, %v1392_v5, %v1396_v34 }
 0x132   : > { %1042 = vst.msk [vmem:[#allocation2 + $0x18] sm:$0xf] %vm1035_vm11, %v1000_v12  ;;  %v4952_v12 = vsel %vm4316_vm6, %v3513_v57, %v1656_v37  ;;  %v1466_v57 = vshll.u32 %v4727_v15, 16 }
 0x133   : > { %1552 = vrot.lane.b32.xlu0 %v1373_v31, %s6149_s24  ;;  %v1055_v32 = vpop.permute.xlu1 %1054  ;;  %v1422_v31 = vshrl.u32 %v4611_v47, 16 }
 0x134   : > { %1103 = vst.msk [vmem:[#allocation2] sm:$0xf] %vm1102_vm12, %v1055_v32 }
 0x135   : > { %v1004_v4 = vpop.permute.xlu0 %1003  ;;  %1698 = vrot.lane.b32.xlu1 %v1646_v38, %s6147_s25  ;;  %v1424_v61 = vrot.slane %v1422_v31, 4 }
 0x136   : > { %1044 = vst.msk [vmem:[#allocation2 + $0x20] sm:$0xf] %vm1035_vm11, %v1004_v4  ;;  %v1442_v4 = vshll.u32 %v4669_v54, 16 }
 0x137   : > { %1696 = vrot.lane.b32.xlu0 %v4589_v43, %s6147_s25  ;;  %v1059_v0 = vpop.permute.xlu1 %1058  ;;  %v4884_v43 = vsel %vm4140_vm3, %v1402_v59, %v1406_v56  ;;  %v1446_v59 = vshrl.u32 %v4669_v54, 16 }
 0x138   : > { %1105 = vst.msk [vmem:[#allocation2 + $0x8] sm:$0xf] %vm1102_vm12, %v1059_v0  ;;  %v1444_v0 = vrot.slane %v1442_v4, 5 }
 0x139   : > { %v1057_v40 = vpop.permute.xlu0 %1056  ;;  %1764 = vrot.lane.b32.xlu1 %v4577_v48, %s6178_s22  ;;  %v1322_v48 = vld [vmem:[%s4530_s26 + $0x20] sm:$0x1]  ;;  %v1448_v5 = vrot.slane %v1446_v59, 4 }
 0x13a   : > { %1104 = vst.msk [vmem:[#allocation2 + $0x4] sm:$0xf] %vm1102_vm12, %v1057_v40  ;;  %v1428_v21 = vshll.u32 %v1322_v48, 16  ;;  %v1659_v10 = vrot.slane %v1322_v48, 5  ;;  %v1435_v40 = vrot.slane %v1433_v3, 4 }
 0x13b   : > { %1762 = vrot.lane.b32.xlu0 %v4580_v14, %s6178_s22  ;;  %v1144_v8 = vpop.permute.xlu1 %1143  ;;  %v1425_v14 = vor.u32 %v1424_v61, %v1420_v51 }
 0x13c   : > { %1192 = vst.msk [vmem:[#allocation2] sm:$0xf] %vm1191_vm13, %v1144_v8  ;;  %v1430_v17 = vrot.slane %v1428_v21, 5  ;;  %v4948_v62 = vsel %vm4316_vm6, %v1658_v29, %v1659_v10  ;;  %v4993_v8 = vld [vmem:[%s4530_s26 + $0x58] sm:$0xf]  ;;  %v1665_v21 = vrot.slane %v1663_v36, 4 }
 0x13d   : > { %v1061_v45 = vpop.permute.xlu0 %1060  ;;  %1852 = vrot.lane.b32.xlu1 %v4884_v43, %s6151_s13  ;;  %v1426_v33 = vrot.slane %v1425_v14, 4  ;;  %1359 = vst.msk [vmem:[#allocation3 + $0x3c] sm:$0xf] %vm398_vm2, %v4993_v8 }
 0x13e   : > { %1106 = vst.msk [vmem:[#allocation2 + $0xc] sm:$0xf] %vm1102_vm12, %v1061_v45 }
 0x13f   : > { %1850 = vrot.lane.b32.xlu0 %v4890_v60, %s6151_s13  ;;  %v1148_v6 = vpop.permute.xlu1 %1147  ;;  %v4929_v34 = vsel %vm4140_vm3, %v1426_v33, %v1430_v17 }
 0x140   : > { %1194 = vst.msk [vmem:[#allocation2 + $0x8] sm:$0xf] %vm1191_vm13, %v1148_v6  ;;  %v1666_v6 = vrot.slane %v1325_v55, 5 }
 0x141   : > { %v1146_v2 = vpop.permute.xlu0 %1145  ;;  %1924 = vrot.lane.b32.xlu1 %v1653_v7, %s6159_s14 }
 0x142   : > { %1193 = vst.msk [vmem:[#allocation2 + $0x4] sm:$0xf] %vm1191_vm13, %v1146_v2  ;;  %v3514_v2 = vrot.slane %v4672_v52, 9  ;;  %v5037_v17 = vsel %vm4316_vm6, %v1665_v21, %v1666_v6 }
 0x143   : > { %1922 = vrot.lane.b32.xlu0 %v1650_v35, %s6159_s14  ;;  %v1217_v44 = vpop.permute.xlu1 %1216 }
 0x144   : > { %1265 = vst.msk [vmem:[#allocation2] sm:$0xf] %vm1264_vm14, %v1217_v44  ;;  %v5041_v44 = vsel %vm4316_vm6, %v3514_v2, %v1663_v36  ;;  %v3784_v2 = vld [vmem:[%s6179_s2 + $0x40] ss:$8 sps:$4 sm:$0xff]  }
 0x145   : > { %v1150_v63 = vpop.permute.xlu0 %1149  ;;  %1282 = vst.msk [vmem:[#allocation2] sm:$0xf] %vm1281_vm15, %v3960_v41  ;;  %1990 = vrot.lane.b32.xlu1 %v4611_v47, %s6157_s17 }
 0x146   : > { %1195 = vst.msk [vmem:[#allocation2 + $0xc] sm:$0xf] %vm1191_vm13, %v1150_v63 }
 0x147   : > { %1988 = vrot.lane.b32.xlu0 %v4614_v13, %s6157_s17  ;;  %v1221_v53 = vpop.permute.xlu1 %1220 }
 0x148   : > { %1267 = vst.msk [vmem:[#allocation2 + $0x8] sm:$0xf] %vm1264_vm14, %v1221_v53 }
 0x149   : > { %v1219_v50 = vpop.permute.xlu0 %1218  ;;  %1284 = vst.msk [vmem:[#allocation2 + $0x8] sm:$0xf] %vm1281_vm15, %v3960_v41  ;;  %2078 = vrot.lane.b32.xlu1 %v4929_v34, %s6155_s20 }
 0x14a   : > { %1266 = vst.msk [vmem:[#allocation2 + $0x4] sm:$0xf] %vm1264_vm14, %v1219_v50 }
 0x14b   : > { %1283 = vst.msk [vmem:[#allocation2 + $0x4] sm:$0xf] %vm1281_vm15, %v3960_v41  ;;  %2076 = vrot.lane.b32.xlu0 %v4933_v11, %s6155_s20  ;;  %v1063_v58 = vpop.permute.xlu1 %1062 }
 0x14c   : > { %1107 = vst.msk [vmem:[#allocation2 + $0x10] sm:$0xf] %vm1102_vm12, %v1063_v58  ;;  %v1460_v58 = vshll.u32 %v4730_v39, 16 }
 0x14d   : > { %v1223_v49 = vpop.permute.xlu0 %1222  ;;  %2150 = vrot.lane.b32.xlu1 %v4948_v62, %s6153_s21 }
 0x14e   : > { %1268 = vst.msk [vmem:[#allocation2 + $0xc] sm:$0xf] %vm1264_vm14, %v1223_v49 }
 0x14f   : > { %1285 = vst.msk [vmem:[#allocation2 + $0xc] sm:$0xf] %vm1281_vm15, %v3960_v41  ;;  %2148 = vrot.lane.b32.xlu0 %v4952_v12, %s6153_s21  ;;  %v1067_v9 = vpop.permute.xlu1 %1066 }
 0x150   : > { %1109 = vst.msk [vmem:[#allocation2 + $0x18] sm:$0xf] %vm1102_vm12, %v1067_v9 }
 0x151   : > { %v1065_v38 = vpop.permute.xlu0 %1064  ;;  %1558 = vrot.lane.b32.xlu1 %v4884_v43, %s6149_s24  ;;  %v1438_v43 = vrot.slane %v1436_v25, 5  ;;  %v3778_v25 = vld [vmem:[%s6179_s2 + $0x70] ss:$8 sps:$4 sm:$0xff]  }
 0x152   : > { %1108 = vst.msk [vmem:[#allocation2 + $0x14] sm:$0xf] %vm1102_vm12, %v1065_v38  ;;  %v1328_v38 = vld [vmem:[%s4530_s26 + $0x38] sm:$0x1]  ;;  %3631 = vmatprep.subr.bf16.mxu1 %v3778_v25 }
 0x153   : > { %1556 = vrot.lane.b32.xlu0 %v4890_v60, %s6149_s24  ;;  %v1152_v32 = vpop.permute.xlu1 %1151  ;;  %v1439_v51 = vor.u32 %v1438_v43, %v1435_v40  ;;  %v4996_v60 = vld [vmem:[%s4530_s26 + $0x54] sm:$0xf]  ;;  %3632 = vmatpush3.bf16.msra.mxu1 %v3778_v25  ;;  %v3794_v25 = vld [vmem:[#allocation2] sm:$0xff]  }
 0x154   : > { %1196 = vst.msk [vmem:[#allocation2 + $0x10] sm:$0xf] %vm1191_vm13, %v1152_v32  ;;  %3647 = vmatprep.mubr.bf16.mxu1 %v3794_v25  ;;  %3679 = vmatprep.mubr.bf16.mxu0 %v3794_v25  ;;  %v3830_v25 = vld [vmem:[%s6140_s4 + $0x40] ss:$16 sps:$4 sm:$0xff]  }
 0x155   : > { %v1069_v16 = vpop.permute.xlu0 %1068  ;;  %1702 = vrot.lane.b32.xlu1 %v1653_v7, %s6147_s25  ;;  %1358 = vst.msk [vmem:[#allocation3 + $0x38] sm:$0xf] %vm398_vm2, %v4996_v60  ;;  %v1440_v45 = vrot.slane %v1439_v51, 4  ;;  %v1673_v51 = vrot.slane %v1328_v38, 5 }
 0x156   : > { %1110 = vst.msk [vmem:[#allocation2 + $0x1c] sm:$0xf] %vm1102_vm12, %v1069_v16  ;;  %v1462_v16 = vrot.slane %v1460_v58, 5 }
 0x157   : > { %1700 = vrot.lane.b32.xlu0 %v1650_v35, %s6147_s25  ;;  %v1156_v56 = vpop.permute.xlu1 %1155  ;;  %v5026_v24 = vsel %vm4140_vm3, %v1440_v45, %v1444_v0  ;;  %v3783_v45 = vld [vmem:[%s6179_s2 + $0x54] ss:$8 sps:$4 sm:$0xff]  }
 0x158   : > { %1198 = vst.msk [vmem:[#allocation2 + $0x18] sm:$0xf] %vm1191_vm13, %v1156_v56 }
 0x159   : > { %v1154_v31 = vpop.permute.xlu0 %1153  ;;  %1768 = vrot.lane.b32.xlu1 %v4611_v47, %s6178_s22  ;;  %v1449_v47 = vor.u32 %v1448_v5, %v1444_v0 }
 0x15a   : > { %1197 = vst.msk [vmem:[#allocation2 + $0x14] sm:$0xf] %vm1191_vm13, %v1154_v31  ;;  %v3779_v31 = vld [vmem:[%s6179_s2 + $0x74] ss:$8 sps:$4 sm:$0xff]  }
 0x15b   : > { %1766 = vrot.lane.b32.xlu0 %v4614_v13, %s6178_s22  ;;  %v1225_v1 = vpop.permute.xlu1 %1224  ;;  %v1452_v13 = vshll.u32 %v1325_v55, 16  ;;  %v1450_v27 = vrot.slane %v1449_v47, 4  ;;  %3663 = vmatprep.subr.bf16.mxu0 %v3779_v31  ;;  %v3781_v47 = vld [vmem:[%s6179_s2 + $0x64] ss:$8 sps:$4 sm:$0xff]  }
 0x15c   : > { %1269 = vst.msk [vmem:[#allocation2 + $0x10] sm:$0xf] %vm1264_vm14, %v1225_v1  ;;  %v1670_v1 = vrot.slane %v4727_v15, 5  ;;  %3664 = vmatpush3.bf16.msra.mxu0 %v3779_v31  ;;  %v3797_v31 = vld [vmem:[%s6140_s4 + $0xe4] ss:$16 sps:$4 sm:$0xff]  }
 0x15d   : > { %v1158_v30 = vpop.permute.xlu0 %1157  ;;  %1286 = vst.msk [vmem:[#allocation2 + $0x10] sm:$0xf] %vm1281_vm15, %v3960_v41  ;;  %1856 = vrot.lane.b32.xlu1 %v4929_v34, %s6151_s13  ;;  %v1454_v48 = vrot.slane %v1452_v13, 5  ;;  %3665 = vmatprep.subr.bf16.mxu0 %v3781_v47 }
 0x15e   : > { %1199 = vst.msk [vmem:[#allocation2 + $0x1c] sm:$0xf] %vm1191_vm13, %v1158_v30  ;;  %v3780_v30 = vld [vmem:[%s6179_s2 + $0x60] ss:$8 sps:$4 sm:$0xff]  }
 0x15f   : > { %1854 = vrot.lane.b32.xlu0 %v4933_v11, %s6151_s13  ;;  %v1229_v18 = vpop.permute.xlu1 %1228  ;;  %v5022_v14 = vsel %vm4140_vm3, %v1450_v27, %v1454_v48  ;;  %v3515_v48 = vrot.slane %v4730_v39, 9  ;;  %3633 = vmatprep.subr.bf16.mxu1 %v3780_v30 }
 0x160   : > { %1271 = vst.msk [vmem:[#allocation2 + $0x18] sm:$0xf] %vm1264_vm14, %v1229_v18  ;;  %v1672_v18 = vrot.slane %v1670_v1, 4  ;;  %3634 = vmatpush3.bf16.msra.mxu1 %v3780_v30  ;;  %3666 = vmatpush3.bf16.msra.mxu0 %v3781_v47 }
 0x161   : > { %v1227_v61 = vpop.permute.xlu0 %1226  ;;  %1288 = vst.msk [vmem:[#allocation2 + $0x18] sm:$0xf] %vm1281_vm15, %v3960_v41  ;;  %1928 = vrot.lane.b32.xlu1 %v4948_v62, %s6159_s14  ;;  %v5138_v6 = vsel %vm4316_vm6, %v3515_v48, %v1670_v1  ;;  %3667 = vmatprep.subr.bf16.mxu0 %v3783_v45 }
 0x162   : > { %1270 = vst.msk [vmem:[#allocation2 + $0x14] sm:$0xf] %vm1264_vm14, %v1227_v61 }
 0x163   : > { %1287 = vst.msk [vmem:[#allocation2 + $0x14] sm:$0xf] %vm1281_vm15, %v3960_v41  ;;  %1926 = vrot.lane.b32.xlu0 %v4952_v12, %s6159_s14  ;;  %v1006_v42 = vpop.permute.xlu1 %1005 }
 0x164   : > { %1045 = vst.msk [vmem:[#allocation2 + $0x24] sm:$0xf] %vm1035_vm11, %v1006_v42  ;;  %v3782_v42 = vld [vmem:[%s6179_s2 + $0x50] ss:$8 sps:$4 sm:$0xff]   ;;  %3668 = vmatpush3.bf16.msra.mxu0 %v3783_v45 }
 0x165   : > { %v1231_v7 = vpop.permute.xlu0 %1230  ;;  %1994 = vrot.lane.b32.xlu1 %v4669_v54, %s6157_s17  ;;  %3635 = vmatprep.subr.bf16.mxu1 %v3782_v42  ;;  %v3802_v45 = vld [vmem:[%s6140_s4 + $0xc0] ss:$16 sps:$4 sm:$0xff]  }
 0x166   : > { %1272 = vst.msk [vmem:[#allocation2 + $0x1c] sm:$0xf] %vm1264_vm14, %v1231_v7  ;;  %v5134_v7 = vsel %vm4316_vm6, %v1672_v18, %v1673_v51  ;;  %3636 = vmatpush3.bf16.msra.mxu1 %v3782_v42  ;;  %v3798_v18 = vld [vmem:[%s6140_s4 + $0xe8] ss:$16 sps:$4 sm:$0xff]  }
 0x167   : > { %1289 = vst.msk [vmem:[#allocation2 + $0x1c] sm:$0xf] %vm1281_vm15, %v3960_v41  ;;  %1992 = vrot.lane.b32.xlu0 %v4672_v52, %s6157_s17  ;;  %v1010_v35 = vpop.permute.xlu1 %1009  ;;  %3637 = vmatprep.subr.bf16.mxu1 %v3784_v2 }
 0x168   : > { %1047 = vst.msk [vmem:[#allocation2 + $0x2c] sm:$0xf] %vm1035_vm11, %v1010_v35 }
 0x169   : > { %v1008_v33 = vpop.permute.xlu0 %1007  ;;  %2082 = vrot.lane.b32.xlu1 %v5022_v14, %s6155_s20 }
 0x16a   : > { %1046 = vst.msk [vmem:[#allocation2 + $0x28] sm:$0xf] %vm1035_vm11, %v1008_v33  ;;  %v3785_v33 = vld [vmem:[%s6179_s2 + $0x44] ss:$8 sps:$4 sm:$0xff]   ;;  %3638 = vmatpush3.bf16.msra.mxu1 %v3784_v2 }
 0x16b   : > { %2080 = vrot.lane.b32.xlu0 %v5026_v24, %s6155_s20  ;;  %v1073_v37 = vpop.permute.xlu1 %1072  ;;  %3669 = vmatprep.subr.bf16.mxu0 %v3785_v33 }
 0x16c   : > { %1112 = vst.msk [vmem:[#allocation2 + $0x24] sm:$0xf] %vm1102_vm12, %v1073_v37  ;;  %3670 = vmatpush3.bf16.msra.mxu0 %v3785_v33  ;;  %v3516_v33 = vrot.slane %v4811_v19, 9 }
 0x16d   : > { %v1071_v22 = vpop.permute.xlu0 %1070  ;;  %2154 = vrot.lane.b32.xlu1 %v5037_v17, %s6153_s21 }
 0x16e   : > { %1111 = vst.msk [vmem:[#allocation2 + $0x20] sm:$0xf] %vm1102_vm12, %v1071_v22 }
 0x16f   : > { %2152 = vrot.lane.b32.xlu0 %v5041_v44, %s6153_s21  ;;  %v1077_v63 = vpop.permute.xlu1 %1076  ;;  %s3961_s21 = smov [#allocation4]  }
 0x170   : > { %1114 = vst.msk [vmem:[#allocation2 + $0x2c] sm:$0xf] %vm1102_vm12, %v1077_v63  ;;  %v3786_v63 = vld [vmem:[%s6179_s2 + $0x30] ss:$8 sps:$4 sm:$0xff]  }
 0x171   : > { %v1075_v29 = vpop.permute.xlu0 %1074  ;;  %1562 = vrot.lane.b32.xlu1 %v4929_v34, %s6149_s24  ;;  %v1470_v34 = vshrl.u32 %v4727_v15, 16  ;;  %3639 = vmatprep.subr.bf16.mxu1 %v3786_v63 }
 0x172   : > { %1113 = vst.msk [vmem:[#allocation2 + $0x28] sm:$0xf] %vm1102_vm12, %v1075_v29  ;;  %v3787_v29 = vld [vmem:[%s6179_s2 + $0x34] ss:$8 sps:$4 sm:$0xff]   ;;  %3640 = vmatpush3.bf16.msra.mxu1 %v3786_v63 }
 0x173   : > { %1560 = vrot.lane.b32.xlu0 %v4933_v11, %s6149_s24  ;;  %v1162_v10 = vpop.permute.xlu1 %1161  ;;  %v1457_v11 = vshrl.u32 %v4730_v39, 16  ;;  %s6180_s24 = smov 64   ;;  %3671 = vmatprep.subr.bf16.mxu0 %v3787_v29  ;;  %v3808_v63 = vld [vmem:[#allocation2 + $0x10] sm:$0xff]  }
 0x174   : > { %1201 = vst.msk [vmem:[#allocation2 + $0x24] sm:$0xf] %vm1191_vm13, %v1162_v10  ;;  %3672 = vmatpush3.bf16.msra.mxu0 %v3787_v29  ;;  %v3809_v29 = vld [vmem:[#allocation2 + $0x18] sm:$0xff]  }
 0x175   : > { %v1160_v53 = vpop.permute.xlu0 %1159  ;;  %1706 = vrot.lane.b32.xlu1 %v4948_v62, %s6147_s25  ;;  %v1468_v62 = vrot.slane %v1466_v57, 5  ;;  %v1459_v32 = vrot.slane %v1457_v11, 4  ;;  %v1490_v57 = vshll.u32 %v4808_v23, 16  ;;  %v1481_v11 = vshrl.u32 %v4811_v19, 16 }
 0x176   : > { %1200 = vst.msk [vmem:[#allocation2 + $0x20] sm:$0xf] %vm1191_vm13, %v1160_v53 }
 0x177   : > { %1704 = vrot.lane.b32.xlu0 %v4952_v12, %s6147_s25  ;;  %v1166_v50 = vpop.permute.xlu1 %1165  ;;  %v1472_v12 = vrot.slane %v1470_v34, 4  ;;  %v1463_v56 = vor.u32 %v1462_v16, %v1459_v32  ;;  %v1494_v34 = vshrl.u32 %v4808_v23, 16  ;;  %v1483_v32 = vrot.slane %v1481_v11, 4  ;;  %s6183_s25 = smov 32   ;;  %v3813_v11 = vld [vmem:[%s6140_s4 + $0xa8] ss:$16 sps:$4 sm:$0xff]  }
 0x178   : > { %1203 = vst.msk [vmem:[#allocation2 + $0x2c] sm:$0xf] %vm1191_vm13, %v1166_v50 }
 0x179   : > { %v1164_v49 = vpop.permute.xlu0 %1163  ;;  %1772 = vrot.lane.b32.xlu1 %v4669_v54, %s6178_s22  ;;  %v1473_v54 = vor.u32 %v1472_v12, %v1468_v62  ;;  %v1464_v40 = vrot.slane %v1463_v56, 4  ;;  %v1496_v12 = vrot.slane %v1494_v34, 4  ;;  %v3815_v34 = vld [vmem:[%s6140_s4 + $0xac] ss:$16 sps:$4 sm:$0xff]  }
 0x17a   : > { %1202 = vst.msk [vmem:[#allocation2 + $0x28] sm:$0xf] %vm1191_vm13, %v1164_v49  ;;  %v3791_v49 = vld [vmem:[%s6179_s2 + $0x14] ss:$8 sps:$4 sm:$0xff]  }
 0x17b   : > { %1770 = vrot.lane.b32.xlu0 %v4672_v52, %s6178_s22  ;;  %v1235_v9 = vpop.permute.xlu1 %1234  ;;  %v1476_v52 = vshll.u32 %v1328_v38, 16  ;;  %v1474_v0 = vrot.slane %v1473_v54, 4  ;;  %v5117_v27 = vsel %vm4140_vm3, %v1464_v40, %v1468_v62  ;;  %v5192_v62 = vrot.slane %v1490_v57, 5  ;;  %v5195_v38 = vld [vmem:[%s4530_s26 + $0x44] sm:$0x1] }
 0x17c   : > { %1274 = vst.msk [vmem:[#allocation2 + $0x24] sm:$0xf] %vm1264_vm14, %v1235_v9  ;;  %v1677_v40 = vrot.slane %v4808_v23, 5  ;;  %v1680_v42 = vrot.slane %v5195_v38, 5  ;;  %v3810_v57 = vld [vmem:[%s6140_s4 + $0xa0] ss:$16 sps:$4 sm:$0xff]  }
 0x17d   : > { %v1233_v4 = vpop.permute.xlu0 %1232  ;;  %1291 = vst.msk [vmem:[#allocation2 + $0x24] sm:$0xf] %vm1281_vm15, %v3960_v41  ;;  %1860 = vrot.lane.b32.xlu1 %v5022_v14, %s6151_s13  ;;  %v1478_v5 = vrot.slane %v1476_v52, 5  ;;  %v1497_v54 = vor.u32 %v1496_v12, %v5192_v62  ;;  %v1500_v52 = vshll.u32 %v5195_v38, 16  ;;  %v3819_v12 = vld [vmem:[%s6140_s4 + $0x88] ss:$16 sps:$4 sm:$0xff]  }
 0x17e   : > { %1273 = vst.msk [vmem:[#allocation2 + $0x20] sm:$0xf] %vm1264_vm14, %v1233_v4  ;;  %v3793_v4 = vld [vmem:[%s6179_s2 + $0x4] ss:$8 sps:$4 sm:$0xff]  }
 0x17f   : > { %1290 = vst.msk [vmem:[#allocation2 + $0x20] sm:$0xf] %vm1281_vm15, %v3960_v41  ;;  %1858 = vrot.lane.b32.xlu0 %v5026_v24, %s6151_s13  ;;  %v1239_v59 = vpop.permute.xlu1 %1238  ;;  %v5113_v13 = vsel %vm4140_vm3, %v1474_v0, %v1478_v5  ;;  %v3800_v0 = vld [vmem:[%s6140_s4 + $0xec] ss:$16 sps:$4 sm:$0xff]   ;;  %v1498_v1 = vrot.slane %v1497_v54, 4 }
 0x180   : > { %1276 = vst.msk [vmem:[#allocation2 + $0x2c] sm:$0xf] %vm1264_vm14, %v1239_v59  ;;  %v3801_v5 = vld [vmem:[#allocation2 + $0x8] sm:$0xff]  }
 0x181   : > { %v1237_v3 = vpop.permute.xlu0 %1236  ;;  %1293 = vst.msk [vmem:[#allocation2 + $0x2c] sm:$0xf] %vm1281_vm15, %v3960_v41  ;;  %1932 = vrot.lane.b32.xlu1 %v5037_v17, %s6159_s14  ;;  %v3835_v54 = vld [vmem:[%s6140_s4 + $0x4c] ss:$16 sps:$4 sm:$0xff]  }
 0x182   : > { %1275 = vst.msk [vmem:[#allocation2 + $0x28] sm:$0xf] %vm1264_vm14, %v1237_v3 }
 0x183   : > { %1292 = vst.msk [vmem:[#allocation2 + $0x28] sm:$0xf] %vm1281_vm15, %v3960_v41  ;;  %1930 = vrot.lane.b32.xlu0 %v5041_v44, %s6159_s14  ;;  %v1014_v55 = vpop.permute.xlu1 %1013  ;;  %s6182_s14 = smov 16  }
 0x184   : > { %1049 = vst.msk [vmem:[#allocation2 + $0x34] sm:$0xf] %vm1035_vm11, %v1014_v55  ;;  %v1502_v55 = vrot.slane %v1500_v52, 5  ;;  %v1514_v52 = vshll.u32 %v4906_v26, 16 }
 0x185   : > { %v1012_v43 = vpop.permute.xlu0 %1011  ;;  %1998 = vrot.lane.b32.xlu1 %v4727_v15, %s6157_s17 }
 0x186   : > { %1048 = vst.msk [vmem:[#allocation2 + $0x30] sm:$0xf] %vm1035_vm11, %v1012_v43  ;;  %v3795_v43 = vld [vmem:[%s6140_s4 + $0xe0] ss:$16 sps:$4 sm:$0xff]   ;;  %v5249_v48 = vsel %vm4140_vm3, %v1498_v1, %v1502_v55  ;;  %v3840_v1 = vld [vmem:[%s6140_s4 + $0x24] ss:$16 sps:$4 sm:$0xff]  }
 0x187   : > { %1996 = vrot.lane.b32.xlu0 %v4730_v39, %s6157_s17  ;;  %v1018_v61 = vpop.permute.xlu1 %1017  ;;  %s6181_s17 = smov 8   ;;  %v1516_v55 = vrot.slane %v1514_v52, 5 }
 0x188   : > { %1051 = vst.msk [vmem:[#allocation2 + $0x3c] sm:$0xf] %vm1035_vm11, %v1018_v61  ;;  %v3804_v61 = vld [vmem:[%s6140_s4 + $0xc4] ss:$16 sps:$4 sm:$0xff]  }
 0x189   : > { %v1016_v36 = vpop.permute.xlu0 %1015  ;;  %2086 = vrot.lane.b32.xlu1 %v5113_v13, %s6155_s20 }
 0x18a   : > { %1050 = vst.msk [vmem:[#allocation2 + $0x38] sm:$0xf] %vm1035_vm11, %v1016_v36  ;;  %v1679_v36 = vrot.slane %v1677_v40, 4  ;;  %v3823_v38 = vld [vmem:[#allocation2 + $0x28] sm:$0xff]  }
 0x18b   : > { %2084 = vrot.lane.b32.xlu0 %v5117_v27, %s6155_s20  ;;  %v1081_v21 = vpop.permute.xlu1 %1080  ;;  %s6185_s20 = smov 48  }
 0x18c   : > { %1116 = vst.msk [vmem:[#allocation2 + $0x34] sm:$0xf] %vm1102_vm12, %v1081_v21  ;;  %v3807_v21 = vld [vmem:[%s6140_s4 + $0xcc] ss:$16 sps:$4 sm:$0xff]  }
 0x18d   : > { %v1079_v35 = vpop.permute.xlu0 %1078  ;;  %2158 = vrot.lane.b32.xlu1 %v5134_v7, %s6180_s24 }
 0x18e   : > { %1115 = vst.msk [vmem:[#allocation2 + $0x30] sm:$0xf] %vm1102_vm12, %v1079_v35 }
 0x18f   : > { %2156 = vrot.lane.b32.xlu0 %v5138_v6, %s6180_s24  ;;  %v1085_v37 = vpop.permute.xlu1 %1084 }
 0x190   : > { %1118 = vst.msk [vmem:[#allocation2 + $0x3c] sm:$0xf] %vm1102_vm12, %v1085_v37  ;;  %v3805_v37 = vld [vmem:[%s6140_s4 + $0xc8] ss:$16 sps:$4 sm:$0xff]  }
 0x191   : > { %v1083_v22 = vpop.permute.xlu0 %1082  ;;  %1566 = vrot.lane.b32.xlu1 %v5022_v14, %s6181_s17  ;;  %v3788_v14 = vld [vmem:[%s6179_s2 + $0x20] ss:$8 sps:$4 sm:$0xff]  }
 0x192   : > { %1117 = vst.msk [vmem:[#allocation2 + $0x38] sm:$0xf] %vm1102_vm12, %v1083_v22  ;;  %3641 = vmatprep.subr.bf16.mxu1 %v3788_v14 }
 0x193   : > { %1564 = vrot.lane.b32.xlu0 %v5026_v24, %s6181_s17  ;;  %v1170_v10 = vpop.permute.xlu1 %1169  ;;  %v3789_v24 = vld [vmem:[%s6179_s2 + $0x24] ss:$8 sps:$4 sm:$0xff]   ;;  %3642 = vmatpush3.bf16.msra.mxu1 %v3788_v14 }
 0x194   : > { %1205 = vst.msk [vmem:[#allocation2 + $0x34] sm:$0xf] %vm1191_vm13, %v1170_v10  ;;  %3673 = vmatprep.subr.bf16.mxu0 %v3789_v24  ;;  %v3812_v10 = vld [vmem:[%s6140_s4 + $0xa4] ss:$16 sps:$4 sm:$0xff]  }
 0x195   : > { %v1168_v53 = vpop.permute.xlu0 %1167  ;;  %1710 = vrot.lane.b32.xlu1 %v5037_v17, %s6182_s14  ;;  %v1484_v17 = vshll.u32 %v4811_v19, 16  ;;  %3674 = vmatpush3.bf16.msra.mxu0 %v3789_v24  ;;  %v5282_v24 = vsel %vm4316_vm6, %v3516_v33, %v1677_v40 }
 0x196   : > { %1204 = vst.msk [vmem:[#allocation2 + $0x30] sm:$0xf] %vm1191_vm13, %v1168_v53  ;;  %3675 = vmatprep.subr.bf16.mxu0 %v3791_v49  ;;  %v5278_v53 = vsel %vm4316_vm6, %v1679_v36, %v1680_v42  ;;  %v3846_v36 = vld [vmem:[%s6140_s4 + $0x4] ss:$16 sps:$4 sm:$0xff]   ;;  %v3849_v42 = vld [vmem:[%s6140_s4 + $0xc] ss:$16 sps:$4 sm:$0xff]  }
 0x197   : > { %1708 = vrot.lane.b32.xlu0 %v5041_v44, %s6182_s14  ;;  %v1174_v50 = vpop.permute.xlu1 %1173  ;;  %v3790_v44 = vld [vmem:[%s6179_s2 + $0x10] ss:$8 sps:$4 sm:$0xff]   ;;  %v1486_v16 = vrot.slane %v1484_v17, 5  ;;  %v3818_v17 = vld [vmem:[%s6140_s4 + $0x84] ss:$16 sps:$4 sm:$0xff]  }
 0x198   : > { %1207 = vst.msk [vmem:[#allocation2 + $0x3c] sm:$0xf] %vm1191_vm13, %v1174_v50  ;;  %3643 = vmatprep.subr.bf16.mxu1 %v3790_v44 }
 0x199   : > { %v1172_v58 = vpop.permute.xlu0 %1171  ;;  %1776 = vrot.lane.b32.xlu1 %v4727_v15, %s6178_s22  ;;  %3644 = vmatpush3.bf16.msra.mxu1 %v3790_v44  ;;  %v1487_v56 = vor.u32 %v1486_v16, %v1483_v32  ;;  %v3826_v32 = vld [vmem:[%s6140_s4 + $0x64] ss:$16 sps:$4 sm:$0xff]  }
 0x19a   : > { %1206 = vst.msk [vmem:[#allocation2 + $0x38] sm:$0xf] %vm1191_vm13, %v1172_v58  ;;  %3676 = vmatpush3.bf16.msra.mxu0 %v3791_v49  ;;  %v3821_v58 = vld [vmem:[%s6140_s4 + $0x8c] ss:$16 sps:$4 sm:$0xff]   ;;  %v3816_v49 = vld [vmem:[%s6140_s4 + $0x80] ss:$16 sps:$4 sm:$0xff]  }
 0x19b   : > { %1774 = vrot.lane.b32.xlu0 %v4730_v39, %s6178_s22  ;;  %v1243_v9 = vpop.permute.xlu1 %1242  ;;  %v3792_v39 = vld [vmem:[%s6179_s2] ss:$8 sps:$4 sm:$0xff]   ;;  %3677 = vmatprep.subr.bf16.mxu0 %v3793_v4  ;;  %v1488_v47 = vrot.slane %v1487_v56, 4  ;;  %v1505_v56 = vshrl.u32 %v4909_v46, 16 }
 0x19c   : > { %1278 = vst.msk [vmem:[#allocation2 + $0x34] sm:$0xf] %vm1264_vm14, %v1243_v9  ;;  %3645 = vmatprep.subr.bf16.mxu1 %v3792_v39  ;;  %v3822_v9 = vld [vmem:[#allocation2 + $0x20] sm:$0xff]  }
 0x19d   : > { %v1241_v15 = vpop.permute.xlu0 %1240  ;;  %1295 = vst.msk [vmem:[#allocation2 + $0x34] sm:$0xf] %vm1281_vm15, %v3960_v41  ;;  %1864 = vrot.lane.b32.xlu1 %v5113_v13, %s6183_s25  ;;  %3646 = vmatpush3.bf16.msra.mxu1 %v3792_v39  ;;  %v5261_v2 = vsel %vm4140_vm3, %v1488_v47, %v5192_v62 }
 0x19e   : > { %1277 = vst.msk [vmem:[#allocation2 + $0x30] sm:$0xf] %vm1264_vm14, %v1241_v15  ;;  %3678 = vmatpush3.bf16.msra.mxu0 %v3793_v4  ;;  %2678 = vmatprep.subr.bf16.mxu1 %v3797_v31  ;;  %v3824_v15 = vld [vmem:[%s6140_s4 + $0x60] ss:$16 sps:$4 sm:$0xff]   ;;  %v3832_v4 = vld [vmem:[%s6140_s4 + $0x44] ss:$16 sps:$4 sm:$0xff]  }
 0x19f   : > { %1294 = vst.msk [vmem:[#allocation2 + $0x30] sm:$0xf] %vm1281_vm15, %v3960_v41  ;;  %1862 = vrot.lane.b32.xlu0 %v5117_v27, %s6183_s25  ;;  %v1247_v59 = vpop.permute.xlu1 %1246  ;;  %3193 = vmatprep.subr.bf16.mxu0 %v3800_v0 }
 0x1a0   : > { %1280 = vst.msk [vmem:[#allocation2 + $0x3c] sm:$0xf] %vm1264_vm14, %v1247_v59  ;;  %3648 = vmatmul.mubr.bf16.vlgmr.msra.gmra.mxu1 %v3801_v5  ;;  %v1518_v59 = vshrl.u32 %v4906_v26, 16 }
 0x1a1   : > { %v1245_v3 = vpop.permute.xlu0 %1244  ;;  %1297 = vst.msk [vmem:[#allocation2 + $0x3c] sm:$0xf] %vm1281_vm15, %v3960_v41  ;;  %1936 = vrot.lane.b32.xlu1 %v5134_v7, %s6184_s0  ;;  %3680 = vmatmul.mubr.bf16.vlgmr.msra.gmra.mxu0 %v3801_v5 }
 0x1a2   : > { %1279 = vst.msk [vmem:[#allocation2 + $0x38] sm:$0xf] %vm1264_vm14, %v1245_v3  ;;  %2679 = vmatpush1.bf16.msra.mxu1 %v3795_v43  ;;  %3194 = vmatpush1.bf16.msra.mxu0 %v3798_v18  ;;  %v1520_v40 = vrot.slane %v1518_v59, 4  ;;  %v1507_v43 = vrot.slane %v1505_v56, 4  ;;  %v5361_v18 = vld [vmem:[%s4530_s26 + $0x50] sm:$0x1] }
 0x1a3   : > { %1296 = vst.msk [vmem:[#allocation2 + $0x38] sm:$0xf] %vm1281_vm15, %v3960_v41  ;;  %1934 = vrot.lane.b32.xlu0 %v5138_v6, %s6184_s0  ;;  %v1555_v30 = vpop.permute.xlu1 %1554  ;;  %2680 = vmatprep.subr.bf16.mxu1 %v3804_v61  ;;  %v3841_v61 = vld [vmem:[%s6140_s4 + $0x28] ss:$16 sps:$4 sm:$0xff]   ;;  %v1532_v59 = vshll.u32 %v4996_v60, 16 }
 0x1a4   : > { %1601 = vst.msk [vmem:[#allocation3 + $0x4] sm:$0xf] %vm658_vm7, %v1555_v30  ;;  %3195 = vmatprep.subr.bf16.mxu0 %v3807_v21  ;;  %3651 = vmatprep.mubr.bf16.mxu1 %v3808_v63  ;;  %v1524_v21 = vshll.u32 %v5361_v18, 16 }
 0x1a5   : > { %v1553_v51 = vpop.permute.xlu0 %1552  ;;  %2002 = vrot.lane.b32.xlu1 %v4808_v23, %s6185_s20  ;;  %3683 = vmatprep.mubr.bf16.mxu0 %v3808_v63  ;;  %v3847_v63 = vld [vmem:[%s6140_s4 + $0x8] ss:$16 sps:$4 sm:$0xff]  }
 0x1a6   : > { %1600 = vst.msk [vmem:[#allocation3] sm:$0xf] %vm658_vm7, %v1553_v51  ;;  %2681 = vmatpush1.bf16.msra.mxu1 %v3802_v45  ;;  %3196 = vmatpush1.bf16.msra.mxu0 %v3805_v37  ;;  %v3836_v0 = vld [vmem:[#allocation2 + $0x30] sm:$0xff]   ;;  %v3843_v51 = vld [vmem:[%s6140_s4 + $0x2c] ss:$16 sps:$4 sm:$0xff]   ;;  %v1521_v45 = vor.u32 %v1520_v40, %v1516_v55 }
 0x1a7   : > { %2000 = vrot.lane.b32.xlu0 %v4811_v19, %s6185_s20  ;;  %v1699_v35 = vpop.permute.xlu1 %1698  ;;  %2682 = vmatprep.subr.bf16.mxu1 %v3812_v10  ;;  %v3844_v37 = vld [vmem:[%s6140_s4] ss:$16 sps:$4 sm:$0xff]   ;;  %v1526_v10 = vrot.slane %v1524_v21, 5 }
 0x1a8   : > { %1745 = vst.msk [vmem:[#allocation3 + $0x4] sm:$0xf] %vm806_vm8, %v1699_v35  ;;  %3652 = vmatmul.mubr.bf16.gmra.mxu1 %v3809_v29  ;;  %3197 = vmatprep.subr.bf16.mxu0 %v3815_v34 }
 0x1a9   : > { %v1697_v22 = vpop.permute.xlu0 %1696  ;;  %2090 = vrot.lane.b32.xlu1 %v5249_v48, %s6186_s15  ;;  %3684 = vmatmul.mubr.bf16.gmra.mxu0 %v3809_v29  ;;  %v1522_v29 = vrot.slane %v1521_v45, 4 }
 0x1aa   : > { %1744 = vst.msk [vmem:[#allocation3] sm:$0xf] %vm806_vm8, %v1697_v22  ;;  %2683 = vmatpush1.bf16.msra.mxu1 %v3810_v57  ;;  %3198 = vmatpush1.bf16.msra.mxu0 %v3813_v11  ;;  %v3837_v5 = vld [vmem:[#allocation2 + $0x38] sm:$0xff]  }
 0x1ab   : > { %2088 = vrot.lane.b32.xlu0 %v5261_v2, %s6186_s15  ;;  %v1765_v14 = vpop.permute.xlu1 %1764  ;;  %2684 = vmatprep.subr.bf16.mxu1 %v3818_v17  ;;  %v5412_v11 = vsel %vm4140_vm3, %v1522_v29, %v1526_v10 }
 0x1ac   : > { %1811 = vst.msk [vmem:[#allocation3 + $0x4] sm:$0xf] %vm873_vm9, %v1765_v14  ;;  %3199 = vmatprep.subr.bf16.mxu0 %v3821_v58  ;;  %3655 = vmatprep.mubr.bf16.mxu1 %v3822_v9  ;;  %v1684_v14 = vrot.slane %v4906_v26, 5  ;;  %v1687_v58 = vrot.slane %v5361_v18, 5 }
 0x1ad   : > { %v1763_v50 = vpop.permute.xlu0 %1762  ;;  %2162 = vrot.lane.b32.xlu1 %v5278_v53, %s6180_s24  ;;  %3687 = vmatprep.mubr.bf16.mxu0 %v3822_v9 }
 0x1ae   : > { %1810 = vst.msk [vmem:[#allocation3] sm:$0xf] %vm873_vm9, %v1763_v50  ;;  %2685 = vmatpush1.bf16.msra.mxu1 %v3816_v49  ;;  %3200 = vmatpush1.bf16.msra.mxu0 %v3819_v12  ;;  %v1686_v17 = vrot.slane %v1684_v14, 4 }
 0x1af   : > { %2160 = vrot.lane.b32.xlu0 %v5282_v24, %s6180_s24  ;;  %v1853_v44 = vpop.permute.xlu1 %1852  ;;  %2686 = vmatprep.subr.bf16.mxu1 %v3826_v32 }
 0x1b0   : > { %1899 = vst.msk [vmem:[#allocation3 + $0x4] sm:$0xf] %vm962_vm10, %v1853_v44  ;;  %3656 = vmatmul.mubr.bf16.gmra.mxu1 %v3823_v38 }
 0x1b1   : > { %v1851_v62 = vpop.permute.xlu0 %1850  ;;  %1570 = vrot.lane.b32.xlu1 %v5113_v13, %s6181_s17  ;;  %v3829_v13 = vld [vmem:[%s6140_s4 + $0x6c] ss:$16 sps:$4 sm:$0xff]   ;;  %3688 = vmatmul.mubr.bf16.gmra.mxu0 %v3823_v38  ;;  %v5428_v38 = vsel %vm4316_vm6, %v1686_v17, %v1687_v58 }
 0x1b2   : > { %1898 = vst.msk [vmem:[#allocation3] sm:$0xf] %vm962_vm10, %v1851_v62  ;;  %3201 = vmatprep.subr.bf16.mxu0 %v3829_v13  ;;  %2687 = vmatpush1.bf16.msra.mxu1 %v3824_v15  ;;  %v3517_v62 = vrot.slane %v4909_v46, 9 }
 0x1b3   : > { %1568 = vrot.lane.b32.xlu0 %v5117_v27, %s6181_s17  ;;  %v1925_v16 = vpop.permute.xlu1 %1924  ;;  %v3827_v27 = vld [vmem:[%s6140_s4 + $0x68] ss:$16 sps:$4 sm:$0xff]   ;;  %2688 = vmatprep.subr.bf16.mxu1 %v3832_v4 }
 0x1b4   : > { %1971 = vst.msk [vmem:[#allocation3 + $0x4] sm:$0xf] %vm1035_vm11, %v1925_v16  ;;  %3202 = vmatpush1.bf16.msra.mxu0 %v3827_v27  ;;  %3659 = vmatprep.mubr.bf16.mxu1 %v3836_v0  ;;  %v5432_v16 = vsel %vm4316_vm6, %v3517_v62, %v1684_v14  ;;  %v5526_v14 = vld [vmem:[%s4530_s26 + $0x64] sm:$0xf] }
 0x1b5   : > { %v1923_v39 = vpop.permute.xlu0 %1922  ;;  %1714 = vrot.lane.b32.xlu1 %v5134_v7, %s6182_s14  ;;  %v1508_v7 = vshll.u32 %v4909_v46, 16  ;;  %3203 = vmatprep.subr.bf16.mxu0 %v3835_v54  ;;  %v1538_v54 = vshll.u32 %v4993_v8, 16 }
 0x1b6   : > { %1970 = vst.msk [vmem:[#allocation3] sm:$0xf] %vm1035_vm11, %v1923_v39  ;;  %2689 = vmatpush1.bf16.msra.mxu1 %v3830_v25  ;;  %3691 = vmatprep.mubr.bf16.mxu0 %v3836_v0 }
 0x1b7   : > { %1712 = vrot.lane.b32.xlu0 %v5138_v6, %s6182_s14  ;;  %v1991_v3 = vpop.permute.xlu1 %1990  ;;  %v3833_v6 = vld [vmem:[%s6140_s4 + $0x48] ss:$16 sps:$4 sm:$0xff]   ;;  %v1510_v30 = vrot.slane %v1508_v7, 5  ;;  %2690 = vmatprep.subr.bf16.mxu1 %v3840_v1 }
 0x1b8   : > { %2037 = vst.msk [vmem:[#allocation3 + $0x4] sm:$0xf] %vm1102_vm12, %v1991_v3  ;;  %3204 = vmatpush1.bf16.msra.mxu0 %v3833_v6  ;;  %3660 = vmatmul.mubr.bf16.gmra.mxu1 %v3837_v5  ;;  %v1337_v3 = vld [vmem:[%s4530_s26 + $0x5c] sm:$0x1] }
 0x1b9   : > { %v1989_v31 = vpop.permute.xlu0 %1988  ;;  %1780 = vrot.lane.b32.xlu1 %v4808_v23, %s6178_s22  ;;  %v3838_v23 = vld [vmem:[%s6140_s4 + $0x20] ss:$16 sps:$4 sm:$0xff]   ;;  %3692 = vmatmul.mubr.bf16.gmra.mxu0 %v3837_v5  ;;  %v1511_v33 = vor.u32 %v1510_v30, %v1507_v43  ;;  %v1548_v0 = vshll.u32 %v1337_v3, 16  ;;  %v1691_v43 = vrot.slane %v4993_v8, 5 }
 0x1ba   : > { %2036 = vst.msk [vmem:[#allocation3] sm:$0xf] %vm1102_vm12, %v1989_v31  ;;  %3205 = vmatprep.subr.bf16.mxu0 %v3843_v51  ;;  %2691 = vmatpush1.bf16.msra.mxu1 %v3838_v23  ;;  %v1534_v31 = vrot.slane %v1532_v59, 5 }
 0x1bb   : > { %1778 = vrot.lane.b32.xlu0 %v4811_v19, %s6178_s22  ;;  %v2079_v47 = vpop.permute.xlu1 %2078  ;;  %2692 = vmatprep.subr.bf16.mxu1 %v3846_v36  ;;  %v1512_v34 = vrot.slane %v1511_v33, 4  ;;  %v1550_v40 = vrot.slane %v1548_v0, 5  ;;  %v1693_v51 = vrot.slane %v1691_v43, 4 }
 0x1bc   : > { %2125 = vst.msk [vmem:[#allocation3 + $0x4] sm:$0xf] %vm1191_vm13, %v2079_v47  ;;  %3206 = vmatpush1.bf16.msra.mxu0 %v3841_v61  ;;  %2710 = vmatprep.mubr.bf16.mxu1 %v3960_v41 }
 0x1bd   : > { %v2077_v19 = vpop.permute.xlu0 %2076  ;;  %1868 = vrot.lane.b32.xlu1 %v5249_v48, %s6183_s25  ;;  %3207 = vmatprep.subr.bf16.mxu0 %v3849_v42  ;;  %v5417_v49 = vsel %vm4140_vm3, %v1512_v34, %v1516_v55  ;;  %v3518_v42 = vrot.slane %v4996_v60, 9  ;;  %v5530_v34 = vld [vmem:[%s4530_s26 + $0x60] sm:$0xf] }
 0x1be   : > { %2124 = vst.msk [vmem:[#allocation3] sm:$0xf] %vm1191_vm13, %v2077_v19  ;;  %2693 = vmatpush1.bf16.msra.mxu1 %v3844_v37  ;;  %3225 = vmatprep.mubr.bf16.mxu0 %v3960_v41  ;;  %v1694_v19 = vrot.slane %v1337_v3, 5  ;;  %v1827_v58 = vshrl.u32 %v5530_v34, 16 }
 0x1bf   : > { %1866 = vrot.lane.b32.xlu0 %v5261_v2, %s6183_s25  ;;  %v2151_v35 = vpop.permute.xlu1 %2150  ;;  %v5509_v37 = vsel %vm4316_vm6, %v3518_v42, %v1691_v43  ;;  %v5597_v43 = vld [vmem:[%s4530_s26 + $0x70] sm:$0xf] }
 0x1c0   : > { %2197 = vst.msk [vmem:[#allocation3 + $0x4] sm:$0xf] %vm1264_vm14, %v2151_v35  ;;  %3208 = vmatpush1.bf16.msra.mxu0 %v3847_v63  ;;  %v5505_v35 = vsel %vm4316_vm6, %v1693_v51, %v1694_v19 }
 0x1c1   : > { %v2149_v22 = vpop.permute.xlu0 %2148  ;;  %2213 = vst.msk [vmem:[#allocation3 + $0x4] sm:$0xf] %vm1281_vm15, %v3960_v41  ;;  %1940 = vrot.lane.b32.xlu1 %v5278_v53, %s6184_s0 }
 0x1c2   : > { %2196 = vst.msk [vmem:[#allocation3] sm:$0xf] %vm1264_vm14, %v2149_v22 }
 0x1c3   : > { %2212 = vst.msk [vmem:[#allocation3] sm:$0xf] %vm1281_vm15, %v3960_v41  ;;  %1938 = vrot.lane.b32.xlu0 %v5282_v24, %s6184_s0  ;;  %v1559_v57 = vpop.permute.xlu1 %1558 }
 0x1c4   : > { %1603 = vst.msk [vmem:[#allocation3 + $0xc] sm:$0xf] %vm658_vm7, %v1559_v57 }
 0x1c5   : > { %v1557_v50 = vpop.permute.xlu0 %1556  ;;  %2006 = vrot.lane.b32.xlu1 %v4906_v26, %s6185_s20 }
 0x1c6   : > { %1602 = vst.msk [vmem:[#allocation3 + $0x8] sm:$0xf] %vm658_vm7, %v1557_v50  ;;  %v1836_v50 = vshll.u32 %v5526_v14, 16 }
 0x1c7   : > { %2004 = vrot.lane.b32.xlu0 %v4909_v46, %s6185_s20  ;;  %v1703_v44 = vpop.permute.xlu1 %1702 }
 0x1c8   : > { %1747 = vst.msk [vmem:[#allocation3 + $0xc] sm:$0xf] %vm806_vm8, %v1703_v44  ;;  %v1830_v44 = vshll.u32 %v5530_v34, 16  ;;  %v1838_v62 = vrot.slane %v1836_v50, 5 }
 0x1c9   : > { %v1701_v12 = vpop.permute.xlu0 %1700  ;;  %2094 = vrot.lane.b32.xlu1 %v5412_v11, %s6186_s15 }
 0x1ca   : > { %1746 = vst.msk [vmem:[#allocation3 + $0x8] sm:$0xf] %vm806_vm8, %v1701_v12  ;;  %v3850_v9 = vld [vmem:[#allocation3] sm:$0xff]  }
 0x1cb   : > { %2092 = vrot.lane.b32.xlu0 %v5417_v49, %s6186_s15  ;;  %v1769_v32 = vpop.permute.xlu1 %1768  ;;  %2711 = vmatmul.mubr.bf16.vlgmr.msra.gmra.mxu1 %v3850_v9 }
 0x1cc   : > { %3226 = vmatmul.mubr.bf16.vlgmr.msra.gmra.mxu0 %v3850_v9  ;;  %1813 = vst.msk [vmem:[#allocation3 + $0xc] sm:$0xf] %vm873_vm9, %v1769_v32  ;;  %2720 = vmatprep.mubr.bf16.mxu1 %v3960_v41  ;;  %v1829_v32 = vrot.slane %v1827_v58, 4 }
 0x1cd   : > { %v1767_v15 = vpop.permute.xlu0 %1766  ;;  %3235 = vmatprep.mubr.bf16.mxu0 %v3960_v41  ;;  %2166 = vrot.lane.b32.xlu1 %v5428_v38, %s6180_s24 }
 0x1ce   : > { %1812 = vst.msk [vmem:[#allocation3 + $0x8] sm:$0xf] %vm873_vm9, %v1767_v15 }
 0x1cf   : > { %2164 = vrot.lane.b32.xlu0 %v5432_v16, %s6180_s24  ;;  %v1857_v13 = vpop.permute.xlu1 %1856 }
 0x1d0   : > { %1901 = vst.msk [vmem:[#allocation3 + $0xc] sm:$0xf] %vm962_vm10, %v1857_v13 }
 0x1d1   : > { %v1855_v39 = vpop.permute.xlu0 %1854  ;;  %1574 = vrot.lane.b32.xlu1 %v5249_v48, %s6181_s17  ;;  %v1542_v48 = vshrl.u32 %v4993_v8, 16 }
 0x1d2   : > { %1900 = vst.msk [vmem:[#allocation3 + $0x8] sm:$0xf] %vm962_vm10, %v1855_v39 }
 0x1d3   : > { %1572 = vrot.lane.b32.xlu0 %v5261_v2, %s6181_s17  ;;  %v1929_v27 = vpop.permute.xlu1 %1928  ;;  %v1529_v2 = vshrl.u32 %v4996_v60, 16 }
 0x1d4   : > { %1973 = vst.msk [vmem:[#allocation3 + $0xc] sm:$0xf] %vm1035_vm11, %v1929_v27 }
 0x1d5   : > { %v1927_v4 = vpop.permute.xlu0 %1926  ;;  %1718 = vrot.lane.b32.xlu1 %v5278_v53, %s6182_s14  ;;  %v1540_v53 = vrot.slane %v1538_v54, 5  ;;  %v1531_v25 = vrot.slane %v1529_v2, 4 }
 0x1d6   : > { %1972 = vst.msk [vmem:[#allocation3 + $0x8] sm:$0xf] %vm1035_vm11, %v1927_v4 }
 0x1d7   : > { %1716 = vrot.lane.b32.xlu0 %v5282_v24, %s6182_s14  ;;  %v1995_v52 = vpop.permute.xlu1 %1994  ;;  %v1544_v24 = vrot.slane %v1542_v48, 4  ;;  %v1535_v5 = vor.u32 %v1534_v31, %v1531_v25  ;;  %v1917_v48 = vrot.slane %v5526_v14, 5  ;;  %v3519_v25 = vrot.slane %v5530_v34, 9 }
 0x1d8   : > { %2039 = vst.msk [vmem:[#allocation3 + $0xc] sm:$0xf] %vm1102_vm12, %v1995_v52 }
 0x1d9   : > { %v1993_v56 = vpop.permute.xlu0 %1992  ;;  %1784 = vrot.lane.b32.xlu1 %v4906_v26, %s6178_s22  ;;  %v1545_v26 = vor.u32 %v1544_v24, %v1540_v53  ;;  %v1536_v47 = vrot.slane %v1535_v5, 4 }
 0x1da   : > { %2038 = vst.msk [vmem:[#allocation3 + $0x8] sm:$0xf] %vm1102_vm12, %v1993_v56 }
 0x1db   : > { %1782 = vrot.lane.b32.xlu0 %v4909_v46, %s6178_s22  ;;  %v2083_v7 = vpop.permute.xlu1 %2082  ;;  %v1546_v55 = vrot.slane %v1545_v26, 4  ;;  %v5494_v36 = vsel %vm4140_vm3, %v1536_v47, %v1540_v53  ;;  %v1919_v53 = vrot.slane %v1917_v48, 4  ;;  %v1341_v47 = vld [vmem:[%s4530_s26 + $0x6c] sm:$0xf] }
 0x1dc   : > { %2127 = vst.msk [vmem:[#allocation3 + $0xc] sm:$0xf] %vm1191_vm13, %v2083_v7  ;;  %v2053_v19 = vshrl.u32 %v1341_v47, 16 }
 0x1dd   : > { %v2081_v6 = vpop.permute.xlu0 %2080  ;;  %1872 = vrot.lane.b32.xlu1 %v5412_v11, %s6183_s25  ;;  %v5490_v23 = vsel %vm4140_vm3, %v1546_v55, %v1550_v40 }
 0x1de   : > { %2126 = vst.msk [vmem:[#allocation3 + $0x8] sm:$0xf] %vm1191_vm13, %v2081_v6 }
 0x1df   : > { %1870 = vrot.lane.b32.xlu0 %v5417_v49, %s6183_s25  ;;  %v2155_v46 = vpop.permute.xlu1 %2154 }
 0x1e0   : > { %2199 = vst.msk [vmem:[#allocation3 + $0xc] sm:$0xf] %vm1264_vm14, %v2155_v46  ;;  %v1918_v46 = vsel %vm4316_vm6, %v3519_v25, %v1917_v48 }
 0x1e1   : > { %v2153_v1 = vpop.permute.xlu0 %2152  ;;  %2215 = vst.msk [vmem:[#allocation3 + $0xc] sm:$0xf] %vm1281_vm15, %v3960_v41  ;;  %1944 = vrot.lane.b32.xlu1 %v5428_v38, %s6184_s0 }
 0x1e2   : > { %2198 = vst.msk [vmem:[#allocation3 + $0x8] sm:$0xf] %vm1264_vm14, %v2153_v1 }
 0x1e3   : > { %2214 = vst.msk [vmem:[#allocation3 + $0x8] sm:$0xf] %vm1281_vm15, %v3960_v41  ;;  %1942 = vrot.lane.b32.xlu0 %v5432_v16, %s6184_s0  ;;  %v1563_v30 = vpop.permute.xlu1 %1562 }
 0x1e4   : > { %1605 = vst.msk [vmem:[#allocation3 + $0x14] sm:$0xf] %vm658_vm7, %v1563_v30 }
 0x1e5   : > { %v1561_v18 = vpop.permute.xlu0 %1560  ;;  %2010 = vrot.lane.b32.xlu1 %v4993_v8, %s6185_s20 }
 0x1e6   : > { %1604 = vst.msk [vmem:[#allocation3 + $0x10] sm:$0xf] %vm658_vm7, %v1561_v18  ;;  %v2062_v18 = vshll.u32 %v5597_v43, 16 }
 0x1e7   : > { %2008 = vrot.lane.b32.xlu0 %v4996_v60, %s6185_s20  ;;  %v1707_v61 = vpop.permute.xlu1 %1706 }
 0x1e8   : > { %1749 = vst.msk [vmem:[#allocation3 + $0x14] sm:$0xf] %vm806_vm8, %v1707_v61  ;;  %v2056_v61 = vshll.u32 %v1341_v47, 16  ;;  %v2064_v42 = vrot.slane %v2062_v18, 5 }
 0x1e9   : > { %v1705_v45 = vpop.permute.xlu0 %1704  ;;  %2098 = vrot.lane.b32.xlu1 %v5490_v23, %s6186_s15 }
 0x1ea   : > { %1748 = vst.msk [vmem:[#allocation3 + $0x10] sm:$0xf] %vm806_vm8, %v1705_v45  ;;  %v3851_v21 = vld [vmem:[#allocation3 + $0x8] sm:$0xff]  }
 0x1eb   : > { %2096 = vrot.lane.b32.xlu0 %v5494_v36, %s6186_s15  ;;  %v1773_v33 = vpop.permute.xlu1 %1772  ;;  %2721 = vmatmul.mubr.bf16.gmra.mxu1 %v3851_v21 }
 0x1ec   : > { %3236 = vmatmul.mubr.bf16.gmra.mxu0 %v3851_v21  ;;  %1815 = vst.msk [vmem:[#allocation3 + $0x14] sm:$0xf] %vm873_vm9, %v1773_v33  ;;  %2730 = vmatprep.mubr.bf16.mxu1 %v3960_v41  ;;  %v2058_v33 = vrot.slane %v2056_v61, 5 }
 0x1ed   : > { %v1771_v22 = vpop.permute.xlu0 %1770  ;;  %3245 = vmatprep.mubr.bf16.mxu0 %v3960_v41  ;;  %2170 = vrot.lane.b32.xlu1 %v5505_v35, %s6180_s24 }
 0x1ee   : > { %1814 = vst.msk [vmem:[#allocation3 + $0x10] sm:$0xf] %vm873_vm9, %v1771_v22 }
 0x1ef   : > { %2168 = vrot.lane.b32.xlu0 %v5509_v37, %s6180_s24  ;;  %v1861_v63 = vpop.permute.xlu1 %1860 }
 0x1f0   : > { %1903 = vst.msk [vmem:[#allocation3 + $0x14] sm:$0xf] %vm962_vm10, %v1861_v63 }
 0x1f1   : > { %v1859_v29 = vpop.permute.xlu0 %1858  ;;  %1578 = vrot.lane.b32.xlu1 %v5412_v11, %s6181_s17  ;;  %v1840_v11 = vshrl.u32 %v5526_v14, 16 }
 0x1f2   : > { %1902 = vst.msk [vmem:[#allocation3 + $0x10] sm:$0xf] %vm962_vm10, %v1859_v29 }
 0x1f3   : > { %1576 = vrot.lane.b32.xlu0 %v5417_v49, %s6181_s17  ;;  %v1933_v10 = vpop.permute.xlu1 %1932  ;;  %v1842_v12 = vrot.slane %v1840_v11, 4 }
 0x1f4   : > { %1975 = vst.msk [vmem:[#allocation3 + $0x14] sm:$0xf] %vm1035_vm11, %v1933_v10 }
 0x1f5   : > { %v1931_v57 = vpop.permute.xlu0 %1930  ;;  %1722 = vrot.lane.b32.xlu1 %v5428_v38, %s6182_s14  ;;  %v1340_v38 = vld [vmem:[%s4530_s26 + $0x68] sm:$0x1] }
 0x1f6   : > { %1974 = vst.msk [vmem:[#allocation3 + $0x10] sm:$0xf] %vm1035_vm11, %v1931_v57  ;;  %v1846_v13 = vshll.u32 %v1340_v38, 16  ;;  %v1920_v24 = vrot.slane %v1340_v38, 5 }
 0x1f7   : > { %1720 = vrot.lane.b32.xlu0 %v5432_v16, %s6182_s14  ;;  %v1999_v17 = vpop.permute.xlu1 %1998  ;;  %v1832_v16 = vrot.slane %v1830_v44, 5 }
 0x1f8   : > { %2041 = vst.msk [vmem:[#allocation3 + $0x14] sm:$0xf] %vm1102_vm12, %v1999_v17  ;;  %v1848_v54 = vrot.slane %v1846_v13, 5  ;;  %v1921_v26 = vsel %vm4316_vm6, %v1919_v53, %v1920_v24 }
 0x1f9   : > { %v1997_v49 = vpop.permute.xlu0 %1996  ;;  %1788 = vrot.lane.b32.xlu1 %v4993_v8, %s6178_s22  ;;  %v1843_v8 = vor.u32 %v1842_v12, %v1838_v62  ;;  %v1833_v39 = vor.u32 %v1832_v16, %v1829_v32 }
 0x1fa   : > { %2040 = vst.msk [vmem:[#allocation3 + $0x10] sm:$0xf] %vm1102_vm12, %v1997_v49 }
 0x1fb   : > { %1786 = vrot.lane.b32.xlu0 %v4996_v60, %s6178_s22  ;;  %v2087_v9 = vpop.permute.xlu1 %2086  ;;  %v1844_v4 = vrot.slane %v1843_v8, 4  ;;  %v1834_v2 = vrot.slane %v1833_v39, 4 }
 0x1fc   : > { %2129 = vst.msk [vmem:[#allocation3 + $0x14] sm:$0xf] %vm1191_vm13, %v2087_v9  ;;  %v3520_v9 = vrot.slane %v1341_v47, 9 }
 0x1fd   : > { %v2085_v15 = vpop.permute.xlu0 %2084  ;;  %1876 = vrot.lane.b32.xlu1 %v5490_v23, %s6183_s25  ;;  %v1849_v56 = vsel %vm4140_vm3, %v1844_v4, %v1848_v54  ;;  %v1839_v3 = vsel %vm4140_vm3, %v1834_v2, %v1838_v62 }
 0x1fe   : > { %2128 = vst.msk [vmem:[#allocation3 + $0x10] sm:$0xf] %vm1191_vm13, %v2085_v15 }
 0x1ff   : > { %1874 = vrot.lane.b32.xlu0 %v5494_v36, %s6183_s25  ;;  %v2159_v60 = vpop.permute.xlu1 %2158 }
 0x200   : > { %2201 = vst.msk [vmem:[#allocation3 + $0x14] sm:$0xf] %vm1264_vm14, %v2159_v60 }
 0x201   : > { %v2157_v27 = vpop.permute.xlu0 %2156  ;;  %2217 = vst.msk [vmem:[#allocation3 + $0x14] sm:$0xf] %vm1281_vm15, %v3960_v41  ;;  %1948 = vrot.lane.b32.xlu1 %v5505_v35, %s6184_s0 }
 0x202   : > { %2200 = vst.msk [vmem:[#allocation3 + $0x10] sm:$0xf] %vm1264_vm14, %v2157_v27 }
 0x203   : > { %2216 = vst.msk [vmem:[#allocation3 + $0x10] sm:$0xf] %vm1281_vm15, %v3960_v41  ;;  %1946 = vrot.lane.b32.xlu0 %v5509_v37, %s6184_s0  ;;  %v1567_v52 = vpop.permute.xlu1 %1566 }
 0x204   : > { %1607 = vst.msk [vmem:[#allocation3 + $0x1c] sm:$0xf] %vm658_vm7, %v1567_v52 }
 0x205   : > { %v1565_v59 = vpop.permute.xlu0 %1564  ;;  %2014 = vrot.lane.b32.xlu1 %v5526_v14, %s6185_s20 }
 0x206   : > { %1606 = vst.msk [vmem:[#allocation3 + $0x18] sm:$0xf] %vm658_vm7, %v1565_v59 }
 0x207   : > { %2012 = vrot.lane.b32.xlu0 %v5530_v34, %s6185_s20  ;;  %v1711_v7 = vpop.permute.xlu1 %1710 }
 0x208   : > { %1751 = vst.msk [vmem:[#allocation3 + $0x1c] sm:$0xf] %vm806_vm8, %v1711_v7 }
 0x209   : > { %v1709_v31 = vpop.permute.xlu0 %1708  ;;  %2102 = vrot.lane.b32.xlu1 %v1849_v56, %s6186_s15 }
 0x20a   : > { %1750 = vst.msk [vmem:[#allocation3 + $0x18] sm:$0xf] %vm806_vm8, %v1709_v31  ;;  %v3852_v6 = vld [vmem:[#allocation3 + $0x10] sm:$0xff]  }
 0x20b   : > { %2100 = vrot.lane.b32.xlu0 %v1839_v3, %s6186_s15  ;;  %v1777_v0 = vpop.permute.xlu1 %1776  ;;  %2731 = vmatmul.mubr.bf16.gmra.mxu1 %v3852_v6 }
 0x20c   : > { %3246 = vmatmul.mubr.bf16.gmra.mxu0 %v3852_v6  ;;  %1817 = vst.msk [vmem:[#allocation3 + $0x1c] sm:$0xf] %vm873_vm9, %v1777_v0  ;;  %2740 = vmatprep.mubr.bf16.mxu1 %v3960_v41 }
 0x20d   : > { %v1775_v5 = vpop.permute.xlu0 %1774  ;;  %3255 = vmatprep.mubr.bf16.mxu0 %v3960_v41  ;;  %2174 = vrot.lane.b32.xlu1 %v1921_v26, %s6180_s24 }
 0x20e   : > { %1816 = vst.msk [vmem:[#allocation3 + $0x18] sm:$0xf] %vm873_vm9, %v1775_v5 }
 0x20f   : > { %2172 = vrot.lane.b32.xlu0 %v1918_v46, %s6180_s24  ;;  %v1865_v1 = vpop.permute.xlu1 %1864 }
 0x210   : > { %1905 = vst.msk [vmem:[#allocation3 + $0x1c] sm:$0xf] %vm962_vm10, %v1865_v1 }
 0x211   : > { %v1863_v55 = vpop.permute.xlu0 %1862  ;;  %1582 = vrot.lane.b32.xlu1 %v5490_v23, %s6181_s17  ;;  %v2066_v23 = vshrl.u32 %v5597_v43, 16 }
 0x212   : > { %1904 = vst.msk [vmem:[#allocation3 + $0x18] sm:$0xf] %vm962_vm10, %v1863_v55 }
 0x213   : > { %1580 = vrot.lane.b32.xlu0 %v5494_v36, %s6181_s17  ;;  %v1937_v40 = vpop.permute.xlu1 %1936  ;;  %v2068_v45 = vrot.slane %v2066_v23, 4 }
 0x214   : > { %1977 = vst.msk [vmem:[#allocation3 + $0x1c] sm:$0xf] %vm1035_vm11, %v1937_v40 }
 0x215   : > { %v1935_v30 = vpop.permute.xlu0 %1934  ;;  %1726 = vrot.lane.b32.xlu1 %v5505_v35, %s6182_s14  ;;  %v2055_v35 = vrot.slane %v2053_v19, 4  ;;  %v2069_v63 = vor.u32 %v2068_v45, %v2064_v42 }
 0x216   : > { %1976 = vst.msk [vmem:[#allocation3 + $0x18] sm:$0xf] %vm1035_vm11, %v1935_v30 }
 0x217   : > { %1724 = vrot.lane.b32.xlu0 %v5509_v37, %s6182_s14  ;;  %v2003_v51 = vpop.permute.xlu1 %2002  ;;  %v1343_v37 = vld [vmem:[%s4530_s26 + $0x74] sm:$0x1]  ;;  %v2070_v50 = vrot.slane %v2069_v63, 4  ;;  %s3862_s26 = sshll.u32 %s3961_s21, 4  ;;  %s3863_s26 = int_to_ptr.vmem [resolvable:$false] %s3862_s26 }
 0x218   : > { %2043 = vst.msk [vmem:[#allocation3 + $0x1c] sm:$0xf] %vm1102_vm12, %v2003_v51  ;;  %v2072_v29 = vshll.u32 %v1343_v37, 16  ;;  %v2146_v12 = vrot.slane %v1343_v37, 5  ;;  %s3864_s17 = scalar_lea.vmem %s3863_s26, 8192 }
 0x219   : > { %v2001_v36 = vpop.permute.xlu0 %2000  ;;  %1792 = vrot.lane.b32.xlu1 %v5526_v14, %s6178_s22  ;;  %v2059_v14 = vor.u32 %v2058_v33, %v2055_v35 }
 0x21a   : > { %2042 = vst.msk [vmem:[#allocation3 + $0x18] sm:$0xf] %vm1102_vm12, %v2001_v36  ;;  %v2074_v11 = vrot.slane %v2072_v29, 5 }
 0x21b   : > { %1790 = vrot.lane.b32.xlu0 %v5530_v34, %s6178_s22  ;;  %v2091_v21 = vpop.permute.xlu1 %2090  ;;  %v2143_v34 = vrot.slane %v5597_v43, 5  ;;  %v2060_v58 = vrot.slane %v2059_v14, 4  ;;  %s345_s22 = sand.u32 1, %s3926_s28  }
 0x21c   : > { %2131 = vst.msk [vmem:[#allocation3 + $0x1c] sm:$0xf] %vm1191_vm13, %v2091_v21  ;;  %v2075_v49 = vsel %vm4140_vm3, %v2070_v50, %v2074_v11  ;;  %v5725_v50 = vld [vmem:[%s6139_s3 + $0x1] ss:$0 sm:$0xff]  ;;  %s6084_s2 = scalar_lea.sflag [#allocation5], %s345_s22 }
 0x21d   : > { %v2089_v22 = vpop.permute.xlu0 %2088  ;;  %1880 = vrot.lane.b32.xlu1 %v1849_v56, %s6183_s25  ;;  %v2145_v62 = vrot.slane %v2143_v34, 4  ;;  %v2065_v32 = vsel %vm4140_vm3, %v2060_v58, %v2064_v42  ;;  %v2144_v60 = vsel %vm4316_vm6, %v3520_v9, %v2143_v34  ;;  %v5720_v34 = vld [vmem:[%s6142_s6] ss:$0 sm:$0xff] }
 0x21e   : > { %2130 = vst.msk [vmem:[#allocation3 + $0x18] sm:$0xf] %vm1191_vm13, %v2089_v22  ;;  %v5734_v9 = vld [vmem:[%s6143_s7] ss:$0 sm:$0xff] }
 0x21f   : > { %1878 = vrot.lane.b32.xlu0 %v1839_v3, %s6183_s25  ;;  %v2163_v10 = vpop.permute.xlu1 %2162  ;;  %v2147_v8 = vsel %vm4316_vm6, %v2145_v62, %v2146_v12 }
 0x220   : > { %2203 = vst.msk [vmem:[#allocation3 + $0x1c] sm:$0xf] %vm1264_vm14, %v2163_v10  ;;  %v5713_v10 = vld [vmem:[%s6139_s3] ss:$0 sm:$0xff] }
 0x221   : > { %v2161_v57 = vpop.permute.xlu0 %2160  ;;  %2219 = vst.msk [vmem:[#allocation3 + $0x1c] sm:$0xf] %vm1281_vm15, %v3960_v41  ;;  %1952 = vrot.lane.b32.xlu1 %v1921_v26, %s6184_s0 }
 0x222   : > { %2202 = vst.msk [vmem:[#allocation3 + $0x18] sm:$0xf] %vm1264_vm14, %v2161_v57 }
 0x223   : > { %2218 = vst.msk [vmem:[#allocation3 + $0x18] sm:$0xf] %vm1281_vm15, %v3960_v41  ;;  %1950 = vrot.lane.b32.xlu0 %v1918_v46, %s6184_s0  ;;  %v1571_v17 = vpop.permute.xlu1 %1570  ;;  %s3598_s0 = sshll.u32 %s3934_s30, 5 }
 0x224   : > { %1609 = vst.msk [vmem:[#allocation3 + $0x24] sm:$0xf] %vm658_vm7, %v1571_v17 }
 0x225   : > { %v1569_v44 = vpop.permute.xlu0 %1568  ;;  %2018 = vrot.lane.b32.xlu1 %v5597_v43, %s6185_s20 }
 0x226   : > { %1608 = vst.msk [vmem:[#allocation3 + $0x20] sm:$0xf] %vm658_vm7, %v1569_v44 }
 0x227   : > { %2016 = vrot.lane.b32.xlu0 %v1341_v47, %s6185_s20  ;;  %v1715_v38 = vpop.permute.xlu1 %1714  ;;  %s3594_s20 = sshll.u32 %s3938_s9, 6 }
 0x228   : > { %1753 = vst.msk [vmem:[#allocation3 + $0x24] sm:$0xf] %vm806_vm8, %v1715_v38  ;;  %v5739_v38 = vld [vmem:[%s6142_s6 + $0x1] ss:$0 sm:$0xff]  ;;  %s3384_s30 = sadd.s32 %s3598_s0, %s3594_s20 }
 0x229   : > { %v1713_v16 = vpop.permute.xlu0 %1712  ;;  %2106 = vrot.lane.b32.xlu1 %v2075_v49, %s6186_s15  ;;  %s3595_s9 = sshll.u32 %s3384_s30, 7 }
 0x22a   : > { %1752 = vst.msk [vmem:[#allocation3 + $0x20] sm:$0xf] %vm806_vm8, %v1713_v16  ;;  %v3853_v15 = vld [vmem:[#allocation3 + $0x18] sm:$0xff]   ;;  %s6076_s13 = scalar_lea.hbm %s6144_s8, %s3595_s9 }
 0x22b   : > { %2104 = vrot.lane.b32.xlu0 %v2065_v32, %s6186_s15  ;;  %v1781_v13 = vpop.permute.xlu1 %1780  ;;  %2741 = vmatmul.mubr.bf16.gmra.mxu1 %v3853_v15 }
 0x22c   : > { %3256 = vmatmul.mubr.bf16.gmra.mxu0 %v3853_v15  ;;  %1819 = vst.msk [vmem:[#allocation3 + $0x24] sm:$0xf] %vm873_vm9, %v1781_v13  ;;  %2750 = vmatprep.mubr.bf16.mxu1 %v3960_v41 }
 0x22d   : > { %v1779_v28 = vpop.permute.xlu0 %1778  ;;  %3265 = vmatprep.mubr.bf16.mxu0 %v3960_v41  ;;  %2178 = vrot.lane.b32.xlu1 %v2147_v8, %s6180_s24 }
 0x22e   : > { %1818 = vst.msk [vmem:[#allocation3 + $0x20] sm:$0xf] %vm873_vm9, %v1779_v28 }
 0x22f   : > { %2176 = vrot.lane.b32.xlu0 %v2144_v60, %s6180_s24  ;;  %v1869_v39 = vpop.permute.xlu1 %1868  ;;  %v5752_v60 = vld [vmem:[%s6143_s7 + $0x1] ss:$0 sm:$0xff]  ;;  %s3498_s24 = sshll.u32 %s345_s22, 8 }
 0x230   : > { %1907 = vst.msk [vmem:[#allocation3 + $0x24] sm:$0xf] %vm962_vm10, %v1869_v39  ;;  %s5928_s25 = scalar_lea.vmem [#allocation4], %s3498_s24 }
 0x231   : > { %v1867_v20 = vpop.permute.xlu0 %1866  ;;  %s3387_s15 = sshll.u32 %s5928_s25, 4  ;;  %s6078_s15 = int_to_ptr.vmem [resolvable:$true] %s3387_s15 }
 0x232   : > { %1906 = vst.msk [vmem:[#allocation3 + $0x20] sm:$0xf] %vm962_vm10, %v1867_v20  ;;  %s3858_s16 = scalar_lea.vmem %s6078_s15, 4096  ;;  %p3865_p4 = scmp.lt.s32.totalorder %s6078_s15, %s3863_s26 }
 0x233   : > { %v1941_v27 = vpop.permute.xlu1 %1940  ;;  %p3859_p0 = scmp.ne.s32.totalorder %s6078_s15, %s3858_s16  ;;  %p3866_p5 = scmp.lt.s32.totalorder %s3864_s17, %s3858_s16 }
 0x234   : > { %1979 = vst.msk [vmem:[#allocation3 + $0x24] sm:$0xf] %vm1035_vm11, %v1941_v27 }
 0x235   : > { %v1939_v4 = vpop.permute.xlu0 %1938  ;;  %p3860_p1 = pnand %p3859_p0, %p4059_p3  ;;  %p3867_p6 = por %p3866_p5, %p3865_p4 }
 0x236   : > { %1978 = vst.msk [vmem:[#allocation3 + $0x20] sm:$0xf] %vm1035_vm11, %v1939_v4 }
 0x237   : > { %v2007_v54 = vpop.permute.xlu1 %2006  ;;  %p3861_p2 = pneg %p3860_p1 }
 0x238   : > { %2045 = vst.msk [vmem:[#allocation3 + $0x24] sm:$0xf] %vm1102_vm12, %v2007_v54 }
 0x239   : > { %v2005_v48 = vpop.permute.xlu0 %2004  ;;  %p3868_p7 = pnand %p3867_p6, %p3861_p2 }
 0x23a   : > { %2044 = vst.msk [vmem:[#allocation3 + $0x20] sm:$0xf] %vm1102_vm12, %v2005_v48 }
 0x23b   : > { %v2095_v52 = vpop.permute.xlu1 %2094 }
 0x23c   : > { %2133 = vst.msk [vmem:[#allocation3 + $0x24] sm:$0xf] %vm1191_vm13, %v2095_v52 }
 0x23d   : > { %v2093_v2 = vpop.permute.xlu0 %2092 }
 0x23e   : > { %2132 = vst.msk [vmem:[#allocation3 + $0x20] sm:$0xf] %vm1191_vm13, %v2093_v2 }
 0x23f   : > { %v2167_v59 = vpop.permute.xlu1 %2166 }
 0x240   : > { %2205 = vst.msk [vmem:[#allocation3 + $0x24] sm:$0xf] %vm1264_vm14, %v2167_v59 }
 0x241   : > { %v2165_v56 = vpop.permute.xlu0 %2164  ;;  %2221 = vst.msk [vmem:[#allocation3 + $0x24] sm:$0xf] %vm1281_vm15, %v3960_v41 }
 0x242   : > { %2204 = vst.msk [vmem:[#allocation3 + $0x20] sm:$0xf] %vm1264_vm14, %v2165_v56 }
 0x243   : > { %2220 = vst.msk [vmem:[#allocation3 + $0x20] sm:$0xf] %vm1281_vm15, %v3960_v41  ;;  %v1575_v53 = vpop.permute.xlu1 %1574 }
 0x244   : > { %1611 = vst.msk [vmem:[#allocation3 + $0x2c] sm:$0xf] %vm658_vm7, %v1575_v53 }
 0x245   : > { %v1573_v24 = vpop.permute.xlu0 %1572 }
 0x246   : > { %1610 = vst.msk [vmem:[#allocation3 + $0x28] sm:$0xf] %vm658_vm7, %v1573_v24 }
 0x247   : > { %v1719_v7 = vpop.permute.xlu1 %1718 }
 0x248   : > { %1755 = vst.msk [vmem:[#allocation3 + $0x2c] sm:$0xf] %vm806_vm8, %v1719_v7 }
 0x249   : > { %v1717_v3 = vpop.permute.xlu0 %1716 }
 0x24a   : > { %1754 = vst.msk [vmem:[#allocation3 + $0x28] sm:$0xf] %vm806_vm8, %v1717_v3  ;;  %v3854_v25 = vld [vmem:[#allocation3 + $0x20] sm:$0xff]  }
 0x24b   : > { %v1785_v31 = vpop.permute.xlu1 %1784  ;;  %2751 = vmatmul.mubr.bf16.gmra.mxu1 %v3854_v25  ;;  %3266 = vmatmul.mubr.bf16.gmra.mxu0 %v3854_v25 }
 0x24c   : > { %1821 = vst.msk [vmem:[#allocation3 + $0x2c] sm:$0xf] %vm873_vm9, %v1785_v31  ;;  %2760 = vmatprep.mubr.bf16.mxu1 %v3960_v41  ;;  %3275 = vmatprep.mubr.bf16.mxu0 %v3960_v41 }
 0x24d   : > { %v1783_v6 = vpop.permute.xlu0 %1782 }
 0x24e   : > { %1820 = vst.msk [vmem:[#allocation3 + $0x28] sm:$0xf] %vm873_vm9, %v1783_v6 }
 0x24f   : > { %v1873_v26 = vpop.permute.xlu1 %1872 }
 0x250   : > { %1909 = vst.msk [vmem:[#allocation3 + $0x2c] sm:$0xf] %vm962_vm10, %v1873_v26 }
 0x251   : > { %v1871_v0 = vpop.permute.xlu0 %1870 }
 0x252   : > { %1908 = vst.msk [vmem:[#allocation3 + $0x28] sm:$0xf] %vm962_vm10, %v1871_v0 }
 0x253   : > { %v1945_v46 = vpop.permute.xlu1 %1944 }
 0x254   : > { %1981 = vst.msk [vmem:[#allocation3 + $0x2c] sm:$0xf] %vm1035_vm11, %v1945_v46 }
 0x255   : > { %v1943_v5 = vpop.permute.xlu0 %1942 }
 0x256   : > { %1980 = vst.msk [vmem:[#allocation3 + $0x28] sm:$0xf] %vm1035_vm11, %v1943_v5 }
 0x257   : > { %v2011_v1 = vpop.permute.xlu1 %2010 }
 0x258   : > { %2047 = vst.msk [vmem:[#allocation3 + $0x2c] sm:$0xf] %vm1102_vm12, %v2011_v1 }
 0x259   : > { %v2009_v55 = vpop.permute.xlu0 %2008 }
 0x25a   : > { %2046 = vst.msk [vmem:[#allocation3 + $0x28] sm:$0xf] %vm1102_vm12, %v2009_v55 }
 0x25b   : > { %v2099_v40 = vpop.permute.xlu1 %2098 }
 0x25c   : > { %2135 = vst.msk [vmem:[#allocation3 + $0x2c] sm:$0xf] %vm1191_vm13, %v2099_v40 }
 0x25d   : > { %v2097_v43 = vpop.permute.xlu0 %2096 }
 0x25e   : > { %2134 = vst.msk [vmem:[#allocation3 + $0x28] sm:$0xf] %vm1191_vm13, %v2097_v43 }
 0x25f   : > { %v2171_v30 = vpop.permute.xlu1 %2170 }
 0x260   : > { %2207 = vst.msk [vmem:[#allocation3 + $0x2c] sm:$0xf] %vm1264_vm14, %v2171_v30  ;;  %v5688_v51 = vpop.f32.mrf.mxu1 }
 0x261   : > { %v2169_v47 = vpop.permute.xlu0 %2168  ;;  %2223 = vst.msk [vmem:[#allocation3 + $0x2c] sm:$0xf] %vm1281_vm15, %v3960_v41  ;;  %v5691_v19 = vpop.f32.mrf.mxu0 }
 0x262   : > { %2206 = vst.msk [vmem:[#allocation3 + $0x28] sm:$0xf] %vm1264_vm14, %v2169_v47  ;;  %v5693_v61 = vpop.f32.mrf.mxu1 }
 0x263   : > { %2222 = vst.msk [vmem:[#allocation3 + $0x28] sm:$0xf] %vm1281_vm15, %v3960_v41  ;;  %v1579_v18 = vpop.permute.xlu1 %1578  ;;  %v5695_v42 = vpop.f32.mrf.mxu0 }
 0x264   : > { %1613 = vst.msk [vmem:[#allocation3 + $0x34] sm:$0xf] %vm658_vm7, %v1579_v18  ;;  %v5698_v21 = vpop.f32.mrf.mxu1 }
 0x265   : > { %v1577_v23 = vpop.permute.xlu0 %1576  ;;  %v5701_v33 = vpop.f32.mrf.mxu0 }
 0x266   : > { %1612 = vst.msk [vmem:[#allocation3 + $0x30] sm:$0xf] %vm658_vm7, %v1577_v23  ;;  %v5703_v37 = vpop.f32.mrf.mxu1 }
 0x267   : > { %v1723_v36 = vpop.permute.xlu1 %1722  ;;  %v5705_v63 = vpop.f32.mrf.mxu0 }
 0x268   : > { %1757 = vst.msk [vmem:[#allocation3 + $0x34] sm:$0xf] %vm806_vm8, %v1723_v36  ;;  %v3653_v14 = vpop.f32.mrf.mxu1 }
 0x269   : > { %v1721_v45 = vpop.permute.xlu0 %1720  ;;  %v2422_v57 = vadd.f32 %v3653_v14, %v5713_v10  ;;  %v3685_v11 = vpop.f32.mrf.mxu0 }
 0x26a   : > { %1756 = vst.msk [vmem:[#allocation3 + $0x30] sm:$0xf] %vm806_vm8, %v1721_v45  ;;  %v3855_v35 = vld [vmem:[#allocation3 + $0x28] sm:$0xff]   ;;  %v2413_v17 = vpop.f32.mrf.mxu1  ;;  %v2985_v49 = vadd.f32 %v3685_v11, %v5725_v50 }
 0x26b   : > { %v1789_v22 = vpop.permute.xlu1 %1788  ;;  %2761 = vmatmul.mubr.bf16.gmra.mxu1 %v3855_v35  ;;  %3276 = vmatmul.mubr.bf16.gmra.mxu0 %v3855_v35  ;;  %v2473_v44 = vmul.f32 %v5720_v34, %v2422_v57  ;;  %v2414_v62 = vadd.f32 %v5713_v10, %v2413_v17  ;;  %v5741_v32 = vpop.f32.mrf.mxu0 }
 0x26c   : > { %1823 = vst.msk [vmem:[#allocation3 + $0x34] sm:$0xf] %vm873_vm9, %v1789_v22  ;;  %2770 = vmatprep.mubr.bf16.mxu1 %v3960_v41  ;;  %3285 = vmatprep.mubr.bf16.mxu0 %v3960_v41  ;;  %v3036_v15 = vmul.f32 %v5739_v38, %v2985_v49  ;;  %v3654_v13 = vpop.f32.mrf.mxu1  ;;  %v2540_v49 = vlaneseq }
 0x26d   : > { %v1787_v29 = vpop.permute.xlu0 %1786  ;;  %v5745_v16 = vadd.f32 %v5734_v9, %v2473_v44  ;;  %v2471_v8 = vmul.f32 %v5720_v34, %v2414_v62  ;;  %v2425_v28 = vadd.f32 %v3654_v13, %v5713_v10  ;;  %v3686_v39 = vpop.f32.mrf.mxu0 }
 0x26e   : > { %1822 = vst.msk [vmem:[#allocation3 + $0x30] sm:$0xf] %vm873_vm9, %v1787_v29  ;;  %v5756_v27 = vadd.f32 %v5752_v60, %v3036_v15  ;;  %v2988_v54 = vadd.f32 %v3686_v39, %v5725_v50  ;;  %v2416_v48 = vpop.f32.mrf.mxu1  ;;  %v2961_v39 = vadd.f32 %v5725_v50, %v5695_v42 }
 0x26f   : > { %v1877_v58 = vpop.permute.xlu1 %1876  ;;  %v5759_v4 = vadd.f32 %v5734_v9, %v2471_v8  ;;  %v2474_v2 = vmul.f32 %v5720_v34, %v2425_v28  ;;  %v2417_v59 = vadd.f32 %v5713_v10, %v2416_v48  ;;  %v2979_v56 = vpop.f32.mrf.mxu0 }
 0x270   : > { %1911 = vst.msk [vmem:[#allocation3 + $0x34] sm:$0xf] %vm962_vm10, %v1877_v58  ;;  %v3037_v53 = vmul.f32 %v5739_v38, %v2988_v54  ;;  %v2980_v24 = vadd.f32 %v5725_v50, %v2979_v56  ;;  %v3657_v7 = vpop.f32.mrf.mxu1 }
 0x271   : > { %v1875_v12 = vpop.permute.xlu0 %1874  ;;  %v5769_v3 = vadd.f32 %v5734_v9, %v2474_v2  ;;  %v2472_v25 = vmul.f32 %v5720_v34, %v2417_v59  ;;  %v2438_v31 = vadd.f32 %v3657_v7, %v5713_v10  ;;  %v3689_v6 = vpop.f32.mrf.mxu0 }
 0x272   : > { %1910 = vst.msk [vmem:[#allocation3 + $0x30] sm:$0xf] %vm962_vm10, %v1875_v12  ;;  %v5774_v0 = vadd.f32 %v5752_v60, %v3037_v53  ;;  %v3035_v46 = vmul.f32 %v5739_v38, %v2980_v24  ;;  %v3001_v5 = vadd.f32 %v3689_v6, %v5725_v50  ;;  %v2429_v1 = vpop.f32.mrf.mxu1  ;;  %v2398_v12 = vadd.f32 %v5713_v10, %v5693_v61 }
 0x273   : > { %v1949_v20 = vpop.permute.xlu1 %1948  ;;  %v5780_v40 = vadd.f32 %v5734_v9, %v2472_v25  ;;  %v2477_v43 = vmul.f32 %v5720_v34, %v2438_v31  ;;  %v2430_v30 = vadd.f32 %v5713_v10, %v2429_v1  ;;  %v2992_v47 = vpop.f32.mrf.mxu0  ;;  %v5826_v31 = vshrl.u32 %v2540_v49, 7 }
 0x274   : > { %1983 = vst.msk [vmem:[#allocation3 + $0x34] sm:$0xf] %vm1035_vm11, %v1949_v20  ;;  %v5786_v18 = vadd.f32 %v5752_v60, %v3035_v46  ;;  %v3040_v23 = vmul.f32 %v5739_v38, %v3001_v5  ;;  %v2993_v36 = vadd.f32 %v5725_v50, %v2992_v47  ;;  %v3658_v45 = vpop.f32.mrf.mxu1 }
 0x275   : > { %v1947_v52 = vpop.permute.xlu0 %1946  ;;  %v5791_v35 = vadd.f32 %v5734_v9, %v2477_v43  ;;  %v2475_v22 = vmul.f32 %v5720_v34, %v2430_v30  ;;  %v2441_v29 = vadd.f32 %v3658_v45, %v5713_v10  ;;  %v3690_v14 = vpop.f32.mrf.mxu0  ;;  %v3030_v43 = vmul.f32 %v5739_v38, %v2961_v39 }
 0x276   : > { %1982 = vst.msk [vmem:[#allocation3 + $0x30] sm:$0xf] %vm1035_vm11, %v1947_v52  ;;  %v5796_v11 = vadd.f32 %v5752_v60, %v3040_v23  ;;  %v3038_v17 = vmul.f32 %v5739_v38, %v2993_v36  ;;  %v3004_v58 = vadd.f32 %v3690_v14, %v5725_v50  ;;  %v2432_v44 = vpop.f32.mrf.mxu1  ;;  %v2401_v45 = vadd.f32 %v5713_v10, %v5703_v37 }
 0x277   : > { %v2015_v26 = vpop.permute.xlu1 %2014  ;;  %v5804_v15 = vadd.f32 %v5734_v9, %v2475_v22  ;;  %v2478_v8 = vmul.f32 %v5720_v34, %v2441_v29  ;;  %v2433_v13 = vadd.f32 %v5713_v10, %v2432_v44  ;;  %v2995_v28 = vpop.f32.mrf.mxu0 }
 0x278   : > { %2049 = vst.msk [vmem:[#allocation3 + $0x34] sm:$0xf] %vm1102_vm12, %v2015_v26  ;;  %v5812_v20 = vadd.f32 %v5752_v60, %v3038_v17  ;;  %v3041_v54 = vmul.f32 %v5739_v38, %v3004_v58  ;;  %v2996_v61 = vadd.f32 %v5725_v50, %v2995_v28  ;;  %v3661_v48 = vpop.f32.mrf.mxu1  ;;  %v2467_v26 = vmul.f32 %v5720_v34, %v2398_v12 }
 0x279   : > { %v2013_v55 = vpop.permute.xlu0 %2012  ;;  %v5817_v52 = vadd.f32 %v5734_v9, %v2478_v8  ;;  %v2476_v2 = vmul.f32 %v5720_v34, %v2433_v13  ;;  %v2454_v59 = vadd.f32 %v3661_v48, %v5713_v10  ;;  %v3693_v56 = vpop.f32.mrf.mxu0  ;;  %v2964_v58 = vadd.f32 %v5725_v50, %v5705_v63 }
 0x27a   : > { %2048 = vst.msk [vmem:[#allocation3 + $0x30] sm:$0xf] %vm1102_vm12, %v2013_v55  ;;  %v5822_v24 = vadd.f32 %v5752_v60, %v3041_v54  ;;  %v3039_v42 = vmul.f32 %v5739_v38, %v2996_v61  ;;  %v3017_v7 = vadd.f32 %v3693_v56, %v5725_v50  ;;  %v2445_v25 = vpop.f32.mrf.mxu1  ;;  %v2542_v63 = vsub.s32 0, %v5826_v31 }
 0x27b   : > { %v2103_v57 = vpop.permute.xlu1 %2102  ;;  %v5831_v46 = vadd.f32 %v5734_v9, %v2476_v2  ;;  %v2481_v5 = vmul.f32 %v5720_v34, %v2454_v59  ;;  %v2446_v1 = vadd.f32 %v5713_v10, %v2445_v25  ;;  %v3008_v55 = vpop.f32.mrf.mxu0  ;;  %v2538_v2 = vld [vmem:[%s6141_s5] sm:$0x3]  ;;  %v2546_v59 = vsub.s32 1, %v5826_v31  ;;  %v3101_v25 = vld [vmem:[%s6141_s5 + $0x2] sm:$0x3] }
 0x27c   : > { %2137 = vst.msk [vmem:[#allocation3 + $0x34] sm:$0xf] %vm1191_vm13, %v2103_v57  ;;  %v5840_v30 = vadd.f32 %v5752_v60, %v3039_v42  ;;  %v3044_v47 = vmul.f32 %v5739_v38, %v3017_v7  ;;  %v3009_v23 = vadd.f32 %v5725_v50, %v3008_v55  ;;  %v3662_v36 = vpop.f32.mrf.mxu1  ;;  %v2490_v56 = vadd.f32 %v5734_v9, %v2467_v26 }
 0x27d   : > { %v2101_v62 = vpop.permute.xlu0 %2100  ;;  %v5849_v22 = vadd.f32 %v5734_v9, %v2481_v5  ;;  %v2479_v29 = vmul.f32 %v5720_v34, %v2446_v1  ;;  %v2457_v14 = vadd.f32 %v3662_v36, %v5713_v10  ;;  %v3694_v57 = vpop.f32.mrf.mxu0  ;;  %v3053_v5 = vadd.f32 %v5752_v60, %v3030_v43 }
 0x27e   : > { %2136 = vst.msk [vmem:[#allocation3 + $0x30] sm:$0xf] %vm1191_vm13, %v2101_v62  ;;  %v5856_v44 = vadd.f32 %v5752_v60, %v3044_v47  ;;  %v3042_v49 = vmul.f32 %v5739_v38, %v3009_v23  ;;  %v3020_v62 = vadd.f32 %v3694_v57, %v5725_v50  ;;  %v2448_v37 = vpop.f32.mrf.mxu1  ;;  %v3031_v1 = vmul.f32 %v5739_v38, %v2964_v58 }
 0x27f   : > { %v2175_v53 = vpop.permute.xlu1 %2174  ;;  %v5862_v8 = vadd.f32 %v5734_v9, %v2479_v29  ;;  %v2482_v13 = vmul.f32 %v5720_v34, %v2457_v14  ;;  %v2449_v28 = vadd.f32 %v5713_v10, %v2448_v37  ;;  %v3011_v39 = vpop.f32.mrf.mxu0  ;;  %v5896_v23 = vrot.slane %v2538_v2, %v2542_v63 }
 0x280   : > { %2209 = vst.msk [vmem:[#allocation3 + $0x34] sm:$0xf] %vm1264_vm14, %v2175_v53  ;;  %v5869_v54 = vadd.f32 %v5752_v60, %v3042_v49  ;;  %v3045_v61 = vmul.f32 %v5739_v38, %v3020_v62  ;;  %v3012_v48 = vadd.f32 %v5725_v50, %v3011_v39  ;;  %v2468_v53 = vmul.f32 %v5720_v34, %v2401_v45 }
 0x281   : > { %v2173_v6 = vpop.permute.xlu0 %2172  ;;  %2225 = vst.msk [vmem:[#allocation3 + $0x34] sm:$0xf] %vm1281_vm15, %v3960_v41  ;;  %v5880_v42 = vadd.f32 %v5734_v9, %v2482_v13  ;;  %v2480_v7 = vmul.f32 %v5720_v34, %v2449_v28  ;;  %v5902_v45 = vrot.slane %v3101_v25, %v2542_v63  ;;  %v2506_v14 = vmax.f32 %v2490_v56, 0.0 }
 0x282   : > { %2208 = vst.msk [vmem:[#allocation3 + $0x30] sm:$0xf] %vm1264_vm14, %v2173_v6  ;;  %v5889_v31 = vadd.f32 %v5752_v60, %v3045_v61  ;;  %v3043_v26 = vmul.f32 %v5739_v38, %v3012_v48  ;;  %v2491_v29 = vadd.f32 %v5734_v9, %v2468_v53  ;;  %v5905_v57 = vrot.slane %v2538_v2, %v2546_v59 }
 0x283   : > { %2224 = vst.msk [vmem:[#allocation3 + $0x30] sm:$0xf] %vm1281_vm15, %v3960_v41  ;;  %v1583_v17 = vpop.permute.xlu1 %1582  ;;  %v5894_v47 = vadd.f32 %v5734_v9, %v2480_v7  ;;  %v3054_v58 = vadd.f32 %v5752_v60, %v3031_v1  ;;  %v3069_v62 = vmax.f32 %v3053_v5, 0.0  ;;  %v5909_v37 = vrot.slane %v3101_v25, %v2546_v59 }
 0x284   : > { %1615 = vst.msk [vmem:[#allocation3 + $0x3c] sm:$0xf] %vm658_vm7, %v1583_v17  ;;  %v5900_v43 = vadd.f32 %v5752_v60, %v3043_v26  ;;  %v2507_v59 = vmax.f32 %v2491_v29, 0.0 }
 0x285   : > { %v1581_v12 = vpop.permute.xlu0 %1580 }
 0x286   : > { %1614 = vst.msk [vmem:[#allocation3 + $0x38] sm:$0xf] %vm658_vm7, %v1581_v12 }
 0x287   : > { %v1727_v6 = vpop.permute.xlu1 %1726 }
 0x288   : > { %1759 = vst.msk [vmem:[#allocation3 + $0x3c] sm:$0xf] %vm806_vm8, %v1727_v6  ;;  %v3070_v6 = vmax.f32 %v3054_v58, 0.0 }
 0x289   : > { %v1725_v55 = vpop.permute.xlu0 %1724 }
 0x28a   : > { %1758 = vst.msk [vmem:[#allocation3 + $0x38] sm:$0xf] %vm806_vm8, %v1725_v55  ;;  %v3856_v36 = vld [vmem:[#allocation3 + $0x30] sm:$0xff]  }
 0x28b   : > { %v1793_v17 = vpop.permute.xlu1 %1792  ;;  %2771 = vmatmul.mubr.bf16.gmra.mxu1 %v3856_v36  ;;  %3286 = vmatmul.mubr.bf16.gmra.mxu0 %v3856_v36  ;;  %v2712_v49 = vpop.f32.mrf.mxu1 }
 0x28c   : > { %1825 = vst.msk [vmem:[#allocation3 + $0x3c] sm:$0xf] %vm873_vm9, %v1793_v17  ;;  %2780 = vmatprep.mubr.bf16.mxu1 %v3960_v41  ;;  %3295 = vmatprep.mubr.bf16.mxu0 %v3960_v41  ;;  %v2713_v13 = vadd.f32 %v2712_v49, %v5896_v23  ;;  %v3227_v28 = vpop.f32.mrf.mxu0 }
 0x28d   : > { %v1791_v12 = vpop.permute.xlu0 %1790  ;;  %v3228_v39 = vadd.f32 %v3227_v28, %v5902_v45  ;;  %v2714_v63 = vpop.f32.mrf.mxu1 }
 0x28e   : > { %1824 = vst.msk [vmem:[#allocation3 + $0x38] sm:$0xf] %vm873_vm9, %v1791_v12  ;;  %v2791_v61 = vmul.f32 %v2713_v13, %v2506_v14  ;;  %v2715_v48 = vadd.f32 %v2714_v63, %v5905_v57  ;;  %v3229_v2 = vpop.f32.mrf.mxu0 }
 0x28f   : > { %v1881_v56 = vpop.permute.xlu1 %1880  ;;  %v3306_v53 = vmul.f32 %v3228_v39, %v3069_v62  ;;  %v3230_v7 = vadd.f32 %v3229_v2, %v5909_v37  ;;  %v2716_v25 = vpop.f32.mrf.mxu1 }
 0x290   : > { %1913 = vst.msk [vmem:[#allocation3 + $0x3c] sm:$0xf] %vm962_vm10, %v1881_v56  ;;  %v2807_v1 = vadd.f32 %v2791_v61, %v2715_v48  ;;  %v2717_v26 = vadd.f32 %v2716_v25, %v5896_v23  ;;  %v3231_v55 = vpop.f32.mrf.mxu0 }
 0x291   : > { %v1879_v5 = vpop.permute.xlu0 %1878  ;;  %v3322_v36 = vadd.f32 %v3306_v53, %v3230_v7  ;;  %v3232_v14 = vadd.f32 %v3231_v55, %v5902_v45  ;;  %v2718_v17 = vpop.f32.mrf.mxu1  ;;  %v2409_v55 = vadd.f32 %v5698_v21, %v5713_v10 }
 0x292   : > { %1912 = vst.msk [vmem:[#allocation3 + $0x38] sm:$0xf] %vm962_vm10, %v1879_v5  ;;  %v2823_v29 = vmax.f32 %v2807_v1, 0.0  ;;  %v2792_v49 = vmul.f32 %v2717_v26, %v2507_v59  ;;  %v2719_v62 = vadd.f32 %v2718_v17, %v5905_v57  ;;  %v3233_v12 = vpop.f32.mrf.mxu0  ;;  %v2969_v5 = vadd.f32 %v5691_v19, %v5725_v50 }
 0x293   : > { %v1953_v13 = vpop.permute.xlu1 %1952  ;;  %v3338_v58 = vmax.f32 %v3322_v36, 0.0  ;;  %v3307_v28 = vmul.f32 %v3232_v14, %v3070_v6  ;;  %v3234_v39 = vadd.f32 %v3233_v12, %v5909_v37  ;;  %v2406_v6 = vadd.f32 %v5688_v51, %v5713_v10 }
 0x294   : > { %1985 = vst.msk [vmem:[#allocation3 + $0x3c] sm:$0xf] %vm1035_vm11, %v1953_v13  ;;  %2839 = vst [vmem:[%s5928_s25] sm:$0xff] %v2823_v29  ;;  %v2808_v61 = vadd.f32 %v2792_v49, %v2719_v62  ;;  %v2972_v36 = vadd.f32 %v5701_v33, %v5725_v50  ;;  %v3032_v19 = vmul.f32 %v5739_v38, %v2969_v5 }
 0x295   : > { %v1951_v63 = vpop.permute.xlu0 %1950  ;;  %3354 = vst [vmem:[%s5928_s25 + $0x8] sm:$0xff] %v3338_v58  ;;  %v3323_v48 = vadd.f32 %v3307_v28, %v3234_v39  ;;  %v2469_v51 = vmul.f32 %v5720_v34, %v2406_v6  ;;  %v2470_v14 = vmul.f32 %v5720_v34, %v2409_v55 }
 0x296   : > { %1984 = vst.msk [vmem:[#allocation3 + $0x38] sm:$0xf] %vm1035_vm11, %v1951_v63  ;;  %v2824_v2 = vmax.f32 %v2808_v61, 0.0  ;;  %v3033_v17 = vmul.f32 %v5739_v38, %v2972_v36  ;;  %v3055_v49 = vadd.f32 %v5752_v60, %v3032_v19 }
 0x297   : > { %v2019_v59 = vpop.permute.xlu1 %2018  ;;  %v3339_v56 = vmax.f32 %v3323_v48, 0.0  ;;  %v2492_v29 = vadd.f32 %v5734_v9, %v2469_v51  ;;  %v2493_v21 = vadd.f32 %v5734_v9, %v2470_v14 }
 0x298   : > { %2051 = vst.msk [vmem:[#allocation3 + $0x3c] sm:$0xf] %vm1102_vm12, %v2019_v59  ;;  %2840 = vst [vmem:[%s5928_s25 + $0x10] sm:$0xff] %v2824_v2  ;;  %v3056_v33 = vadd.f32 %v5752_v60, %v3033_v17  ;;  %v3071_v12 = vmax.f32 %v3055_v49, 0.0 }
 0x299   : > { %v2017_v53 = vpop.permute.xlu0 %2016  ;;  %3355 = vst [vmem:[%s5928_s25 + $0x18] sm:$0xff] %v3339_v56  ;;  %v2508_v10 = vmax.f32 %v2492_v29, 0.0  ;;  %v2509_v63 = vmax.f32 %v2493_v21, 0.0 }
 0x29a   : > { %2050 = vst.msk [vmem:[#allocation3 + $0x38] sm:$0xf] %vm1102_vm12, %v2017_v53  ;;  %v3072_v61 = vmax.f32 %v3056_v33, 0.0  ;;  %v2977_v33 = vadd.f32 %v5725_v50, %v5741_v32 }
 0x29b   : > { %v2107_v7 = vpop.permute.xlu1 %2106 }
 0x29c   : > { %2139 = vst.msk [vmem:[#allocation3 + $0x3c] sm:$0xf] %vm1191_vm13, %v2107_v7 }
 0x29d   : > { %v2105_v25 = vpop.permute.xlu0 %2104 }
 0x29e   : > { %2138 = vst.msk [vmem:[#allocation3 + $0x38] sm:$0xf] %vm1191_vm13, %v2105_v25 }
 0x29f   : > { %v2179_v1 = vpop.permute.xlu1 %2178 }
 0x2a0   : > { %2211 = vst.msk [vmem:[#allocation3 + $0x3c] sm:$0xf] %vm1264_vm14, %v2179_v1 }
 0x2a1   : > { %v2177_v26 = vpop.permute.xlu0 %2176  ;;  %2227 = vst.msk [vmem:[#allocation3 + $0x3c] sm:$0xf] %vm1281_vm15, %v3960_v41 }
 0x2a2   : > { %2210 = vst.msk [vmem:[#allocation3 + $0x38] sm:$0xf] %vm1264_vm14, %v2177_v26 }
 0x2a3   : > { %2226 = vst.msk [vmem:[#allocation3 + $0x38] sm:$0xf] %vm1281_vm15, %v3960_v41 }
 0x2aa   : > { %v3857_v62 = vld [vmem:[#allocation3 + $0x38] sm:$0xff]  }
 0x2ab   : > { %2781 = vmatmul.mubr.bf16.gmra.mxu1 %v3857_v62  ;;  %3296 = vmatmul.mubr.bf16.gmra.mxu0 %v3857_v62  ;;  %v2722_v41 = vpop.f32.mrf.mxu1 }
 0x2ac   : > { %v3237_v13 = vpop.f32.mrf.mxu0  ;;  %v2723_v58 = vadd.f32 %v2722_v41, %v5896_v23  ;;  %v2510_v41 = vmax.f32 %v5759_v4, 0.0 }
 0x2ad   : > { %v3238_v34 = vadd.f32 %v3237_v13, %v5902_v45  ;;  %v2724_v28 = vpop.f32.mrf.mxu1 }
 0x2ae   : > { %v3239_v39 = vpop.f32.mrf.mxu0  ;;  %v2793_v48 = vmul.f32 %v2723_v58, %v2508_v10  ;;  %v2725_v9 = vadd.f32 %v2724_v28, %v5905_v57  ;;  %v3034_v10 = vmul.f32 %v5739_v38, %v2977_v33 }
 0x2af   : > { %v3308_v2 = vmul.f32 %v3238_v34, %v3071_v12  ;;  %v3240_v59 = vadd.f32 %v3239_v39, %v5909_v37  ;;  %v2726_v56 = vpop.f32.mrf.mxu1 }
 0x2b0   : > { %v3241_v53 = vpop.f32.mrf.mxu0  ;;  %v2809_v7 = vadd.f32 %v2793_v48, %v2725_v9  ;;  %v2727_v6 = vadd.f32 %v2726_v56, %v5896_v23  ;;  %v3057_v12 = vadd.f32 %v5752_v60, %v3034_v10  ;;  %v2511_v48 = vmax.f32 %v5780_v40, 0.0 }
 0x2b1   : > { %v3324_v25 = vadd.f32 %v3308_v2, %v3240_v59  ;;  %v3242_v5 = vadd.f32 %v3241_v53, %v5902_v45  ;;  %v2728_v51 = vpop.f32.mrf.mxu1  ;;  %v3074_v2 = vmax.f32 %v5786_v18, 0.0 }
 0x2b2   : > { %v2825_v1 = vmax.f32 %v2809_v7, 0.0  ;;  %v2794_v55 = vmul.f32 %v2727_v6, %v2509_v63  ;;  %v3243_v19 = vpop.f32.mrf.mxu0  ;;  %v2729_v14 = vadd.f32 %v2728_v51, %v5905_v57  ;;  %v3073_v13 = vmax.f32 %v3057_v12, 0.0 }
 0x2b3   : > { %v3340_v26 = vmax.f32 %v3324_v25, 0.0  ;;  %v3309_v36 = vmul.f32 %v3242_v5, %v3072_v61  ;;  %v3244_v17 = vadd.f32 %v3243_v19, %v5909_v37 }
 0x2b4   : > { %2841 = vst [vmem:[%s5928_s25 + $0x20] sm:$0xff] %v2825_v1  ;;  %v2810_v29 = vadd.f32 %v2794_v55, %v2729_v14 }
 0x2b5   : > { %3356 = vst [vmem:[%s5928_s25 + $0x28] sm:$0xff] %v3340_v26  ;;  %v3325_v49 = vadd.f32 %v3309_v36, %v3244_v17  ;;  %v2512_v17 = vmax.f32 %v5745_v16, 0.0 }
 0x2b6   : > { %v2826_v62 = vmax.f32 %v2810_v29, 0.0  ;;  %v3075_v29 = vmax.f32 %v5756_v27, 0.0 }
 0x2b7   : > { %v3341_v21 = vmax.f32 %v3325_v49, 0.0 }
 0x2b8   : > { %2842 = vst [vmem:[%s5928_s25 + $0x30] sm:$0xff] %v2826_v62 }
 0x2b9   : > { %3357 = vst [vmem:[%s5928_s25 + $0x38] sm:$0xff] %v3341_v21 }
 0x2cb   : > { %v2732_v58 = vpop.f32.mrf.mxu1 }
 0x2cc   : > { %v3247_v34 = vpop.f32.mrf.mxu0  ;;  %v2733_v28 = vadd.f32 %v2732_v58, %v5896_v23 }
 0x2cd   : > { %v3248_v39 = vadd.f32 %v3247_v34, %v5902_v45  ;;  %v2734_v63 = vpop.f32.mrf.mxu1 }
 0x2ce   : > { %v3249_v61 = vpop.f32.mrf.mxu0  ;;  %v2795_v50 = vmul.f32 %v2733_v28, %v2510_v41  ;;  %v2735_v38 = vadd.f32 %v2734_v63, %v5905_v57  ;;  %v2513_v41 = vmax.f32 %v5769_v3, 0.0 }
 0x2cf   : > { %v3310_v32 = vmul.f32 %v3248_v39, %v3073_v13  ;;  %v3250_v60 = vadd.f32 %v3249_v61, %v5909_v37  ;;  %v2736_v4 = vpop.f32.mrf.mxu1  ;;  %v3076_v13 = vmax.f32 %v5774_v0, 0.0 }
 0x2d0   : > { %v3251_v9 = vpop.f32.mrf.mxu0  ;;  %v2811_v59 = vadd.f32 %v2795_v50, %v2735_v38  ;;  %v2737_v53 = vadd.f32 %v2736_v4, %v5896_v23 }
 0x2d1   : > { %v3326_v56 = vadd.f32 %v3310_v32, %v3250_v60  ;;  %v3252_v7 = vadd.f32 %v3251_v9, %v5902_v45  ;;  %v2738_v5 = vpop.f32.mrf.mxu1 }
 0x2d2   : > { %v2827_v40 = vmax.f32 %v2811_v59, 0.0  ;;  %v2796_v25 = vmul.f32 %v2737_v53, %v2511_v48  ;;  %v3253_v1 = vpop.f32.mrf.mxu0  ;;  %v2739_v26 = vadd.f32 %v2738_v5, %v5905_v57 }
 0x2d3   : > { %v3342_v18 = vmax.f32 %v3326_v56, 0.0  ;;  %v3311_v6 = vmul.f32 %v3252_v7, %v3074_v2  ;;  %v3254_v55 = vadd.f32 %v3253_v1, %v5909_v37 }
 0x2d4   : > { %2843 = vst [vmem:[%s5928_s25 + $0x40] sm:$0xff] %v2827_v40  ;;  %v2812_v36 = vadd.f32 %v2796_v25, %v2739_v26  ;;  %v2514_v40 = vmax.f32 %v5804_v15, 0.0 }
 0x2d5   : > { %3358 = vst [vmem:[%s5928_s25 + $0x48] sm:$0xff] %v3342_v18  ;;  %v3327_v51 = vadd.f32 %v3311_v6, %v3254_v55  ;;  %v3077_v18 = vmax.f32 %v5812_v20, 0.0 }
 0x2d6   : > { %v2828_v19 = vmax.f32 %v2812_v36, 0.0  ;;  %v2515_v36 = vmax.f32 %v5831_v46, 0.0 }
 0x2d7   : > { %v3343_v14 = vmax.f32 %v3327_v51, 0.0  ;;  %v3078_v51 = vmax.f32 %v5840_v30, 0.0 }
 0x2d8   : > { %2844 = vst [vmem:[%s5928_s25 + $0x50] sm:$0xff] %v2828_v19 }
 0x2d9   : > { %3359 = vst [vmem:[%s5928_s25 + $0x58] sm:$0xff] %v3343_v14 }
 0x2eb   : > { %v2742_v49 = vpop.f32.mrf.mxu1 }
 0x2ec   : > { %v3257_v62 = vpop.f32.mrf.mxu0  ;;  %v2743_v21 = vadd.f32 %v2742_v49, %v5896_v23 }
 0x2ed   : > { %v3258_v33 = vadd.f32 %v3257_v62, %v5902_v45  ;;  %v2744_v10 = vpop.f32.mrf.mxu1 }
 0x2ee   : > { %v3259_v12 = vpop.f32.mrf.mxu0  ;;  %v2797_v58 = vmul.f32 %v2743_v21, %v2512_v17  ;;  %v2745_v28 = vadd.f32 %v2744_v10, %v5905_v57 }
 0x2ef   : > { %v3312_v34 = vmul.f32 %v3258_v33, %v3075_v29  ;;  %v3260_v16 = vadd.f32 %v3259_v12, %v5909_v37  ;;  %v2746_v27 = vpop.f32.mrf.mxu1 }
 0x2f0   : > { %v3261_v39 = vpop.f32.mrf.mxu0  ;;  %v2813_v63 = vadd.f32 %v2797_v58, %v2745_v28  ;;  %v2747_v48 = vadd.f32 %v2746_v27, %v5896_v23 }
 0x2f1   : > { %v3328_v61 = vadd.f32 %v3312_v34, %v3260_v16  ;;  %v3262_v2 = vadd.f32 %v3261_v39, %v5902_v45  ;;  %v2748_v38 = vpop.f32.mrf.mxu1 }
 0x2f2   : > { %v2829_v3 = vmax.f32 %v2813_v63, 0.0  ;;  %v2798_v50 = vmul.f32 %v2747_v48, %v2513_v41  ;;  %v3263_v60 = vpop.f32.mrf.mxu0  ;;  %v2749_v4 = vadd.f32 %v2748_v38, %v5905_v57  ;;  %v2516_v48 = vmax.f32 %v5791_v35, 0.0 }
 0x2f3   : > { %v3344_v0 = vmax.f32 %v3328_v61, 0.0  ;;  %v3313_v32 = vmul.f32 %v3262_v2, %v3076_v13  ;;  %v3264_v9 = vadd.f32 %v3263_v60, %v5909_v37  ;;  %v3080_v35 = vmax.f32 %v5822_v24, 0.0 }
 0x2f4   : > { %2845 = vst [vmem:[%s5928_s25 + $0x60] sm:$0xff] %v2829_v3  ;;  %v2814_v59 = vadd.f32 %v2798_v50, %v2749_v4  ;;  %v3079_v3 = vmax.f32 %v5796_v11, 0.0 }
 0x2f5   : > { %3360 = vst [vmem:[%s5928_s25 + $0x68] sm:$0xff] %v3344_v0  ;;  %v3329_v56 = vadd.f32 %v3313_v32, %v3264_v9 }
 0x2f6   : > { %v2830_v53 = vmax.f32 %v2814_v59, 0.0  ;;  %v2517_v59 = vmax.f32 %v5817_v52, 0.0 }
 0x2f7   : > { %v3345_v7 = vmax.f32 %v3329_v56, 0.0 }
 0x2f8   : > { %2846 = vst [vmem:[%s5928_s25 + $0x70] sm:$0xff] %v2830_v53 }
 0x2f9   : > { %3361 = vst [vmem:[%s5928_s25 + $0x78] sm:$0xff] %v3345_v7 }
 0x30b   : > { %v2752_v25 = vpop.f32.mrf.mxu1  ;;  %v3267_v6 = vpop.f32.mrf.mxu0 }
 0x30c   : > { %v2753_v5 = vadd.f32 %v2752_v25, %v5896_v23  ;;  %v3268_v1 = vadd.f32 %v3267_v6, %v5902_v45 }
 0x30d   : > { %v2754_v26 = vpop.f32.mrf.mxu1  ;;  %v3269_v55 = vpop.f32.mrf.mxu0 }
 0x30e   : > { %v2799_v19 = vmul.f32 %v2753_v5, %v2514_v40  ;;  %v3314_v14 = vmul.f32 %v3268_v1, %v3077_v18  ;;  %v2755_v17 = vadd.f32 %v2754_v26, %v5905_v57  ;;  %v3270_v15 = vadd.f32 %v3269_v55, %v5909_v37 }
 0x30f   : > { %v2756_v20 = vpop.f32.mrf.mxu1  ;;  %v3271_v29 = vpop.f32.mrf.mxu0 }
 0x310   : > { %v2815_v49 = vadd.f32 %v2799_v19, %v2755_v17  ;;  %v3330_v62 = vadd.f32 %v3314_v14, %v3270_v15  ;;  %v2757_v21 = vadd.f32 %v2756_v20, %v5896_v23  ;;  %v3272_v33 = vadd.f32 %v3271_v29, %v5902_v45 }
 0x311   : > { %v2758_v41 = vpop.f32.mrf.mxu1  ;;  %v3273_v13 = vpop.f32.mrf.mxu0  ;;  %v2518_v20 = vmax.f32 %v5862_v8, 0.0  ;;  %v3082_v8 = vmax.f32 %v5900_v43, 0.0 }
 0x312   : > { %v2831_v46 = vmax.f32 %v2815_v49, 0.0  ;;  %v3346_v30 = vmax.f32 %v3330_v62, 0.0  ;;  %v2800_v10 = vmul.f32 %v2757_v21, %v2515_v36  ;;  %v3315_v12 = vmul.f32 %v3272_v33, %v3078_v51 }
 0x313   : > { %v2759_v58 = vadd.f32 %v2758_v41, %v5905_v57  ;;  %v3274_v34 = vadd.f32 %v3273_v13, %v5909_v37  ;;  %v3081_v49 = vmax.f32 %v5869_v54, 0.0  ;;  %v2519_v41 = vmax.f32 %v5894_v47, 0.0 }
 0x314   : > { %2847 = vst [vmem:[%s5928_s25 + $0x80] sm:$0xff] %v2831_v46  ;;  %3362 = vst [vmem:[%s5928_s25 + $0x88] sm:$0xff] %v3346_v30 }
 0x315   : > { %v2816_v28 = vadd.f32 %v2800_v10, %v2759_v58  ;;  %v3331_v16 = vadd.f32 %v3315_v12, %v3274_v34 }
 0x317   : > { %v2832_v27 = vmax.f32 %v2816_v28, 0.0  ;;  %v3347_v39 = vmax.f32 %v3331_v16, 0.0 }
 0x319   : > { %2848 = vst [vmem:[%s5928_s25 + $0x90] sm:$0xff] %v2832_v27  ;;  %3363 = vst [vmem:[%s5928_s25 + $0x98] sm:$0xff] %v3347_v39 }
 0x32b   : > { %v2762_v63 = vpop.f32.mrf.mxu1  ;;  %v3277_v61 = vpop.f32.mrf.mxu0 }
 0x32c   : > { %v2763_v2 = vadd.f32 %v2762_v63, %v5896_v23  ;;  %v3278_v0 = vadd.f32 %v3277_v61, %v5902_v45 }
 0x32d   : > { %v2764_v50 = vpop.f32.mrf.mxu1  ;;  %v3279_v32 = vpop.f32.mrf.mxu0 }
 0x32e   : > { %v2801_v38 = vmul.f32 %v2763_v2, %v2516_v48  ;;  %v3316_v60 = vmul.f32 %v3278_v0, %v3079_v3  ;;  %v2765_v4 = vadd.f32 %v2764_v50, %v5905_v57  ;;  %v3280_v9 = vadd.f32 %v3279_v32, %v5909_v37 }
 0x32f   : > { %v2766_v56 = vpop.f32.mrf.mxu1  ;;  %v3281_v53 = vpop.f32.mrf.mxu0 }
 0x330   : > { %v2817_v7 = vadd.f32 %v2801_v38, %v2765_v4  ;;  %v3332_v11 = vadd.f32 %v3316_v60, %v3280_v9  ;;  %v2767_v40 = vadd.f32 %v2766_v56, %v5896_v23  ;;  %v3282_v18 = vadd.f32 %v3281_v53, %v5902_v45 }
 0x331   : > { %v2768_v25 = vpop.f32.mrf.mxu1  ;;  %v3283_v6 = vpop.f32.mrf.mxu0  ;;  %v2520_v4 = vmax.f32 %v5849_v22, 0.0  ;;  %v3084_v22 = vmax.f32 %v5889_v31, 0.0 }
 0x332   : > { %v2833_v5 = vmax.f32 %v2817_v7, 0.0  ;;  %v3348_v1 = vmax.f32 %v3332_v11, 0.0  ;;  %v2802_v26 = vmul.f32 %v2767_v40, %v2517_v59  ;;  %v3317_v52 = vmul.f32 %v3282_v18, %v3080_v35 }
 0x333   : > { %v2769_v55 = vadd.f32 %v2768_v25, %v5905_v57  ;;  %v3284_v36 = vadd.f32 %v3283_v6, %v5909_v37  ;;  %v3083_v59 = vmax.f32 %v5856_v44, 0.0  ;;  %v2521_v25 = vmax.f32 %v5880_v42, 0.0 }
 0x334   : > { %2849 = vst [vmem:[%s5928_s25 + $0xa0] sm:$0xff] %v2833_v5  ;;  %3364 = vst [vmem:[%s5928_s25 + $0xa8] sm:$0xff] %v3348_v1 }
 0x335   : > { %v2818_v24 = vadd.f32 %v2802_v26, %v2769_v55  ;;  %v3333_v51 = vadd.f32 %v3317_v52, %v3284_v36 }
 0x337   : > { %v2834_v19 = vmax.f32 %v2818_v24, 0.0  ;;  %v3349_v14 = vmax.f32 %v3333_v51, 0.0 }
 0x339   : > { %2850 = vst [vmem:[%s5928_s25 + $0xb0] sm:$0xff] %v2834_v19  ;;  %3365 = vst [vmem:[%s5928_s25 + $0xb8] sm:$0xff] %v3349_v14 }
 0x34b   : > { %v2772_v17 = vpop.f32.mrf.mxu1  ;;  %v3287_v15 = vpop.f32.mrf.mxu0 }
 0x34c   : > { %v2773_v29 = vadd.f32 %v2772_v17, %v5896_v23  ;;  %v3288_v62 = vadd.f32 %v3287_v15, %v5902_v45 }
 0x34d   : > { %v2774_v21 = vpop.f32.mrf.mxu1  ;;  %v3289_v33 = vpop.f32.mrf.mxu0 }
 0x34e   : > { %v2803_v46 = vmul.f32 %v2773_v29, %v2518_v20  ;;  %v3318_v30 = vmul.f32 %v3288_v62, %v3081_v49  ;;  %v2775_v10 = vadd.f32 %v2774_v21, %v5905_v57  ;;  %v3290_v12 = vadd.f32 %v3289_v33, %v5909_v37 }
 0x34f   : > { %v2776_v13 = vpop.f32.mrf.mxu1  ;;  %v3291_v58 = vpop.f32.mrf.mxu0 }
 0x350   : > { %v2819_v34 = vadd.f32 %v2803_v46, %v2775_v10  ;;  %v3334_v54 = vadd.f32 %v3318_v30, %v3290_v12  ;;  %v2777_v28 = vadd.f32 %v2776_v13, %v5896_v23  ;;  %v3292_v16 = vadd.f32 %v3291_v58, %v5902_v45 }
 0x351   : > { %v2778_v27 = vpop.f32.mrf.mxu1  ;;  %v3293_v39 = vpop.f32.mrf.mxu0 }
 0x352   : > { %v2835_v63 = vmax.f32 %v2819_v34, 0.0  ;;  %v3350_v61 = vmax.f32 %v3334_v54, 0.0  ;;  %v2804_v48 = vmul.f32 %v2777_v28, %v2519_v41  ;;  %v3319_v47 = vmul.f32 %v3292_v16, %v3082_v8 }
 0x353   : > { %v2779_v2 = vadd.f32 %v2778_v27, %v5905_v57  ;;  %v3294_v3 = vadd.f32 %v3293_v39, %v5909_v37 }
 0x354   : > { %2851 = vst [vmem:[%s5928_s25 + $0xc0] sm:$0xff] %v2835_v63  ;;  %3366 = vst [vmem:[%s5928_s25 + $0xc8] sm:$0xff] %v3350_v61 }
 0x355   : > { %v2820_v43 = vadd.f32 %v2804_v48, %v2779_v2  ;;  %v3335_v0 = vadd.f32 %v3319_v47, %v3294_v3 }
 0x357   : > { %v2836_v50 = vmax.f32 %v2820_v43, 0.0  ;;  %v3351_v32 = vmax.f32 %v3335_v0, 0.0 }
 0x359   : > { %2852 = vst [vmem:[%s5928_s25 + $0xd0] sm:$0xff] %v2836_v50  ;;  %3367 = vst [vmem:[%s5928_s25 + $0xd8] sm:$0xff] %v3351_v32 }
 0x36b   : > { %v2782_v38 = vpop.f32.mrf.mxu1  ;;  %v3297_v60 = vpop.f32.mrf.mxu0 }
 0x36c   : > { %v2783_v9 = vadd.f32 %v2782_v38, %v5896_v23  ;;  %v3298_v56 = vadd.f32 %v3297_v60, %v5902_v45 }
 0x36d   : > { %v2784_v35 = vpop.f32.mrf.mxu1  ;;  %v3299_v53 = vpop.f32.mrf.mxu0 }
 0x36e   : > { %v2805_v7 = vmul.f32 %v2783_v9, %v2520_v4  ;;  %v3320_v11 = vmul.f32 %v3298_v56, %v3083_v59  ;;  %v2785_v40 = vadd.f32 %v2784_v35, %v5905_v57  ;;  %v3300_v18 = vadd.f32 %v3299_v53, %v5909_v37 }
 0x36f   : > { %v2786_v6 = vpop.f32.mrf.mxu1  ;;  %v3301_v5 = vpop.f32.mrf.mxu0 }
 0x370   : > { %v2821_v44 = vadd.f32 %v2805_v7, %v2785_v40  ;;  %v3336_v1 = vadd.f32 %v3320_v11, %v3300_v18  ;;  %v2787_v26 = vadd.f32 %v2786_v6, %v5896_v23  ;;  %v3302_v52 = vadd.f32 %v3301_v5, %v5902_v45 }
 0x371   : > { %v2788_v55 = vpop.f32.mrf.mxu1  ;;  %v3303_v36 = vpop.f32.mrf.mxu0 }
 0x372   : > { %v2837_v24 = vmax.f32 %v2821_v44, 0.0  ;;  %v3352_v51 = vmax.f32 %v3336_v1, 0.0  ;;  %v2806_v42 = vmul.f32 %v2787_v26, %v2521_v25  ;;  %v3321_v31 = vmul.f32 %v3302_v52, %v3084_v22 }
 0x373   : > { %v2789_v19 = vadd.f32 %v2788_v55, %v5905_v57  ;;  %v3304_v14 = vadd.f32 %v3303_v36, %v5909_v37 }
 0x374   : > { %2853 = vst [vmem:[%s5928_s25 + $0xe0] sm:$0xff] %v2837_v24  ;;  %3368 = vst [vmem:[%s5928_s25 + $0xe8] sm:$0xff] %v3352_v51 }
 0x375   : > { %v2822_v23 = vadd.f32 %v2806_v42, %v2789_v19  ;;  %v3337_v45 = vadd.f32 %v3321_v31, %v3304_v14 }
 0x377   : > { %v2838_v17 = vmax.f32 %v2822_v23, 0.0  ;;  %v3353_v15 = vmax.f32 %v3337_v45, 0.0 }
 0x379   : > { %2854 = vst [vmem:[%s5928_s25 + $0xf0] sm:$0xff] %v2838_v17  ;;  %3369 = vst [vmem:[%s5928_s25 + $0xf8] sm:$0xff] %v3353_v15 }
 0x37a   : > { %3871 = shalt.err (!%p3868_p7)
}
 0x37b   : > { %s3872_s22 = scalar_lea.hbm %s6076_s13, 4096  ;;  %s3876_s0 = scalar_lea.hbm %s6144_s8, 16384 }
 0x37c   : > { %p3873_p9 = scmp.ne.s32.totalorder %s6076_s13, %s3872_s22  ;;  %p3877_p12 = scmp.lt.s32.totalorder %s6076_s13, %s6144_s8 }
 0x37d   : > { %p3878_p13 = scmp.lt.s32.totalorder %s3876_s0, %s3872_s22 }
 0x37e   : > { %p3874_p10 = pnand %p3873_p9, %p4059_p3 }
 0x37f   : > { %p3879_p0 = por %p3878_p13, %p3877_p12 }
 0x380   : > { %p3875_p11 = pneg %p3874_p10 }
 0x382   : > { %p3880_p1 = pnand %p3879_p0, %p3875_p11 }
 0x384   : > { %3883 = shalt.err (!%p3880_p1)
}
 0x385   : > { %s3962_s9 = smov 256  }
 0x386   : > { %3697 = dma.vmem_to_hbm [thread:$0]  (%p4059_p3), %s6078_s15, 4096, %s6076_s13, %s6084_s2, %s3962_s9, %s3962_s9, %s6182_s14  }
 0x387 PF: > { %p3703_p2 = scmp.ge.s32.totalorder %s3950_s12, 2  ;;  %s3402_s11 = sand.u32 1, %s3922_s27  }
 0x388   : > { %s3403_s1 = scalar_lea.sflag [#allocation5], %s3402_s11 }
 0x389   : > { %p3700_p4 = pnand %p3703_p2, %p4068_p8 }
 0x38b   : > { %p3701_p5 = pneg %p3700_p4 }
 0x38d   : > { %3917 = dma.done.wait (%p3701_p5), %s3403_s1, 4096  }
 0x38e   : > { %3919 = vsyncadd (%p3701_p5), %s3403_s1, 4294963200  ;;  %s21_s12 = sadd.s32 1, %s3950_s12   ;;  %s6187_s9 = sld [smem:[#allocation7_spill]] }
 0x38f   : > { %p18_p6 = scmp.ge.s32.totalorder %s21_s12, 6   ;;  %s6188_s18 = sld [smem:[#allocation8_spill]] }
 0x390   : > { %s6189_s11 = sld [smem:[#allocation9_spill]]  ;;  %s6190_s27 = smov %s3926_s28 }
 0x391   : > { %s6191_s28 = smov %s3930_s29  ;;  %s6192_s29 = smov %s4077_s23 }
 0x392   : > { %s6193_s30 = smov %s3942_s10  ;;  %20 = sbr.rel (!%p18_p6) target bundleno = 9 (0x9), region = 90 }
 0x395   : > { %s6194_s10 = smov %s6188_s18 }
 0x397   :  { %3408 = vsyncpa [#allocation5], 1 }
 0x398   :  { %3410 = vsyncpa [#allocation5 + $0x1], 1 }

</bundles_post_ra>
